<compile_context>
chip_gen: v6e
topology: v6e:2x2x1
jax: 0.10.0
libtpu: 0.0.40
codegen_flags: <defaults>
</compile_context>

<pallas_src>
import jax
import jax.numpy as jnp
import numpy as np
from jax import lax
from jax.experimental import pallas as pl
from jax.experimental.pallas import tpu as pltpu

# -- hyperparameters implied by the module --
LABELS_SIZE = 5
EMBEDDING_DIM = 32
HIDDEN_SIZE = 32
NUM_LAYERS = 2
DROPOUT = 0.0            # nn.LSTM dropout is training-only; eval forward is a no-op
CONV_CHANNELS = 256
KERNEL_SIZE = 3
OUT_PAD = 128            # lane-dense padded width of the final linear output

_VMEM = pl.BlockSpec(memory_space=pltpu.MemorySpace.VMEM)


# ---------------- fused forward kernel ----------------
def _make_fused_kernel(S, B):
    """Build the fused forward kernel for static (S, B)."""
    H = HIDDEN_SIZE
    G = 8 * H                                   # 4 gates x 2 directions = 256 columns
    # gate/dir column layout (H wide each): [i_f, i_b, f_f, f_b, g_f, g_b, o_f, o_b]
    # column j belongs to the forward direction iff (j // H) is even.

    def kernel(xp_ref, convw_ref, convb_ref,
               wih0_ref, whh0_ref, b0_ref,
               wih1_ref, whh1_ref, b1_ref,
               linw_ref, linb_ref,
               out_ref, hist_ref):
        # ---- direction mask, built in-kernel (no captured constants) ---------
        # H is a power of two, so (j // H) % 2 == 0  <=>  (j & H) == 0.
        col = lax.broadcasted_iota(jnp.int32, (B, G), 1)
        fwd_mask = (col & H) == 0                                        # (B, 256)

        # ---- Conv1d(k=3, padding=1) + ReLU ---------------------------------
        # xp_ref: ((S+2)*B, E) f32, time-major & seq-zero-padded; row index = t*B + b.
        x0 = xp_ref[0:S * B, :].astype(jnp.bfloat16)                     # (S*B, E)
        acc = jnp.dot(x0, convw_ref[0], preferred_element_type=jnp.float32)
        for k in range(1, KERNEL_SIZE):          # 3 full-(S*B) matmuls, no batch loop
            xk = xp_ref[k * B:(k + S) * B, :].astype(jnp.bfloat16)       # (S*B, E)
            acc = acc + jnp.dot(xk, convw_ref[k],
                                preferred_element_type=jnp.float32)
        conv = jnp.maximum(acc + convb_ref[...], 0.0)                    # (S*B, 256)

        # ---- one bidirectional LSTM layer (both directions in one loop) ----
        def bilstm_layer(x_flat_bf16, wih_ref, whh_ref, b_ref):
            # hoisted input projection: all timesteps, all gates, both directions
            xproj = jnp.dot(x_flat_bf16, wih_ref[...],
                            preferred_element_type=jnp.float32) + b_ref[...]
            h = jnp.zeros((B, 2 * H), jnp.float32)      # packed [h_fwd | h_bwd], f32
            c = jnp.zeros((B, 2 * H), jnp.float32)
            # statically unrolled recurrence: fwd consumes timestep t, bwd S-1-t
            for t in range(S):
                xf = xproj[t * B:(t + 1) * B, :]
                xb = xproj[(S - 1 - t) * B:(S - t) * B, :]
                gx = jnp.where(fwd_mask, xf, xb)                         # (B, 256)
                gh = jnp.dot(h.astype(jnp.bfloat16), whh_ref[...],
                             preferred_element_type=jnp.float32)         # (B, 256)
                g = gx + gh
                i_g = jax.nn.sigmoid(g[:, 0:2 * H])
                f_g = jax.nn.sigmoid(g[:, 2 * H:4 * H])
                g_g = jnp.tanh(g[:, 4 * H:6 * H])
                o_g = jax.nn.sigmoid(g[:, 6 * H:8 * H])
                c = f_g * c + i_g * g_g
                h = o_g * jnp.tanh(c)
                # time-aligned layer output: fwd half at time t, bwd half at S-1-t
                hist_ref[t * B:(t + 1) * B, 0:H] = h[:, 0:H]
                hist_ref[(S - 1 - t) * B:(S - t) * B, H:2 * H] = h[:, H:2 * H]
            return hist_ref[...].astype(jnp.bfloat16)                    # (S*B, 2H)

        x1 = bilstm_layer(conv.astype(jnp.bfloat16), wih0_ref, whh0_ref, b0_ref)
        x2 = bilstm_layer(x1, wih1_ref, whh1_ref, b1_ref)

        # ---- final Linear, lane-dense (padded to OUT_PAD columns) -----------
        out_ref[...] = jnp.dot(x2, linw_ref[...],
                               preferred_element_type=jnp.float32) + linb_ref[...]

    return kernel


# ---------------- weight packing (host/XLA-side, once per call) ----------------
def _pack_bilstm_layer(p_fwd, p_bwd):
    """Pack one bidirectional layer into fused-gate, MXU-friendly weights.

    Column layout (H wide each): [i_f, i_b, f_f, f_b, g_f, g_b, o_f, o_b].
    Whh is block-diagonal over the packed state [h_fwd | h_bwd].
    """
    H = HIDDEN_SIZE
    (wih_f, whh_f, b_f), (wih_b, whh_b, b_b) = p_fwd, p_bwd
    wih_cols, b_cols = [], []
    whh = jnp.zeros((2 * H, 8 * H), jnp.float32)
    for gate in range(4):                               # gate order (i, f, g, o)
        wih_cols += [wih_f[gate], wih_b[gate]]          # each (d_in, H)
        b_cols += [b_f[gate], b_b[gate]]                # each (1, H)
        whh = whh.at[0:H, (2 * gate) * H:(2 * gate + 1) * H].set(whh_f[gate])
        whh = whh.at[H:2 * H, (2 * gate + 1) * H:(2 * gate + 2) * H].set(whh_b[gate])
    wih = jnp.concatenate(wih_cols, axis=1)             # (d_in, 8H)
    b = jnp.concatenate(b_cols, axis=1)                 # (1, 8H) = b_ih + b_hh folded
    return wih.astype(jnp.bfloat16), whh.astype(jnp.bfloat16), b


# ---------------- parameter init (deterministic, synthetic) ----------------
def init_params(key, vocab_size):
    ks = iter(jax.random.split(key, 64))

    def rnd(shape, scale=0.1):
        return (scale * jax.random.normal(next(ks), shape)).astype(jnp.float32)

    params = {}
    params["emb"] = rnd((vocab_size, EMBEDDING_DIM), 1.0)
    params["conv_w"] = rnd((KERNEL_SIZE, EMBEDDING_DIM, CONV_CHANNELS))
    params["conv_b"] = rnd((1, CONV_CHANNELS))
    lstm = []
    d_in = CONV_CHANNELS
    for _layer in range(NUM_LAYERS):
        dirs = []
        for _d in range(2):  # forward, backward
            wih = rnd((4, d_in, HIDDEN_SIZE))           # gate order (i, f, g, o)
            whh = rnd((4, HIDDEN_SIZE, HIDDEN_SIZE))
            b = rnd((4, 1, HIDDEN_SIZE))                # b_ih + b_hh folded together
            dirs.append((wih, whh, b))
        lstm.append(tuple(dirs))
        d_in = 2 * HIDDEN_SIZE
    params["lstm"] = lstm
    params["lin_w"] = rnd((2 * HIDDEN_SIZE, LABELS_SIZE))
    params["lin_b"] = rnd((1, LABELS_SIZE))
    return params


# ---------------- full forward (single fused Pallas kernel) ----------------
def cnn_forward(params, sentences):
    # sentences: (B, S) int32
    B, S = sentences.shape
    H = HIDDEN_SIZE

    # embedding gather (glue; no Pallas gather needed at this size)
    emb = jnp.take(params["emb"], sentences, axis=0)                 # (B, S, E)
    # time-major, seq-padded for the k=3/pad=1 conv, flattened to 2D so the kernel
    # needs no in-kernel reshapes: row t*B + b = x_padded[t, b, :]
    xp = jnp.pad(jnp.transpose(emb, (1, 0, 2)), ((1, 1), (0, 0), (0, 0)))
    xp = xp.reshape((S + 2) * B, EMBEDDING_DIM)

    convw = params["conv_w"].astype(jnp.bfloat16)                    # (K, E, 256)
    convb = params["conv_b"]                                         # (1, 256) f32
    wih0, whh0, b0 = _pack_bilstm_layer(*params["lstm"][0])
    wih1, whh1, b1 = _pack_bilstm_layer(*params["lstm"][1])
    linw = jnp.pad(params["lin_w"],
                   ((0, 0), (0, OUT_PAD - LABELS_SIZE))).astype(jnp.bfloat16)
    linb = jnp.pad(params["lin_b"], ((0, 0), (0, OUT_PAD - LABELS_SIZE)))

    out = pl.pallas_call(
        _make_fused_kernel(S, B),
        out_shape=jax.ShapeDtypeStruct((S * B, OUT_PAD), jnp.float32),
        in_specs=[_VMEM] * 11,
        out_specs=_VMEM,
        scratch_shapes=[pltpu.VMEM((S * B, 2 * H), jnp.float32)],    # per-layer output
    )(xp, convw, convb, wih0, whh0, b0, wih1, whh1, b1, linw, linb)

    out = out.reshape(S, B, OUT_PAD)[:, :, :LABELS_SIZE]             # drop lane pad
    return jnp.transpose(out, (1, 0, 2))                             # (B, S, classes)


# ---------------- pure-JAX f32 reference for correctness ----------------
def _ref_forward(params, sentences):
    hi = lax.Precision.HIGHEST
    emb = jnp.take(params["emb"], sentences, axis=0)
    S = emb.shape[1]
    xp = jnp.pad(emb, ((0, 0), (1, 1), (0, 0)))
    conv = sum(jnp.einsum("bse,eo->bso", xp[:, k:k + S, :], params["conv_w"][k],
                          precision=hi) for k in range(KERNEL_SIZE))
    conv = jnp.maximum(conv + params["conv_b"][0], 0.0)

    def lstm_dir(x, wih, whh, b):
        B, H = x.shape[0], HIDDEN_SIZE

        def step(carry, x_t):
            h, c = carry
            gi = jax.nn.sigmoid(x_t @ wih[0] + h @ whh[0] + b[0, 0])
            gf = jax.nn.sigmoid(x_t @ wih[1] + h @ whh[1] + b[1, 0])
            gg = jnp.tanh(x_t @ wih[2] + h @ whh[2] + b[2, 0])
            go = jax.nn.sigmoid(x_t @ wih[3] + h @ whh[3] + b[3, 0])
            c = gf * c + gi * gg
            h = go * jnp.tanh(c)
            return (h, c), h

        _, hs = lax.scan(step, (jnp.zeros((B, H)), jnp.zeros((B, H))),
                         jnp.transpose(x, (1, 0, 2)))
        return jnp.transpose(hs, (1, 0, 2))

    h = conv
    for (pf, pb) in params["lstm"]:
        hf = lstm_dir(h, *pf)
        hb = lstm_dir(h[:, ::-1], *pb)[:, ::-1]
        h = jnp.concatenate([hf, hb], axis=-1)
    return jnp.einsum("bsf,fc->bsc", h, params["lin_w"], precision=hi) + params["lin_b"][0]


if __name__ == "__main__":
    key = jax.random.PRNGKey(0)
    kp, kx = jax.random.split(key)
    VOCAB = 50
    B, S = 2, 8
    params = init_params(kp, VOCAB)
    sentences = jax.random.randint(kx, (B, S), 0, VOCAB, dtype=jnp.int32)

    out = jax.block_until_ready(cnn_forward(params, sentences))
    ref = jax.block_until_ready(_ref_forward(params, sentences))

    assert out.shape == (B, S, LABELS_SIZE)
    # bf16 MXU inputs (f32 accumulation, f32 recurrent state) vs a pure-f32
    # HIGHEST-precision reference -> relaxed tolerance.
    np.testing.assert_allclose(np.asarray(out), np.asarray(ref), rtol=2e-2, atol=2e-2)
    print("KERNEL_OK")
</pallas_src>

<mosaic_0001>
module attributes {stable_mosaic.version = 11 : i64} {
  func.func @kernel(%arg0: memref<20x32xf32, #tpu.memory_space<vmem>>, %arg1: memref<3x32x256xbf16, #tpu.memory_space<vmem>>, %arg2: memref<1x256xf32, #tpu.memory_space<vmem>>, %arg3: memref<256x256xbf16, #tpu.memory_space<vmem>>, %arg4: memref<64x256xbf16, #tpu.memory_space<vmem>>, %arg5: memref<1x256xf32, #tpu.memory_space<vmem>>, %arg6: memref<64x256xbf16, #tpu.memory_space<vmem>>, %arg7: memref<64x256xbf16, #tpu.memory_space<vmem>>, %arg8: memref<1x256xf32, #tpu.memory_space<vmem>>, %arg9: memref<64x128xbf16, #tpu.memory_space<vmem>>, %arg10: memref<1x128xf32, #tpu.memory_space<vmem>>, %arg11: memref<16x128xf32, #tpu.memory_space<vmem>>, %arg12: memref<16x64xf32, #tpu.memory_space<vmem>>) attributes {dimension_semantics = [], scalar_prefetch = 0 : i64, scratch_operands = 1 : i64, tpu.core_type = #tpu.core_type<tc>} {
    %0 = tpu.iota {dimensions = array<i32: 1>} : vector<2x256xi32>
    %c32_i32 = arith.constant 32 : i32
    %1 = vector.broadcast %c32_i32 : i32 to vector<2x256xi32>
    %2 = arith.andi %0, %1 : vector<2x256xi32>
    %c0_i32 = arith.constant 0 : i32
    %3 = vector.broadcast %c0_i32 : i32 to vector<2x256xi32>
    %4 = arith.cmpi eq, %2, %3 : vector<2x256xi32>
    %c0 = arith.constant 0 : index
    %c0_0 = arith.constant 0 : index
    %5 = vector.load %arg0[%c0, %c0_0] : memref<20x32xf32, #tpu.memory_space<vmem>>, vector<16x32xf32>
    %6 = arith.truncf %5 : vector<16x32xf32> to vector<16x32xbf16>
    %c0_1 = arith.constant 0 : index
    %c0_2 = arith.constant 0 : index
    %c0_3 = arith.constant 0 : index
    %7 = vector.load %arg1[%c0_1, %c0_2, %c0_3] : memref<3x32x256xbf16, #tpu.memory_space<vmem>>, vector<1x32x256xbf16>
    %8 = vector.shape_cast %7 : vector<1x32x256xbf16> to vector<32x256xbf16>
    %cst = arith.constant dense<0.000000e+00> : vector<16x256xf32>
    %9 = tpu.matmul %6, %8, %cst {dimension_numbers = #tpu.dot_dimension_numbers<[1], [0], [0], [1], [0, 0, 1, 1], [], []>} : vector<16x32xbf16>, vector<32x256xbf16>, vector<16x256xf32> -> vector<16x256xf32>
    %c2 = arith.constant 2 : index
    %c0_4 = arith.constant 0 : index
    %10 = vector.load %arg0[%c2, %c0_4] : memref<20x32xf32, #tpu.memory_space<vmem>>, vector<16x32xf32>
    %11 = arith.truncf %10 : vector<16x32xf32> to vector<16x32xbf16>
    %c1 = arith.constant 1 : index
    %c0_5 = arith.constant 0 : index
    %c0_6 = arith.constant 0 : index
    %12 = vector.load %arg1[%c1, %c0_5, %c0_6] : memref<3x32x256xbf16, #tpu.memory_space<vmem>>, vector<1x32x256xbf16>
    %13 = vector.shape_cast %12 : vector<1x32x256xbf16> to vector<32x256xbf16>
    %cst_7 = arith.constant dense<0.000000e+00> : vector<16x256xf32>
    %14 = tpu.matmul %11, %13, %cst_7 {dimension_numbers = #tpu.dot_dimension_numbers<[1], [0], [0], [1], [0, 0, 1, 1], [], []>} : vector<16x32xbf16>, vector<32x256xbf16>, vector<16x256xf32> -> vector<16x256xf32>
    %15 = arith.addf %9, %14 : vector<16x256xf32>
    %c4 = arith.constant 4 : index
    %c0_8 = arith.constant 0 : index
    %16 = vector.load %arg0[%c4, %c0_8] : memref<20x32xf32, #tpu.memory_space<vmem>>, vector<16x32xf32>
    %17 = arith.truncf %16 : vector<16x32xf32> to vector<16x32xbf16>
    %c2_9 = arith.constant 2 : index
    %c0_10 = arith.constant 0 : index
    %c0_11 = arith.constant 0 : index
    %18 = vector.load %arg1[%c2_9, %c0_10, %c0_11] : memref<3x32x256xbf16, #tpu.memory_space<vmem>>, vector<1x32x256xbf16>
    %19 = vector.shape_cast %18 : vector<1x32x256xbf16> to vector<32x256xbf16>
    %cst_12 = arith.constant dense<0.000000e+00> : vector<16x256xf32>
    %20 = tpu.matmul %17, %19, %cst_12 {dimension_numbers = #tpu.dot_dimension_numbers<[1], [0], [0], [1], [0, 0, 1, 1], [], []>} : vector<16x32xbf16>, vector<32x256xbf16>, vector<16x256xf32> -> vector<16x256xf32>
    %21 = arith.addf %15, %20 : vector<16x256xf32>
    %c0_13 = arith.constant 0 : index
    %c0_14 = arith.constant 0 : index
    %22 = vector.load %arg2[%c0_13, %c0_14] : memref<1x256xf32, #tpu.memory_space<vmem>>, vector<1x256xf32>
    %23 = vector.broadcast %22 : vector<1x256xf32> to vector<16x256xf32>
    %24 = arith.addf %21, %23 : vector<16x256xf32>
    %cst_15 = arith.constant 0.000000e+00 : f32
    %25 = vector.broadcast %cst_15 : f32 to vector<16x256xf32>
    %26 = arith.maximumf %24, %25 : vector<16x256xf32>
    %27 = arith.truncf %26 : vector<16x256xf32> to vector<16x256xbf16>
    %c0_16 = arith.constant 0 : index
    %c0_17 = arith.constant 0 : index
    %28 = vector.load %arg3[%c0_16, %c0_17] : memref<256x256xbf16, #tpu.memory_space<vmem>>, vector<256x256xbf16>
    %cst_18 = arith.constant dense<0.000000e+00> : vector<16x256xf32>
    %29 = tpu.matmul %27, %28, %cst_18 {dimension_numbers = #tpu.dot_dimension_numbers<[1], [0], [0], [1], [0, 0, 1, 1], [], []>} : vector<16x256xbf16>, vector<256x256xbf16>, vector<16x256xf32> -> vector<16x256xf32>
    %c0_19 = arith.constant 0 : index
    %c0_20 = arith.constant 0 : index
    %30 = vector.load %arg5[%c0_19, %c0_20] : memref<1x256xf32, #tpu.memory_space<vmem>>, vector<1x256xf32>
    %31 = vector.broadcast %30 : vector<1x256xf32> to vector<16x256xf32>
    %32 = arith.addf %29, %31 : vector<16x256xf32>
    %cst_21 = arith.constant 0.000000e+00 : f32
    %33 = vector.broadcast %cst_21 : f32 to vector<2x64xf32>
    %cst_22 = arith.constant 0.000000e+00 : f32
    %34 = vector.broadcast %cst_22 : f32 to vector<2x64xf32>
    %35 = vector.extract_strided_slice %32 {offsets = [0, 0], sizes = [2, 256], strides = [1, 1]} : vector<16x256xf32> to vector<2x256xf32>
    %36 = vector.extract_strided_slice %32 {offsets = [14, 0], sizes = [2, 256], strides = [1, 1]} : vector<16x256xf32> to vector<2x256xf32>
    %37 = arith.select %4, %35, %36 : vector<2x256xi1>, vector<2x256xf32>
    %38 = arith.truncf %33 : vector<2x64xf32> to vector<2x64xbf16>
    %c0_23 = arith.constant 0 : index
    %c0_24 = arith.constant 0 : index
    %39 = vector.load %arg4[%c0_23, %c0_24] : memref<64x256xbf16, #tpu.memory_space<vmem>>, vector<64x256xbf16>
    %cst_25 = arith.constant dense<0.000000e+00> : vector<2x256xf32>
    %40 = tpu.matmul %38, %39, %cst_25 {dimension_numbers = #tpu.dot_dimension_numbers<[1], [0], [0], [1], [0, 0, 1, 1], [], []>} : vector<2x64xbf16>, vector<64x256xbf16>, vector<2x256xf32> -> vector<2x256xf32>
    %41 = arith.addf %37, %40 : vector<2x256xf32>
    %42 = vector.extract_strided_slice %41 {offsets = [0, 0], sizes = [2, 64], strides = [1, 1]} : vector<2x256xf32> to vector<2x64xf32>
    %43 = arith.negf %42 : vector<2x64xf32>
    %44 = math.exp %43 : vector<2x64xf32>
    %cst_26 = arith.constant 1.000000e+00 : f32
    %45 = vector.broadcast %cst_26 : f32 to vector<2x64xf32>
    %46 = arith.addf %45, %44 : vector<2x64xf32>
    %47 = arith.divf %45, %46 : vector<2x64xf32>
    %48 = vector.extract_strided_slice %41 {offsets = [0, 64], sizes = [2, 64], strides = [1, 1]} : vector<2x256xf32> to vector<2x64xf32>
    %49 = arith.negf %48 : vector<2x64xf32>
    %50 = math.exp %49 : vector<2x64xf32>
    %cst_27 = arith.constant 1.000000e+00 : f32
    %51 = vector.broadcast %cst_27 : f32 to vector<2x64xf32>
    %52 = arith.addf %51, %50 : vector<2x64xf32>
    %53 = arith.divf %51, %52 : vector<2x64xf32>
    %54 = vector.extract_strided_slice %41 {offsets = [0, 128], sizes = [2, 64], strides = [1, 1]} : vector<2x256xf32> to vector<2x64xf32>
    %55 = math.tanh %54 : vector<2x64xf32>
    %56 = vector.extract_strided_slice %41 {offsets = [0, 192], sizes = [2, 64], strides = [1, 1]} : vector<2x256xf32> to vector<2x64xf32>
    %57 = arith.negf %56 : vector<2x64xf32>
    %58 = math.exp %57 : vector<2x64xf32>
    %cst_28 = arith.constant 1.000000e+00 : f32
    %59 = vector.broadcast %cst_28 : f32 to vector<2x64xf32>
    %60 = arith.addf %59, %58 : vector<2x64xf32>
    %61 = arith.divf %59, %60 : vector<2x64xf32>
    %62 = arith.mulf %53, %34 : vector<2x64xf32>
    %63 = arith.mulf %47, %55 : vector<2x64xf32>
    %64 = arith.addf %62, %63 : vector<2x64xf32>
    %65 = math.tanh %64 : vector<2x64xf32>
    %66 = arith.mulf %61, %65 : vector<2x64xf32>
    %67 = vector.extract_strided_slice %66 {offsets = [0, 0], sizes = [2, 32], strides = [1, 1]} : vector<2x64xf32> to vector<2x32xf32>
    %c0_29 = arith.constant 0 : index
    %c0_30 = arith.constant 0 : index
    %68 = vector.load %arg12[%c0_29, %c0_30] : memref<16x64xf32, #tpu.memory_space<vmem>>, vector<2x32xf32>
    tpu.vector_store %arg12[%c0_29, %c0_30], %67 {strides = array<i32>} : memref<16x64xf32, #tpu.memory_space<vmem>>, vector<2x32xf32>,
    %69 = vector.extract_strided_slice %66 {offsets = [0, 32], sizes = [2, 32], strides = [1, 1]} : vector<2x64xf32> to vector<2x32xf32>
    %c14 = arith.constant 14 : index
    %c32 = arith.constant 32 : index
    %70 = vector.load %arg12[%c14, %c32] : memref<16x64xf32, #tpu.memory_space<vmem>>, vector<2x32xf32>
    tpu.vector_store %arg12[%c14, %c32], %69 {strides = array<i32>} : memref<16x64xf32, #tpu.memory_space<vmem>>, vector<2x32xf32>,
    %71 = vector.extract_strided_slice %32 {offsets = [2, 0], sizes = [2, 256], strides = [1, 1]} : vector<16x256xf32> to vector<2x256xf32>
    %72 = vector.extract_strided_slice %32 {offsets = [12, 0], sizes = [2, 256], strides = [1, 1]} : vector<16x256xf32> to vector<2x256xf32>
    %73 = arith.select %4, %71, %72 : vector<2x256xi1>, vector<2x256xf32>
    %74 = arith.truncf %66 : vector<2x64xf32> to vector<2x64xbf16>
    %c0_31 = arith.constant 0 : index
    %c0_32 = arith.constant 0 : index
    %75 = vector.load %arg4[%c0_31, %c0_32] : memref<64x256xbf16, #tpu.memory_space<vmem>>, vector<64x256xbf16>
    %cst_33 = arith.constant dense<0.000000e+00> : vector<2x256xf32>
    %76 = tpu.matmul %74, %75, %cst_33 {dimension_numbers = #tpu.dot_dimension_numbers<[1], [0], [0], [1], [0, 0, 1, 1], [], []>} : vector<2x64xbf16>, vector<64x256xbf16>, vector<2x256xf32> -> vector<2x256xf32>
    %77 = arith.addf %73, %76 : vector<2x256xf32>
    %78 = vector.extract_strided_slice %77 {offsets = [0, 0], sizes = [2, 64], strides = [1, 1]} : vector<2x256xf32> to vector<2x64xf32>
    %79 = arith.negf %78 : vector<2x64xf32>
    %80 = math.exp %79 : vector<2x64xf32>
    %cst_34 = arith.constant 1.000000e+00 : f32
    %81 = vector.broadcast %cst_34 : f32 to vector<2x64xf32>
    %82 = arith.addf %81, %80 : vector<2x64xf32>
    %83 = arith.divf %81, %82 : vector<2x64xf32>
    %84 = vector.extract_strided_slice %77 {offsets = [0, 64], sizes = [2, 64], strides = [1, 1]} : vector<2x256xf32> to vector<2x64xf32>
    %85 = arith.negf %84 : vector<2x64xf32>
    %86 = math.exp %85 : vector<2x64xf32>
    %cst_35 = arith.constant 1.000000e+00 : f32
    %87 = vector.broadcast %cst_35 : f32 to vector<2x64xf32>
    %88 = arith.addf %87, %86 : vector<2x64xf32>
    %89 = arith.divf %87, %88 : vector<2x64xf32>
    %90 = vector.extract_strided_slice %77 {offsets = [0, 128], sizes = [2, 64], strides = [1, 1]} : vector<2x256xf32> to vector<2x64xf32>
    %91 = math.tanh %90 : vector<2x64xf32>
    %92 = vector.extract_strided_slice %77 {offsets = [0, 192], sizes = [2, 64], strides = [1, 1]} : vector<2x256xf32> to vector<2x64xf32>
    %93 = arith.negf %92 : vector<2x64xf32>
    %94 = math.exp %93 : vector<2x64xf32>
    %cst_36 = arith.constant 1.000000e+00 : f32
    %95 = vector.broadcast %cst_36 : f32 to vector<2x64xf32>
    %96 = arith.addf %95, %94 : vector<2x64xf32>
    %97 = arith.divf %95, %96 : vector<2x64xf32>
    %98 = arith.mulf %89, %64 : vector<2x64xf32>
    %99 = arith.mulf %83, %91 : vector<2x64xf32>
    %100 = arith.addf %98, %99 : vector<2x64xf32>
    %101 = math.tanh %100 : vector<2x64xf32>
    %102 = arith.mulf %97, %101 : vector<2x64xf32>
    %103 = vector.extract_strided_slice %102 {offsets = [0, 0], sizes = [2, 32], strides = [1, 1]} : vector<2x64xf32> to vector<2x32xf32>
    %c2_37 = arith.constant 2 : index
    %c0_38 = arith.constant 0 : index
    %104 = vector.load %arg12[%c2_37, %c0_38] : memref<16x64xf32, #tpu.memory_space<vmem>>, vector<2x32xf32>
    tpu.vector_store %arg12[%c2_37, %c0_38], %103 {strides = array<i32>} : memref<16x64xf32, #tpu.memory_space<vmem>>, vector<2x32xf32>,
    %105 = vector.extract_strided_slice %102 {offsets = [0, 32], sizes = [2, 32], strides = [1, 1]} : vector<2x64xf32> to vector<2x32xf32>
    %c12 = arith.constant 12 : index
    %c32_39 = arith.constant 32 : index
    %106 = vector.load %arg12[%c12, %c32_39] : memref<16x64xf32, #tpu.memory_space<vmem>>, vector<2x32xf32>
    tpu.vector_store %arg12[%c12, %c32_39], %105 {strides = array<i32>} : memref<16x64xf32, #tpu.memory_space<vmem>>, vector<2x32xf32>,
    %107 = vector.extract_strided_slice %32 {offsets = [4, 0], sizes = [2, 256], strides = [1, 1]} : vector<16x256xf32> to vector<2x256xf32>
    %108 = vector.extract_strided_slice %32 {offsets = [10, 0], sizes = [2, 256], strides = [1, 1]} : vector<16x256xf32> to vector<2x256xf32>
    %109 = arith.select %4, %107, %108 : vector<2x256xi1>, vector<2x256xf32>
    %110 = arith.truncf %102 : vector<2x64xf32> to vector<2x64xbf16>
    %c0_40 = arith.constant 0 : index
    %c0_41 = arith.constant 0 : index
    %111 = vector.load %arg4[%c0_40, %c0_41] : memref<64x256xbf16, #tpu.memory_space<vmem>>, vector<64x256xbf16>
    %cst_42 = arith.constant dense<0.000000e+00> : vector<2x256xf32>
    %112 = tpu.matmul %110, %111, %cst_42 {dimension_numbers = #tpu.dot_dimension_numbers<[1], [0], [0], [1], [0, 0, 1, 1], [], []>} : vector<2x64xbf16>, vector<64x256xbf16>, vector<2x256xf32> -> vector<2x256xf32>
    %113 = arith.addf %109, %112 : vector<2x256xf32>
    %114 = vector.extract_strided_slice %113 {offsets = [0, 0], sizes = [2, 64], strides = [1, 1]} : vector<2x256xf32> to vector<2x64xf32>
    %115 = arith.negf %114 : vector<2x64xf32>
    %116 = math.exp %115 : vector<2x64xf32>
    %cst_43 = arith.constant 1.000000e+00 : f32
    %117 = vector.broadcast %cst_43 : f32 to vector<2x64xf32>
    %118 = arith.addf %117, %116 : vector<2x64xf32>
    %119 = arith.divf %117, %118 : vector<2x64xf32>
    %120 = vector.extract_strided_slice %113 {offsets = [0, 64], sizes = [2, 64], strides = [1, 1]} : vector<2x256xf32> to vector<2x64xf32>
    %121 = arith.negf %120 : vector<2x64xf32>
    %122 = math.exp %121 : vector<2x64xf32>
    %cst_44 = arith.constant 1.000000e+00 : f32
    %123 = vector.broadcast %cst_44 : f32 to vector<2x64xf32>
    %124 = arith.addf %123, %122 : vector<2x64xf32>
    %125 = arith.divf %123, %124 : vector<2x64xf32>
    %126 = vector.extract_strided_slice %113 {offsets = [0, 128], sizes = [2, 64], strides = [1, 1]} : vector<2x256xf32> to vector<2x64xf32>
    %127 = math.tanh %126 : vector<2x64xf32>
    %128 = vector.extract_strided_slice %113 {offsets = [0, 192], sizes = [2, 64], strides = [1, 1]} : vector<2x256xf32> to vector<2x64xf32>
    %129 = arith.negf %128 : vector<2x64xf32>
    %130 = math.exp %129 : vector<2x64xf32>
    %cst_45 = arith.constant 1.000000e+00 : f32
    %131 = vector.broadcast %cst_45 : f32 to vector<2x64xf32>
    %132 = arith.addf %131, %130 : vector<2x64xf32>
    %133 = arith.divf %131, %132 : vector<2x64xf32>
    %134 = arith.mulf %125, %100 : vector<2x64xf32>
    %135 = arith.mulf %119, %127 : vector<2x64xf32>
    %136 = arith.addf %134, %135 : vector<2x64xf32>
    %137 = math.tanh %136 : vector<2x64xf32>
    %138 = arith.mulf %133, %137 : vector<2x64xf32>
    %139 = vector.extract_strided_slice %138 {offsets = [0, 0], sizes = [2, 32], strides = [1, 1]} : vector<2x64xf32> to vector<2x32xf32>
    %c4_46 = arith.constant 4 : index
    %c0_47 = arith.constant 0 : index
    %140 = vector.load %arg12[%c4_46, %c0_47] : memref<16x64xf32, #tpu.memory_space<vmem>>, vector<2x32xf32>
    tpu.vector_store %arg12[%c4_46, %c0_47], %139 {strides = array<i32>} : memref<16x64xf32, #tpu.memory_space<vmem>>, vector<2x32xf32>,
    %141 = vector.extract_strided_slice %138 {offsets = [0, 32], sizes = [2, 32], strides = [1, 1]} : vector<2x64xf32> to vector<2x32xf32>
    %c10 = arith.constant 10 : index
    %c32_48 = arith.constant 32 : index
    %142 = vector.load %arg12[%c10, %c32_48] : memref<16x64xf32, #tpu.memory_space<vmem>>, vector<2x32xf32>
    tpu.vector_store %arg12[%c10, %c32_48], %141 {strides = array<i32>} : memref<16x64xf32, #tpu.memory_space<vmem>>, vector<2x32xf32>,
    %143 = vector.extract_strided_slice %32 {offsets = [6, 0], sizes = [2, 256], strides = [1, 1]} : vector<16x256xf32> to vector<2x256xf32>
    %144 = vector.extract_strided_slice %32 {offsets = [8, 0], sizes = [2, 256], strides = [1, 1]} : vector<16x256xf32> to vector<2x256xf32>
    %145 = arith.select %4, %143, %144 : vector<2x256xi1>, vector<2x256xf32>
    %146 = arith.truncf %138 : vector<2x64xf32> to vector<2x64xbf16>
    %c0_49 = arith.constant 0 : index
    %c0_50 = arith.constant 0 : index
    %147 = vector.load %arg4[%c0_49, %c0_50] : memref<64x256xbf16, #tpu.memory_space<vmem>>, vector<64x256xbf16>
    %cst_51 = arith.constant dense<0.000000e+00> : vector<2x256xf32>
    %148 = tpu.matmul %146, %147, %cst_51 {dimension_numbers = #tpu.dot_dimension_numbers<[1], [0], [0], [1], [0, 0, 1, 1], [], []>} : vector<2x64xbf16>, vector<64x256xbf16>, vector<2x256xf32> -> vector<2x256xf32>
    %149 = arith.addf %145, %148 : vector<2x256xf32>
    %150 = vector.extract_strided_slice %149 {offsets = [0, 0], sizes = [2, 64], strides = [1, 1]} : vector<2x256xf32> to vector<2x64xf32>
    %151 = arith.negf %150 : vector<2x64xf32>
    %152 = math.exp %151 : vector<2x64xf32>
    %cst_52 = arith.constant 1.000000e+00 : f32
    %153 = vector.broadcast %cst_52 : f32 to vector<2x64xf32>
    %154 = arith.addf %153, %152 : vector<2x64xf32>
    %155 = arith.divf %153, %154 : vector<2x64xf32>
    %156 = vector.extract_strided_slice %149 {offsets = [0, 64], sizes = [2, 64], strides = [1, 1]} : vector<2x256xf32> to vector<2x64xf32>
    %157 = arith.negf %156 : vector<2x64xf32>
    %158 = math.exp %157 : vector<2x64xf32>
    %cst_53 = arith.constant 1.000000e+00 : f32
    %159 = vector.broadcast %cst_53 : f32 to vector<2x64xf32>
    %160 = arith.addf %159, %158 : vector<2x64xf32>
    %161 = arith.divf %159, %160 : vector<2x64xf32>
    %162 = vector.extract_strided_slice %149 {offsets = [0, 128], sizes = [2, 64], strides = [1, 1]} : vector<2x256xf32> to vector<2x64xf32>
    %163 = math.tanh %162 : vector<2x64xf32>
    %164 = vector.extract_strided_slice %149 {offsets = [0, 192], sizes = [2, 64], strides = [1, 1]} : vector<2x256xf32> to vector<2x64xf32>
    %165 = arith.negf %164 : vector<2x64xf32>
    %166 = math.exp %165 : vector<2x64xf32>
    %cst_54 = arith.constant 1.000000e+00 : f32
    %167 = vector.broadcast %cst_54 : f32 to vector<2x64xf32>
    %168 = arith.addf %167, %166 : vector<2x64xf32>
    %169 = arith.divf %167, %168 : vector<2x64xf32>
    %170 = arith.mulf %161, %136 : vector<2x64xf32>
    %171 = arith.mulf %155, %163 : vector<2x64xf32>
    %172 = arith.addf %170, %171 : vector<2x64xf32>
    %173 = math.tanh %172 : vector<2x64xf32>
    %174 = arith.mulf %169, %173 : vector<2x64xf32>
    %175 = vector.extract_strided_slice %174 {offsets = [0, 0], sizes = [2, 32], strides = [1, 1]} : vector<2x64xf32> to vector<2x32xf32>
    %c6 = arith.constant 6 : index
    %c0_55 = arith.constant 0 : index
    %176 = vector.load %arg12[%c6, %c0_55] : memref<16x64xf32, #tpu.memory_space<vmem>>, vector<2x32xf32>
    tpu.vector_store %arg12[%c6, %c0_55], %175 {strides = array<i32>} : memref<16x64xf32, #tpu.memory_space<vmem>>, vector<2x32xf32>,
    %177 = vector.extract_strided_slice %174 {offsets = [0, 32], sizes = [2, 32], strides = [1, 1]} : vector<2x64xf32> to vector<2x32xf32>
    %c8 = arith.constant 8 : index
    %c32_56 = arith.constant 32 : index
    %178 = vector.load %arg12[%c8, %c32_56] : memref<16x64xf32, #tpu.memory_space<vmem>>, vector<2x32xf32>
    tpu.vector_store %arg12[%c8, %c32_56], %177 {strides = array<i32>} : memref<16x64xf32, #tpu.memory_space<vmem>>, vector<2x32xf32>,
    %179 = vector.extract_strided_slice %32 {offsets = [8, 0], sizes = [2, 256], strides = [1, 1]} : vector<16x256xf32> to vector<2x256xf32>
    %180 = vector.extract_strided_slice %32 {offsets = [6, 0], sizes = [2, 256], strides = [1, 1]} : vector<16x256xf32> to vector<2x256xf32>
    %181 = arith.select %4, %179, %180 : vector<2x256xi1>, vector<2x256xf32>
    %182 = arith.truncf %174 : vector<2x64xf32> to vector<2x64xbf16>
    %c0_57 = arith.constant 0 : index
    %c0_58 = arith.constant 0 : index
    %183 = vector.load %arg4[%c0_57, %c0_58] : memref<64x256xbf16, #tpu.memory_space<vmem>>, vector<64x256xbf16>
    %cst_59 = arith.constant dense<0.000000e+00> : vector<2x256xf32>
    %184 = tpu.matmul %182, %183, %cst_59 {dimension_numbers = #tpu.dot_dimension_numbers<[1], [0], [0], [1], [0, 0, 1, 1], [], []>} : vector<2x64xbf16>, vector<64x256xbf16>, vector<2x256xf32> -> vector<2x256xf32>
    %185 = arith.addf %181, %184 : vector<2x256xf32>
    %186 = vector.extract_strided_slice %185 {offsets = [0, 0], sizes = [2, 64], strides = [1, 1]} : vector<2x256xf32> to vector<2x64xf32>
    %187 = arith.negf %186 : vector<2x64xf32>
    %188 = math.exp %187 : vector<2x64xf32>
    %cst_60 = arith.constant 1.000000e+00 : f32
    %189 = vector.broadcast %cst_60 : f32 to vector<2x64xf32>
    %190 = arith.addf %189, %188 : vector<2x64xf32>
    %191 = arith.divf %189, %190 : vector<2x64xf32>
    %192 = vector.extract_strided_slice %185 {offsets = [0, 64], sizes = [2, 64], strides = [1, 1]} : vector<2x256xf32> to vector<2x64xf32>
    %193 = arith.negf %192 : vector<2x64xf32>
    %194 = math.exp %193 : vector<2x64xf32>
    %cst_61 = arith.constant 1.000000e+00 : f32
    %195 = vector.broadcast %cst_61 : f32 to vector<2x64xf32>
    %196 = arith.addf %195, %194 : vector<2x64xf32>
    %197 = arith.divf %195, %196 : vector<2x64xf32>
    %198 = vector.extract_strided_slice %185 {offsets = [0, 128], sizes = [2, 64], strides = [1, 1]} : vector<2x256xf32> to vector<2x64xf32>
    %199 = math.tanh %198 : vector<2x64xf32>
    %200 = vector.extract_strided_slice %185 {offsets = [0, 192], sizes = [2, 64], strides = [1, 1]} : vector<2x256xf32> to vector<2x64xf32>
    %201 = arith.negf %200 : vector<2x64xf32>
    %202 = math.exp %201 : vector<2x64xf32>
    %cst_62 = arith.constant 1.000000e+00 : f32
    %203 = vector.broadcast %cst_62 : f32 to vector<2x64xf32>
    %204 = arith.addf %203, %202 : vector<2x64xf32>
    %205 = arith.divf %203, %204 : vector<2x64xf32>
    %206 = arith.mulf %197, %172 : vector<2x64xf32>
    %207 = arith.mulf %191, %199 : vector<2x64xf32>
    %208 = arith.addf %206, %207 : vector<2x64xf32>
    %209 = math.tanh %208 : vector<2x64xf32>
    %210 = arith.mulf %205, %209 : vector<2x64xf32>
    %211 = vector.extract_strided_slice %210 {offsets = [0, 0], sizes = [2, 32], strides = [1, 1]} : vector<2x64xf32> to vector<2x32xf32>
    %c8_63 = arith.constant 8 : index
    %c0_64 = arith.constant 0 : index
    %212 = vector.load %arg12[%c8_63, %c0_64] : memref<16x64xf32, #tpu.memory_space<vmem>>, vector<2x32xf32>
    tpu.vector_store %arg12[%c8_63, %c0_64], %211 {strides = array<i32>} : memref<16x64xf32, #tpu.memory_space<vmem>>, vector<2x32xf32>,
    %213 = vector.extract_strided_slice %210 {offsets = [0, 32], sizes = [2, 32], strides = [1, 1]} : vector<2x64xf32> to vector<2x32xf32>
    %c6_65 = arith.constant 6 : index
    %c32_66 = arith.constant 32 : index
    %214 = vector.load %arg12[%c6_65, %c32_66] : memref<16x64xf32, #tpu.memory_space<vmem>>, vector<2x32xf32>
    tpu.vector_store %arg12[%c6_65, %c32_66], %213 {strides = array<i32>} : memref<16x64xf32, #tpu.memory_space<vmem>>, vector<2x32xf32>,
    %215 = vector.extract_strided_slice %32 {offsets = [10, 0], sizes = [2, 256], strides = [1, 1]} : vector<16x256xf32> to vector<2x256xf32>
    %216 = vector.extract_strided_slice %32 {offsets = [4, 0], sizes = [2, 256], strides = [1, 1]} : vector<16x256xf32> to vector<2x256xf32>
    %217 = arith.select %4, %215, %216 : vector<2x256xi1>, vector<2x256xf32>
    %218 = arith.truncf %210 : vector<2x64xf32> to vector<2x64xbf16>
    %c0_67 = arith.constant 0 : index
    %c0_68 = arith.constant 0 : index
    %219 = vector.load %arg4[%c0_67, %c0_68] : memref<64x256xbf16, #tpu.memory_space<vmem>>, vector<64x256xbf16>
    %cst_69 = arith.constant dense<0.000000e+00> : vector<2x256xf32>
    %220 = tpu.matmul %218, %219, %cst_69 {dimension_numbers = #tpu.dot_dimension_numbers<[1], [0], [0], [1], [0, 0, 1, 1], [], []>} : vector<2x64xbf16>, vector<64x256xbf16>, vector<2x256xf32> -> vector<2x256xf32>
    %221 = arith.addf %217, %220 : vector<2x256xf32>
    %222 = vector.extract_strided_slice %221 {offsets = [0, 0], sizes = [2, 64], strides = [1, 1]} : vector<2x256xf32> to vector<2x64xf32>
    %223 = arith.negf %222 : vector<2x64xf32>
    %224 = math.exp %223 : vector<2x64xf32>
    %cst_70 = arith.constant 1.000000e+00 : f32
    %225 = vector.broadcast %cst_70 : f32 to vector<2x64xf32>
    %226 = arith.addf %225, %224 : vector<2x64xf32>
    %227 = arith.divf %225, %226 : vector<2x64xf32>
    %228 = vector.extract_strided_slice %221 {offsets = [0, 64], sizes = [2, 64], strides = [1, 1]} : vector<2x256xf32> to vector<2x64xf32>
    %229 = arith.negf %228 : vector<2x64xf32>
    %230 = math.exp %229 : vector<2x64xf32>
    %cst_71 = arith.constant 1.000000e+00 : f32
    %231 = vector.broadcast %cst_71 : f32 to vector<2x64xf32>
    %232 = arith.addf %231, %230 : vector<2x64xf32>
    %233 = arith.divf %231, %232 : vector<2x64xf32>
    %234 = vector.extract_strided_slice %221 {offsets = [0, 128], sizes = [2, 64], strides = [1, 1]} : vector<2x256xf32> to vector<2x64xf32>
    %235 = math.tanh %234 : vector<2x64xf32>
    %236 = vector.extract_strided_slice %221 {offsets = [0, 192], sizes = [2, 64], strides = [1, 1]} : vector<2x256xf32> to vector<2x64xf32>
    %237 = arith.negf %236 : vector<2x64xf32>
    %238 = math.exp %237 : vector<2x64xf32>
    %cst_72 = arith.constant 1.000000e+00 : f32
    %239 = vector.broadcast %cst_72 : f32 to vector<2x64xf32>
    %240 = arith.addf %239, %238 : vector<2x64xf32>
    %241 = arith.divf %239, %240 : vector<2x64xf32>
    %242 = arith.mulf %233, %208 : vector<2x64xf32>
    %243 = arith.mulf %227, %235 : vector<2x64xf32>
    %244 = arith.addf %242, %243 : vector<2x64xf32>
    %245 = math.tanh %244 : vector<2x64xf32>
    %246 = arith.mulf %241, %245 : vector<2x64xf32>
    %247 = vector.extract_strided_slice %246 {offsets = [0, 0], sizes = [2, 32], strides = [1, 1]} : vector<2x64xf32> to vector<2x32xf32>
    %c10_73 = arith.constant 10 : index
    %c0_74 = arith.constant 0 : index
    %248 = vector.load %arg12[%c10_73, %c0_74] : memref<16x64xf32, #tpu.memory_space<vmem>>, vector<2x32xf32>
    tpu.vector_store %arg12[%c10_73, %c0_74], %247 {strides = array<i32>} : memref<16x64xf32, #tpu.memory_space<vmem>>, vector<2x32xf32>,
    %249 = vector.extract_strided_slice %246 {offsets = [0, 32], sizes = [2, 32], strides = [1, 1]} : vector<2x64xf32> to vector<2x32xf32>
    %c4_75 = arith.constant 4 : index
    %c32_76 = arith.constant 32 : index
    %250 = vector.load %arg12[%c4_75, %c32_76] : memref<16x64xf32, #tpu.memory_space<vmem>>, vector<2x32xf32>
    tpu.vector_store %arg12[%c4_75, %c32_76], %249 {strides = array<i32>} : memref<16x64xf32, #tpu.memory_space<vmem>>, vector<2x32xf32>,
    %251 = vector.extract_strided_slice %32 {offsets = [12, 0], sizes = [2, 256], strides = [1, 1]} : vector<16x256xf32> to vector<2x256xf32>
    %252 = vector.extract_strided_slice %32 {offsets = [2, 0], sizes = [2, 256], strides = [1, 1]} : vector<16x256xf32> to vector<2x256xf32>
    %253 = arith.select %4, %251, %252 : vector<2x256xi1>, vector<2x256xf32>
    %254 = arith.truncf %246 : vector<2x64xf32> to vector<2x64xbf16>
    %c0_77 = arith.constant 0 : index
    %c0_78 = arith.constant 0 : index
    %255 = vector.load %arg4[%c0_77, %c0_78] : memref<64x256xbf16, #tpu.memory_space<vmem>>, vector<64x256xbf16>
    %cst_79 = arith.constant dense<0.000000e+00> : vector<2x256xf32>
    %256 = tpu.matmul %254, %255, %cst_79 {dimension_numbers = #tpu.dot_dimension_numbers<[1], [0], [0], [1], [0, 0, 1, 1], [], []>} : vector<2x64xbf16>, vector<64x256xbf16>, vector<2x256xf32> -> vector<2x256xf32>
    %257 = arith.addf %253, %256 : vector<2x256xf32>
    %258 = vector.extract_strided_slice %257 {offsets = [0, 0], sizes = [2, 64], strides = [1, 1]} : vector<2x256xf32> to vector<2x64xf32>
    %259 = arith.negf %258 : vector<2x64xf32>
    %260 = math.exp %259 : vector<2x64xf32>
    %cst_80 = arith.constant 1.000000e+00 : f32
    %261 = vector.broadcast %cst_80 : f32 to vector<2x64xf32>
    %262 = arith.addf %261, %260 : vector<2x64xf32>
    %263 = arith.divf %261, %262 : vector<2x64xf32>
    %264 = vector.extract_strided_slice %257 {offsets = [0, 64], sizes = [2, 64], strides = [1, 1]} : vector<2x256xf32> to vector<2x64xf32>
    %265 = arith.negf %264 : vector<2x64xf32>
    %266 = math.exp %265 : vector<2x64xf32>
    %cst_81 = arith.constant 1.000000e+00 : f32
    %267 = vector.broadcast %cst_81 : f32 to vector<2x64xf32>
    %268 = arith.addf %267, %266 : vector<2x64xf32>
    %269 = arith.divf %267, %268 : vector<2x64xf32>
    %270 = vector.extract_strided_slice %257 {offsets = [0, 128], sizes = [2, 64], strides = [1, 1]} : vector<2x256xf32> to vector<2x64xf32>
    %271 = math.tanh %270 : vector<2x64xf32>
    %272 = vector.extract_strided_slice %257 {offsets = [0, 192], sizes = [2, 64], strides = [1, 1]} : vector<2x256xf32> to vector<2x64xf32>
    %273 = arith.negf %272 : vector<2x64xf32>
    %274 = math.exp %273 : vector<2x64xf32>
    %cst_82 = arith.constant 1.000000e+00 : f32
    %275 = vector.broadcast %cst_82 : f32 to vector<2x64xf32>
    %276 = arith.addf %275, %274 : vector<2x64xf32>
    %277 = arith.divf %275, %276 : vector<2x64xf32>
    %278 = arith.mulf %269, %244 : vector<2x64xf32>
    %279 = arith.mulf %263, %271 : vector<2x64xf32>
    %280 = arith.addf %278, %279 : vector<2x64xf32>
    %281 = math.tanh %280 : vector<2x64xf32>
    %282 = arith.mulf %277, %281 : vector<2x64xf32>
    %283 = vector.extract_strided_slice %282 {offsets = [0, 0], sizes = [2, 32], strides = [1, 1]} : vector<2x64xf32> to vector<2x32xf32>
    %c12_83 = arith.constant 12 : index
    %c0_84 = arith.constant 0 : index
    %284 = vector.load %arg12[%c12_83, %c0_84] : memref<16x64xf32, #tpu.memory_space<vmem>>, vector<2x32xf32>
    tpu.vector_store %arg12[%c12_83, %c0_84], %283 {strides = array<i32>} : memref<16x64xf32, #tpu.memory_space<vmem>>, vector<2x32xf32>,
    %285 = vector.extract_strided_slice %282 {offsets = [0, 32], sizes = [2, 32], strides = [1, 1]} : vector<2x64xf32> to vector<2x32xf32>
    %c2_85 = arith.constant 2 : index
    %c32_86 = arith.constant 32 : index
    %286 = vector.load %arg12[%c2_85, %c32_86] : memref<16x64xf32, #tpu.memory_space<vmem>>, vector<2x32xf32>
    tpu.vector_store %arg12[%c2_85, %c32_86], %285 {strides = array<i32>} : memref<16x64xf32, #tpu.memory_space<vmem>>, vector<2x32xf32>,
    %287 = vector.extract_strided_slice %32 {offsets = [14, 0], sizes = [2, 256], strides = [1, 1]} : vector<16x256xf32> to vector<2x256xf32>
    %288 = vector.extract_strided_slice %32 {offsets = [0, 0], sizes = [2, 256], strides = [1, 1]} : vector<16x256xf32> to vector<2x256xf32>
    %289 = arith.select %4, %287, %288 : vector<2x256xi1>, vector<2x256xf32>
    %290 = arith.truncf %282 : vector<2x64xf32> to vector<2x64xbf16>
    %c0_87 = arith.constant 0 : index
    %c0_88 = arith.constant 0 : index
    %291 = vector.load %arg4[%c0_87, %c0_88] : memref<64x256xbf16, #tpu.memory_space<vmem>>, vector<64x256xbf16>
    %cst_89 = arith.constant dense<0.000000e+00> : vector<2x256xf32>
    %292 = tpu.matmul %290, %291, %cst_89 {dimension_numbers = #tpu.dot_dimension_numbers<[1], [0], [0], [1], [0, 0, 1, 1], [], []>} : vector<2x64xbf16>, vector<64x256xbf16>, vector<2x256xf32> -> vector<2x256xf32>
    %293 = arith.addf %289, %292 : vector<2x256xf32>
    %294 = vector.extract_strided_slice %293 {offsets = [0, 0], sizes = [2, 64], strides = [1, 1]} : vector<2x256xf32> to vector<2x64xf32>
    %295 = arith.negf %294 : vector<2x64xf32>
    %296 = math.exp %295 : vector<2x64xf32>
    %cst_90 = arith.constant 1.000000e+00 : f32
    %297 = vector.broadcast %cst_90 : f32 to vector<2x64xf32>
    %298 = arith.addf %297, %296 : vector<2x64xf32>
    %299 = arith.divf %297, %298 : vector<2x64xf32>
    %300 = vector.extract_strided_slice %293 {offsets = [0, 64], sizes = [2, 64], strides = [1, 1]} : vector<2x256xf32> to vector<2x64xf32>
    %301 = arith.negf %300 : vector<2x64xf32>
    %302 = math.exp %301 : vector<2x64xf32>
    %cst_91 = arith.constant 1.000000e+00 : f32
    %303 = vector.broadcast %cst_91 : f32 to vector<2x64xf32>
    %304 = arith.addf %303, %302 : vector<2x64xf32>
    %305 = arith.divf %303, %304 : vector<2x64xf32>
    %306 = vector.extract_strided_slice %293 {offsets = [0, 128], sizes = [2, 64], strides = [1, 1]} : vector<2x256xf32> to vector<2x64xf32>
    %307 = math.tanh %306 : vector<2x64xf32>
    %308 = vector.extract_strided_slice %293 {offsets = [0, 192], sizes = [2, 64], strides = [1, 1]} : vector<2x256xf32> to vector<2x64xf32>
    %309 = arith.negf %308 : vector<2x64xf32>
    %310 = math.exp %309 : vector<2x64xf32>
    %cst_92 = arith.constant 1.000000e+00 : f32
    %311 = vector.broadcast %cst_92 : f32 to vector<2x64xf32>
    %312 = arith.addf %311, %310 : vector<2x64xf32>
    %313 = arith.divf %311, %312 : vector<2x64xf32>
    %314 = arith.mulf %305, %280 : vector<2x64xf32>
    %315 = arith.mulf %299, %307 : vector<2x64xf32>
    %316 = arith.addf %314, %315 : vector<2x64xf32>
    %317 = math.tanh %316 : vector<2x64xf32>
    %318 = arith.mulf %313, %317 : vector<2x64xf32>
    %319 = vector.extract_strided_slice %318 {offsets = [0, 0], sizes = [2, 32], strides = [1, 1]} : vector<2x64xf32> to vector<2x32xf32>
    %c14_93 = arith.constant 14 : index
    %c0_94 = arith.constant 0 : index
    %320 = vector.load %arg12[%c14_93, %c0_94] : memref<16x64xf32, #tpu.memory_space<vmem>>, vector<2x32xf32>
    tpu.vector_store %arg12[%c14_93, %c0_94], %319 {strides = array<i32>} : memref<16x64xf32, #tpu.memory_space<vmem>>, vector<2x32xf32>,
    %321 = vector.extract_strided_slice %318 {offsets = [0, 32], sizes = [2, 32], strides = [1, 1]} : vector<2x64xf32> to vector<2x32xf32>
    %c0_95 = arith.constant 0 : index
    %c32_96 = arith.constant 32 : index
    %322 = vector.load %arg12[%c0_95, %c32_96] : memref<16x64xf32, #tpu.memory_space<vmem>>, vector<2x32xf32>
    tpu.vector_store %arg12[%c0_95, %c32_96], %321 {strides = array<i32>} : memref<16x64xf32, #tpu.memory_space<vmem>>, vector<2x32xf32>,
    %c0_97 = arith.constant 0 : index
    %c0_98 = arith.constant 0 : index
    %323 = vector.load %arg12[%c0_97, %c0_98] : memref<16x64xf32, #tpu.memory_space<vmem>>, vector<16x64xf32>
    %324 = arith.truncf %323 : vector<16x64xf32> to vector<16x64xbf16>
    %c0_99 = arith.constant 0 : index
    %c0_100 = arith.constant 0 : index
    %325 = vector.load %arg6[%c0_99, %c0_100] : memref<64x256xbf16, #tpu.memory_space<vmem>>, vector<64x256xbf16>
    %cst_101 = arith.constant dense<0.000000e+00> : vector<16x256xf32>
    %326 = tpu.matmul %324, %325, %cst_101 {dimension_numbers = #tpu.dot_dimension_numbers<[1], [0], [0], [1], [0, 0, 1, 1], [], []>} : vector<16x64xbf16>, vector<64x256xbf16>, vector<16x256xf32> -> vector<16x256xf32>
    %c0_102 = arith.constant 0 : index
    %c0_103 = arith.constant 0 : index
    %327 = vector.load %arg8[%c0_102, %c0_103] : memref<1x256xf32, #tpu.memory_space<vmem>>, vector<1x256xf32>
    %328 = vector.broadcast %327 : vector<1x256xf32> to vector<16x256xf32>
    %329 = arith.addf %326, %328 : vector<16x256xf32>
    %cst_104 = arith.constant 0.000000e+00 : f32
    %330 = vector.broadcast %cst_104 : f32 to vector<2x64xf32>
    %cst_105 = arith.constant 0.000000e+00 : f32
    %331 = vector.broadcast %cst_105 : f32 to vector<2x64xf32>
    %332 = vector.extract_strided_slice %329 {offsets = [0, 0], sizes = [2, 256], strides = [1, 1]} : vector<16x256xf32> to vector<2x256xf32>
    %333 = vector.extract_strided_slice %329 {offsets = [14, 0], sizes = [2, 256], strides = [1, 1]} : vector<16x256xf32> to vector<2x256xf32>
    %334 = arith.select %4, %332, %333 : vector<2x256xi1>, vector<2x256xf32>
    %335 = arith.truncf %330 : vector<2x64xf32> to vector<2x64xbf16>
    %c0_106 = arith.constant 0 : index
    %c0_107 = arith.constant 0 : index
    %336 = vector.load %arg7[%c0_106, %c0_107] : memref<64x256xbf16, #tpu.memory_space<vmem>>, vector<64x256xbf16>
    %cst_108 = arith.constant dense<0.000000e+00> : vector<2x256xf32>
    %337 = tpu.matmul %335, %336, %cst_108 {dimension_numbers = #tpu.dot_dimension_numbers<[1], [0], [0], [1], [0, 0, 1, 1], [], []>} : vector<2x64xbf16>, vector<64x256xbf16>, vector<2x256xf32> -> vector<2x256xf32>
    %338 = arith.addf %334, %337 : vector<2x256xf32>
    %339 = vector.extract_strided_slice %338 {offsets = [0, 0], sizes = [2, 64], strides = [1, 1]} : vector<2x256xf32> to vector<2x64xf32>
    %340 = arith.negf %339 : vector<2x64xf32>
    %341 = math.exp %340 : vector<2x64xf32>
    %cst_109 = arith.constant 1.000000e+00 : f32
    %342 = vector.broadcast %cst_109 : f32 to vector<2x64xf32>
    %343 = arith.addf %342, %341 : vector<2x64xf32>
    %344 = arith.divf %342, %343 : vector<2x64xf32>
    %345 = vector.extract_strided_slice %338 {offsets = [0, 64], sizes = [2, 64], strides = [1, 1]} : vector<2x256xf32> to vector<2x64xf32>
    %346 = arith.negf %345 : vector<2x64xf32>
    %347 = math.exp %346 : vector<2x64xf32>
    %cst_110 = arith.constant 1.000000e+00 : f32
    %348 = vector.broadcast %cst_110 : f32 to vector<2x64xf32>
    %349 = arith.addf %348, %347 : vector<2x64xf32>
    %350 = arith.divf %348, %349 : vector<2x64xf32>
    %351 = vector.extract_strided_slice %338 {offsets = [0, 128], sizes = [2, 64], strides = [1, 1]} : vector<2x256xf32> to vector<2x64xf32>
    %352 = math.tanh %351 : vector<2x64xf32>
    %353 = vector.extract_strided_slice %338 {offsets = [0, 192], sizes = [2, 64], strides = [1, 1]} : vector<2x256xf32> to vector<2x64xf32>
    %354 = arith.negf %353 : vector<2x64xf32>
    %355 = math.exp %354 : vector<2x64xf32>
    %cst_111 = arith.constant 1.000000e+00 : f32
    %356 = vector.broadcast %cst_111 : f32 to vector<2x64xf32>
    %357 = arith.addf %356, %355 : vector<2x64xf32>
    %358 = arith.divf %356, %357 : vector<2x64xf32>
    %359 = arith.mulf %350, %331 : vector<2x64xf32>
    %360 = arith.mulf %344, %352 : vector<2x64xf32>
    %361 = arith.addf %359, %360 : vector<2x64xf32>
    %362 = math.tanh %361 : vector<2x64xf32>
    %363 = arith.mulf %358, %362 : vector<2x64xf32>
    %364 = vector.extract_strided_slice %363 {offsets = [0, 0], sizes = [2, 32], strides = [1, 1]} : vector<2x64xf32> to vector<2x32xf32>
    %c0_112 = arith.constant 0 : index
    %c0_113 = arith.constant 0 : index
    %365 = vector.load %arg12[%c0_112, %c0_113] : memref<16x64xf32, #tpu.memory_space<vmem>>, vector<2x32xf32>
    tpu.vector_store %arg12[%c0_112, %c0_113], %364 {strides = array<i32>} : memref<16x64xf32, #tpu.memory_space<vmem>>, vector<2x32xf32>,
    %366 = vector.extract_strided_slice %363 {offsets = [0, 32], sizes = [2, 32], strides = [1, 1]} : vector<2x64xf32> to vector<2x32xf32>
    %c14_114 = arith.constant 14 : index
    %c32_115 = arith.constant 32 : index
    %367 = vector.load %arg12[%c14_114, %c32_115] : memref<16x64xf32, #tpu.memory_space<vmem>>, vector<2x32xf32>
    tpu.vector_store %arg12[%c14_114, %c32_115], %366 {strides = array<i32>} : memref<16x64xf32, #tpu.memory_space<vmem>>, vector<2x32xf32>,
    %368 = vector.extract_strided_slice %329 {offsets = [2, 0], sizes = [2, 256], strides = [1, 1]} : vector<16x256xf32> to vector<2x256xf32>
    %369 = vector.extract_strided_slice %329 {offsets = [12, 0], sizes = [2, 256], strides = [1, 1]} : vector<16x256xf32> to vector<2x256xf32>
    %370 = arith.select %4, %368, %369 : vector<2x256xi1>, vector<2x256xf32>
    %371 = arith.truncf %363 : vector<2x64xf32> to vector<2x64xbf16>
    %c0_116 = arith.constant 0 : index
    %c0_117 = arith.constant 0 : index
    %372 = vector.load %arg7[%c0_116, %c0_117] : memref<64x256xbf16, #tpu.memory_space<vmem>>, vector<64x256xbf16>
    %cst_118 = arith.constant dense<0.000000e+00> : vector<2x256xf32>
    %373 = tpu.matmul %371, %372, %cst_118 {dimension_numbers = #tpu.dot_dimension_numbers<[1], [0], [0], [1], [0, 0, 1, 1], [], []>} : vector<2x64xbf16>, vector<64x256xbf16>, vector<2x256xf32> -> vector<2x256xf32>
    %374 = arith.addf %370, %373 : vector<2x256xf32>
    %375 = vector.extract_strided_slice %374 {offsets = [0, 0], sizes = [2, 64], strides = [1, 1]} : vector<2x256xf32> to vector<2x64xf32>
    %376 = arith.negf %375 : vector<2x64xf32>
    %377 = math.exp %376 : vector<2x64xf32>
    %cst_119 = arith.constant 1.000000e+00 : f32
    %378 = vector.broadcast %cst_119 : f32 to vector<2x64xf32>
    %379 = arith.addf %378, %377 : vector<2x64xf32>
    %380 = arith.divf %378, %379 : vector<2x64xf32>
    %381 = vector.extract_strided_slice %374 {offsets = [0, 64], sizes = [2, 64], strides = [1, 1]} : vector<2x256xf32> to vector<2x64xf32>
    %382 = arith.negf %381 : vector<2x64xf32>
    %383 = math.exp %382 : vector<2x64xf32>
    %cst_120 = arith.constant 1.000000e+00 : f32
    %384 = vector.broadcast %cst_120 : f32 to vector<2x64xf32>
    %385 = arith.addf %384, %383 : vector<2x64xf32>
    %386 = arith.divf %384, %385 : vector<2x64xf32>
    %387 = vector.extract_strided_slice %374 {offsets = [0, 128], sizes = [2, 64], strides = [1, 1]} : vector<2x256xf32> to vector<2x64xf32>
    %388 = math.tanh %387 : vector<2x64xf32>
    %389 = vector.extract_strided_slice %374 {offsets = [0, 192], sizes = [2, 64], strides = [1, 1]} : vector<2x256xf32> to vector<2x64xf32>
    %390 = arith.negf %389 : vector<2x64xf32>
    %391 = math.exp %390 : vector<2x64xf32>
    %cst_121 = arith.constant 1.000000e+00 : f32
    %392 = vector.broadcast %cst_121 : f32 to vector<2x64xf32>
    %393 = arith.addf %392, %391 : vector<2x64xf32>
    %394 = arith.divf %392, %393 : vector<2x64xf32>
    %395 = arith.mulf %386, %361 : vector<2x64xf32>
    %396 = arith.mulf %380, %388 : vector<2x64xf32>
    %397 = arith.addf %395, %396 : vector<2x64xf32>
    %398 = math.tanh %397 : vector<2x64xf32>
    %399 = arith.mulf %394, %398 : vector<2x64xf32>
    %400 = vector.extract_strided_slice %399 {offsets = [0, 0], sizes = [2, 32], strides = [1, 1]} : vector<2x64xf32> to vector<2x32xf32>
    %c2_122 = arith.constant 2 : index
    %c0_123 = arith.constant 0 : index
    %401 = vector.load %arg12[%c2_122, %c0_123] : memref<16x64xf32, #tpu.memory_space<vmem>>, vector<2x32xf32>
    tpu.vector_store %arg12[%c2_122, %c0_123], %400 {strides = array<i32>} : memref<16x64xf32, #tpu.memory_space<vmem>>, vector<2x32xf32>,
    %402 = vector.extract_strided_slice %399 {offsets = [0, 32], sizes = [2, 32], strides = [1, 1]} : vector<2x64xf32> to vector<2x32xf32>
    %c12_124 = arith.constant 12 : index
    %c32_125 = arith.constant 32 : index
    %403 = vector.load %arg12[%c12_124, %c32_125] : memref<16x64xf32, #tpu.memory_space<vmem>>, vector<2x32xf32>
    tpu.vector_store %arg12[%c12_124, %c32_125], %402 {strides = array<i32>} : memref<16x64xf32, #tpu.memory_space<vmem>>, vector<2x32xf32>,
    %404 = vector.extract_strided_slice %329 {offsets = [4, 0], sizes = [2, 256], strides = [1, 1]} : vector<16x256xf32> to vector<2x256xf32>
    %405 = vector.extract_strided_slice %329 {offsets = [10, 0], sizes = [2, 256], strides = [1, 1]} : vector<16x256xf32> to vector<2x256xf32>
    %406 = arith.select %4, %404, %405 : vector<2x256xi1>, vector<2x256xf32>
    %407 = arith.truncf %399 : vector<2x64xf32> to vector<2x64xbf16>
    %c0_126 = arith.constant 0 : index
    %c0_127 = arith.constant 0 : index
    %408 = vector.load %arg7[%c0_126, %c0_127] : memref<64x256xbf16, #tpu.memory_space<vmem>>, vector<64x256xbf16>
    %cst_128 = arith.constant dense<0.000000e+00> : vector<2x256xf32>
    %409 = tpu.matmul %407, %408, %cst_128 {dimension_numbers = #tpu.dot_dimension_numbers<[1], [0], [0], [1], [0, 0, 1, 1], [], []>} : vector<2x64xbf16>, vector<64x256xbf16>, vector<2x256xf32> -> vector<2x256xf32>
    %410 = arith.addf %406, %409 : vector<2x256xf32>
    %411 = vector.extract_strided_slice %410 {offsets = [0, 0], sizes = [2, 64], strides = [1, 1]} : vector<2x256xf32> to vector<2x64xf32>
    %412 = arith.negf %411 : vector<2x64xf32>
    %413 = math.exp %412 : vector<2x64xf32>
    %cst_129 = arith.constant 1.000000e+00 : f32
    %414 = vector.broadcast %cst_129 : f32 to vector<2x64xf32>
    %415 = arith.addf %414, %413 : vector<2x64xf32>
    %416 = arith.divf %414, %415 : vector<2x64xf32>
    %417 = vector.extract_strided_slice %410 {offsets = [0, 64], sizes = [2, 64], strides = [1, 1]} : vector<2x256xf32> to vector<2x64xf32>
    %418 = arith.negf %417 : vector<2x64xf32>
    %419 = math.exp %418 : vector<2x64xf32>
    %cst_130 = arith.constant 1.000000e+00 : f32
    %420 = vector.broadcast %cst_130 : f32 to vector<2x64xf32>
    %421 = arith.addf %420, %419 : vector<2x64xf32>
    %422 = arith.divf %420, %421 : vector<2x64xf32>
    %423 = vector.extract_strided_slice %410 {offsets = [0, 128], sizes = [2, 64], strides = [1, 1]} : vector<2x256xf32> to vector<2x64xf32>
    %424 = math.tanh %423 : vector<2x64xf32>
    %425 = vector.extract_strided_slice %410 {offsets = [0, 192], sizes = [2, 64], strides = [1, 1]} : vector<2x256xf32> to vector<2x64xf32>
    %426 = arith.negf %425 : vector<2x64xf32>
    %427 = math.exp %426 : vector<2x64xf32>
    %cst_131 = arith.constant 1.000000e+00 : f32
    %428 = vector.broadcast %cst_131 : f32 to vector<2x64xf32>
    %429 = arith.addf %428, %427 : vector<2x64xf32>
    %430 = arith.divf %428, %429 : vector<2x64xf32>
    %431 = arith.mulf %422, %397 : vector<2x64xf32>
    %432 = arith.mulf %416, %424 : vector<2x64xf32>
    %433 = arith.addf %431, %432 : vector<2x64xf32>
    %434 = math.tanh %433 : vector<2x64xf32>
    %435 = arith.mulf %430, %434 : vector<2x64xf32>
    %436 = vector.extract_strided_slice %435 {offsets = [0, 0], sizes = [2, 32], strides = [1, 1]} : vector<2x64xf32> to vector<2x32xf32>
    %c4_132 = arith.constant 4 : index
    %c0_133 = arith.constant 0 : index
    %437 = vector.load %arg12[%c4_132, %c0_133] : memref<16x64xf32, #tpu.memory_space<vmem>>, vector<2x32xf32>
    tpu.vector_store %arg12[%c4_132, %c0_133], %436 {strides = array<i32>} : memref<16x64xf32, #tpu.memory_space<vmem>>, vector<2x32xf32>,
    %438 = vector.extract_strided_slice %435 {offsets = [0, 32], sizes = [2, 32], strides = [1, 1]} : vector<2x64xf32> to vector<2x32xf32>
    %c10_134 = arith.constant 10 : index
    %c32_135 = arith.constant 32 : index
    %439 = vector.load %arg12[%c10_134, %c32_135] : memref<16x64xf32, #tpu.memory_space<vmem>>, vector<2x32xf32>
    tpu.vector_store %arg12[%c10_134, %c32_135], %438 {strides = array<i32>} : memref<16x64xf32, #tpu.memory_space<vmem>>, vector<2x32xf32>,
    %440 = vector.extract_strided_slice %329 {offsets = [6, 0], sizes = [2, 256], strides = [1, 1]} : vector<16x256xf32> to vector<2x256xf32>
    %441 = vector.extract_strided_slice %329 {offsets = [8, 0], sizes = [2, 256], strides = [1, 1]} : vector<16x256xf32> to vector<2x256xf32>
    %442 = arith.select %4, %440, %441 : vector<2x256xi1>, vector<2x256xf32>
    %443 = arith.truncf %435 : vector<2x64xf32> to vector<2x64xbf16>
    %c0_136 = arith.constant 0 : index
    %c0_137 = arith.constant 0 : index
    %444 = vector.load %arg7[%c0_136, %c0_137] : memref<64x256xbf16, #tpu.memory_space<vmem>>, vector<64x256xbf16>
    %cst_138 = arith.constant dense<0.000000e+00> : vector<2x256xf32>
    %445 = tpu.matmul %443, %444, %cst_138 {dimension_numbers = #tpu.dot_dimension_numbers<[1], [0], [0], [1], [0, 0, 1, 1], [], []>} : vector<2x64xbf16>, vector<64x256xbf16>, vector<2x256xf32> -> vector<2x256xf32>
    %446 = arith.addf %442, %445 : vector<2x256xf32>
    %447 = vector.extract_strided_slice %446 {offsets = [0, 0], sizes = [2, 64], strides = [1, 1]} : vector<2x256xf32> to vector<2x64xf32>
    %448 = arith.negf %447 : vector<2x64xf32>
    %449 = math.exp %448 : vector<2x64xf32>
    %cst_139 = arith.constant 1.000000e+00 : f32
    %450 = vector.broadcast %cst_139 : f32 to vector<2x64xf32>
    %451 = arith.addf %450, %449 : vector<2x64xf32>
    %452 = arith.divf %450, %451 : vector<2x64xf32>
    %453 = vector.extract_strided_slice %446 {offsets = [0, 64], sizes = [2, 64], strides = [1, 1]} : vector<2x256xf32> to vector<2x64xf32>
    %454 = arith.negf %453 : vector<2x64xf32>
    %455 = math.exp %454 : vector<2x64xf32>
    %cst_140 = arith.constant 1.000000e+00 : f32
    %456 = vector.broadcast %cst_140 : f32 to vector<2x64xf32>
    %457 = arith.addf %456, %455 : vector<2x64xf32>
    %458 = arith.divf %456, %457 : vector<2x64xf32>
    %459 = vector.extract_strided_slice %446 {offsets = [0, 128], sizes = [2, 64], strides = [1, 1]} : vector<2x256xf32> to vector<2x64xf32>
    %460 = math.tanh %459 : vector<2x64xf32>
    %461 = vector.extract_strided_slice %446 {offsets = [0, 192], sizes = [2, 64], strides = [1, 1]} : vector<2x256xf32> to vector<2x64xf32>
    %462 = arith.negf %461 : vector<2x64xf32>
    %463 = math.exp %462 : vector<2x64xf32>
    %cst_141 = arith.constant 1.000000e+00 : f32
    %464 = vector.broadcast %cst_141 : f32 to vector<2x64xf32>
    %465 = arith.addf %464, %463 : vector<2x64xf32>
    %466 = arith.divf %464, %465 : vector<2x64xf32>
    %467 = arith.mulf %458, %433 : vector<2x64xf32>
    %468 = arith.mulf %452, %460 : vector<2x64xf32>
    %469 = arith.addf %467, %468 : vector<2x64xf32>
    %470 = math.tanh %469 : vector<2x64xf32>
    %471 = arith.mulf %466, %470 : vector<2x64xf32>
    %472 = vector.extract_strided_slice %471 {offsets = [0, 0], sizes = [2, 32], strides = [1, 1]} : vector<2x64xf32> to vector<2x32xf32>
    %c6_142 = arith.constant 6 : index
    %c0_143 = arith.constant 0 : index
    %473 = vector.load %arg12[%c6_142, %c0_143] : memref<16x64xf32, #tpu.memory_space<vmem>>, vector<2x32xf32>
    tpu.vector_store %arg12[%c6_142, %c0_143], %472 {strides = array<i32>} : memref<16x64xf32, #tpu.memory_space<vmem>>, vector<2x32xf32>,
    %474 = vector.extract_strided_slice %471 {offsets = [0, 32], sizes = [2, 32], strides = [1, 1]} : vector<2x64xf32> to vector<2x32xf32>
    %c8_144 = arith.constant 8 : index
    %c32_145 = arith.constant 32 : index
    %475 = vector.load %arg12[%c8_144, %c32_145] : memref<16x64xf32, #tpu.memory_space<vmem>>, vector<2x32xf32>
    tpu.vector_store %arg12[%c8_144, %c32_145], %474 {strides = array<i32>} : memref<16x64xf32, #tpu.memory_space<vmem>>, vector<2x32xf32>,
    %476 = vector.extract_strided_slice %329 {offsets = [8, 0], sizes = [2, 256], strides = [1, 1]} : vector<16x256xf32> to vector<2x256xf32>
    %477 = vector.extract_strided_slice %329 {offsets = [6, 0], sizes = [2, 256], strides = [1, 1]} : vector<16x256xf32> to vector<2x256xf32>
    %478 = arith.select %4, %476, %477 : vector<2x256xi1>, vector<2x256xf32>
    %479 = arith.truncf %471 : vector<2x64xf32> to vector<2x64xbf16>
    %c0_146 = arith.constant 0 : index
    %c0_147 = arith.constant 0 : index
    %480 = vector.load %arg7[%c0_146, %c0_147] : memref<64x256xbf16, #tpu.memory_space<vmem>>, vector<64x256xbf16>
    %cst_148 = arith.constant dense<0.000000e+00> : vector<2x256xf32>
    %481 = tpu.matmul %479, %480, %cst_148 {dimension_numbers = #tpu.dot_dimension_numbers<[1], [0], [0], [1], [0, 0, 1, 1], [], []>} : vector<2x64xbf16>, vector<64x256xbf16>, vector<2x256xf32> -> vector<2x256xf32>
    %482 = arith.addf %478, %481 : vector<2x256xf32>
    %483 = vector.extract_strided_slice %482 {offsets = [0, 0], sizes = [2, 64], strides = [1, 1]} : vector<2x256xf32> to vector<2x64xf32>
    %484 = arith.negf %483 : vector<2x64xf32>
    %485 = math.exp %484 : vector<2x64xf32>
    %cst_149 = arith.constant 1.000000e+00 : f32
    %486 = vector.broadcast %cst_149 : f32 to vector<2x64xf32>
    %487 = arith.addf %486, %485 : vector<2x64xf32>
    %488 = arith.divf %486, %487 : vector<2x64xf32>
    %489 = vector.extract_strided_slice %482 {offsets = [0, 64], sizes = [2, 64], strides = [1, 1]} : vector<2x256xf32> to vector<2x64xf32>
    %490 = arith.negf %489 : vector<2x64xf32>
    %491 = math.exp %490 : vector<2x64xf32>
    %cst_150 = arith.constant 1.000000e+00 : f32
    %492 = vector.broadcast %cst_150 : f32 to vector<2x64xf32>
    %493 = arith.addf %492, %491 : vector<2x64xf32>
    %494 = arith.divf %492, %493 : vector<2x64xf32>
    %495 = vector.extract_strided_slice %482 {offsets = [0, 128], sizes = [2, 64], strides = [1, 1]} : vector<2x256xf32> to vector<2x64xf32>
    %496 = math.tanh %495 : vector<2x64xf32>
    %497 = vector.extract_strided_slice %482 {offsets = [0, 192], sizes = [2, 64], strides = [1, 1]} : vector<2x256xf32> to vector<2x64xf32>
    %498 = arith.negf %497 : vector<2x64xf32>
    %499 = math.exp %498 : vector<2x64xf32>
    %cst_151 = arith.constant 1.000000e+00 : f32
    %500 = vector.broadcast %cst_151 : f32 to vector<2x64xf32>
    %501 = arith.addf %500, %499 : vector<2x64xf32>
    %502 = arith.divf %500, %501 : vector<2x64xf32>
    %503 = arith.mulf %494, %469 : vector<2x64xf32>
    %504 = arith.mulf %488, %496 : vector<2x64xf32>
    %505 = arith.addf %503, %504 : vector<2x64xf32>
    %506 = math.tanh %505 : vector<2x64xf32>
    %507 = arith.mulf %502, %506 : vector<2x64xf32>
    %508 = vector.extract_strided_slice %507 {offsets = [0, 0], sizes = [2, 32], strides = [1, 1]} : vector<2x64xf32> to vector<2x32xf32>
    %c8_152 = arith.constant 8 : index
    %c0_153 = arith.constant 0 : index
    %509 = vector.load %arg12[%c8_152, %c0_153] : memref<16x64xf32, #tpu.memory_space<vmem>>, vector<2x32xf32>
    tpu.vector_store %arg12[%c8_152, %c0_153], %508 {strides = array<i32>} : memref<16x64xf32, #tpu.memory_space<vmem>>, vector<2x32xf32>,
    %510 = vector.extract_strided_slice %507 {offsets = [0, 32], sizes = [2, 32], strides = [1, 1]} : vector<2x64xf32> to vector<2x32xf32>
    %c6_154 = arith.constant 6 : index
    %c32_155 = arith.constant 32 : index
    %511 = vector.load %arg12[%c6_154, %c32_155] : memref<16x64xf32, #tpu.memory_space<vmem>>, vector<2x32xf32>
    tpu.vector_store %arg12[%c6_154, %c32_155], %510 {strides = array<i32>} : memref<16x64xf32, #tpu.memory_space<vmem>>, vector<2x32xf32>,
    %512 = vector.extract_strided_slice %329 {offsets = [10, 0], sizes = [2, 256], strides = [1, 1]} : vector<16x256xf32> to vector<2x256xf32>
    %513 = vector.extract_strided_slice %329 {offsets = [4, 0], sizes = [2, 256], strides = [1, 1]} : vector<16x256xf32> to vector<2x256xf32>
    %514 = arith.select %4, %512, %513 : vector<2x256xi1>, vector<2x256xf32>
    %515 = arith.truncf %507 : vector<2x64xf32> to vector<2x64xbf16>
    %c0_156 = arith.constant 0 : index
    %c0_157 = arith.constant 0 : index
    %516 = vector.load %arg7[%c0_156, %c0_157] : memref<64x256xbf16, #tpu.memory_space<vmem>>, vector<64x256xbf16>
    %cst_158 = arith.constant dense<0.000000e+00> : vector<2x256xf32>
    %517 = tpu.matmul %515, %516, %cst_158 {dimension_numbers = #tpu.dot_dimension_numbers<[1], [0], [0], [1], [0, 0, 1, 1], [], []>} : vector<2x64xbf16>, vector<64x256xbf16>, vector<2x256xf32> -> vector<2x256xf32>
    %518 = arith.addf %514, %517 : vector<2x256xf32>
    %519 = vector.extract_strided_slice %518 {offsets = [0, 0], sizes = [2, 64], strides = [1, 1]} : vector<2x256xf32> to vector<2x64xf32>
    %520 = arith.negf %519 : vector<2x64xf32>
    %521 = math.exp %520 : vector<2x64xf32>
    %cst_159 = arith.constant 1.000000e+00 : f32
    %522 = vector.broadcast %cst_159 : f32 to vector<2x64xf32>
    %523 = arith.addf %522, %521 : vector<2x64xf32>
    %524 = arith.divf %522, %523 : vector<2x64xf32>
    %525 = vector.extract_strided_slice %518 {offsets = [0, 64], sizes = [2, 64], strides = [1, 1]} : vector<2x256xf32> to vector<2x64xf32>
    %526 = arith.negf %525 : vector<2x64xf32>
    %527 = math.exp %526 : vector<2x64xf32>
    %cst_160 = arith.constant 1.000000e+00 : f32
    %528 = vector.broadcast %cst_160 : f32 to vector<2x64xf32>
    %529 = arith.addf %528, %527 : vector<2x64xf32>
    %530 = arith.divf %528, %529 : vector<2x64xf32>
    %531 = vector.extract_strided_slice %518 {offsets = [0, 128], sizes = [2, 64], strides = [1, 1]} : vector<2x256xf32> to vector<2x64xf32>
    %532 = math.tanh %531 : vector<2x64xf32>
    %533 = vector.extract_strided_slice %518 {offsets = [0, 192], sizes = [2, 64], strides = [1, 1]} : vector<2x256xf32> to vector<2x64xf32>
    %534 = arith.negf %533 : vector<2x64xf32>
    %535 = math.exp %534 : vector<2x64xf32>
    %cst_161 = arith.constant 1.000000e+00 : f32
    %536 = vector.broadcast %cst_161 : f32 to vector<2x64xf32>
    %537 = arith.addf %536, %535 : vector<2x64xf32>
    %538 = arith.divf %536, %537 : vector<2x64xf32>
    %539 = arith.mulf %530, %505 : vector<2x64xf32>
    %540 = arith.mulf %524, %532 : vector<2x64xf32>
    %541 = arith.addf %539, %540 : vector<2x64xf32>
    %542 = math.tanh %541 : vector<2x64xf32>
    %543 = arith.mulf %538, %542 : vector<2x64xf32>
    %544 = vector.extract_strided_slice %543 {offsets = [0, 0], sizes = [2, 32], strides = [1, 1]} : vector<2x64xf32> to vector<2x32xf32>
    %c10_162 = arith.constant 10 : index
    %c0_163 = arith.constant 0 : index
    %545 = vector.load %arg12[%c10_162, %c0_163] : memref<16x64xf32, #tpu.memory_space<vmem>>, vector<2x32xf32>
    tpu.vector_store %arg12[%c10_162, %c0_163], %544 {strides = array<i32>} : memref<16x64xf32, #tpu.memory_space<vmem>>, vector<2x32xf32>,
    %546 = vector.extract_strided_slice %543 {offsets = [0, 32], sizes = [2, 32], strides = [1, 1]} : vector<2x64xf32> to vector<2x32xf32>
    %c4_164 = arith.constant 4 : index
    %c32_165 = arith.constant 32 : index
    %547 = vector.load %arg12[%c4_164, %c32_165] : memref<16x64xf32, #tpu.memory_space<vmem>>, vector<2x32xf32>
    tpu.vector_store %arg12[%c4_164, %c32_165], %546 {strides = array<i32>} : memref<16x64xf32, #tpu.memory_space<vmem>>, vector<2x32xf32>,
    %548 = vector.extract_strided_slice %329 {offsets = [12, 0], sizes = [2, 256], strides = [1, 1]} : vector<16x256xf32> to vector<2x256xf32>
    %549 = vector.extract_strided_slice %329 {offsets = [2, 0], sizes = [2, 256], strides = [1, 1]} : vector<16x256xf32> to vector<2x256xf32>
    %550 = arith.select %4, %548, %549 : vector<2x256xi1>, vector<2x256xf32>
    %551 = arith.truncf %543 : vector<2x64xf32> to vector<2x64xbf16>
    %c0_166 = arith.constant 0 : index
    %c0_167 = arith.constant 0 : index
    %552 = vector.load %arg7[%c0_166, %c0_167] : memref<64x256xbf16, #tpu.memory_space<vmem>>, vector<64x256xbf16>
    %cst_168 = arith.constant dense<0.000000e+00> : vector<2x256xf32>
    %553 = tpu.matmul %551, %552, %cst_168 {dimension_numbers = #tpu.dot_dimension_numbers<[1], [0], [0], [1], [0, 0, 1, 1], [], []>} : vector<2x64xbf16>, vector<64x256xbf16>, vector<2x256xf32> -> vector<2x256xf32>
    %554 = arith.addf %550, %553 : vector<2x256xf32>
    %555 = vector.extract_strided_slice %554 {offsets = [0, 0], sizes = [2, 64], strides = [1, 1]} : vector<2x256xf32> to vector<2x64xf32>
    %556 = arith.negf %555 : vector<2x64xf32>
    %557 = math.exp %556 : vector<2x64xf32>
    %cst_169 = arith.constant 1.000000e+00 : f32
    %558 = vector.broadcast %cst_169 : f32 to vector<2x64xf32>
    %559 = arith.addf %558, %557 : vector<2x64xf32>
    %560 = arith.divf %558, %559 : vector<2x64xf32>
    %561 = vector.extract_strided_slice %554 {offsets = [0, 64], sizes = [2, 64], strides = [1, 1]} : vector<2x256xf32> to vector<2x64xf32>
    %562 = arith.negf %561 : vector<2x64xf32>
    %563 = math.exp %562 : vector<2x64xf32>
    %cst_170 = arith.constant 1.000000e+00 : f32
    %564 = vector.broadcast %cst_170 : f32 to vector<2x64xf32>
    %565 = arith.addf %564, %563 : vector<2x64xf32>
    %566 = arith.divf %564, %565 : vector<2x64xf32>
    %567 = vector.extract_strided_slice %554 {offsets = [0, 128], sizes = [2, 64], strides = [1, 1]} : vector<2x256xf32> to vector<2x64xf32>
    %568 = math.tanh %567 : vector<2x64xf32>
    %569 = vector.extract_strided_slice %554 {offsets = [0, 192], sizes = [2, 64], strides = [1, 1]} : vector<2x256xf32> to vector<2x64xf32>
    %570 = arith.negf %569 : vector<2x64xf32>
    %571 = math.exp %570 : vector<2x64xf32>
    %cst_171 = arith.constant 1.000000e+00 : f32
    %572 = vector.broadcast %cst_171 : f32 to vector<2x64xf32>
    %573 = arith.addf %572, %571 : vector<2x64xf32>
    %574 = arith.divf %572, %573 : vector<2x64xf32>
    %575 = arith.mulf %566, %541 : vector<2x64xf32>
    %576 = arith.mulf %560, %568 : vector<2x64xf32>
    %577 = arith.addf %575, %576 : vector<2x64xf32>
    %578 = math.tanh %577 : vector<2x64xf32>
    %579 = arith.mulf %574, %578 : vector<2x64xf32>
    %580 = vector.extract_strided_slice %579 {offsets = [0, 0], sizes = [2, 32], strides = [1, 1]} : vector<2x64xf32> to vector<2x32xf32>
    %c12_172 = arith.constant 12 : index
    %c0_173 = arith.constant 0 : index
    %581 = vector.load %arg12[%c12_172, %c0_173] : memref<16x64xf32, #tpu.memory_space<vmem>>, vector<2x32xf32>
    tpu.vector_store %arg12[%c12_172, %c0_173], %580 {strides = array<i32>} : memref<16x64xf32, #tpu.memory_space<vmem>>, vector<2x32xf32>,
    %582 = vector.extract_strided_slice %579 {offsets = [0, 32], sizes = [2, 32], strides = [1, 1]} : vector<2x64xf32> to vector<2x32xf32>
    %c2_174 = arith.constant 2 : index
    %c32_175 = arith.constant 32 : index
    %583 = vector.load %arg12[%c2_174, %c32_175] : memref<16x64xf32, #tpu.memory_space<vmem>>, vector<2x32xf32>
    tpu.vector_store %arg12[%c2_174, %c32_175], %582 {strides = array<i32>} : memref<16x64xf32, #tpu.memory_space<vmem>>, vector<2x32xf32>,
    %584 = vector.extract_strided_slice %329 {offsets = [14, 0], sizes = [2, 256], strides = [1, 1]} : vector<16x256xf32> to vector<2x256xf32>
    %585 = vector.extract_strided_slice %329 {offsets = [0, 0], sizes = [2, 256], strides = [1, 1]} : vector<16x256xf32> to vector<2x256xf32>
    %586 = arith.select %4, %584, %585 : vector<2x256xi1>, vector<2x256xf32>
    %587 = arith.truncf %579 : vector<2x64xf32> to vector<2x64xbf16>
    %c0_176 = arith.constant 0 : index
    %c0_177 = arith.constant 0 : index
    %588 = vector.load %arg7[%c0_176, %c0_177] : memref<64x256xbf16, #tpu.memory_space<vmem>>, vector<64x256xbf16>
    %cst_178 = arith.constant dense<0.000000e+00> : vector<2x256xf32>
    %589 = tpu.matmul %587, %588, %cst_178 {dimension_numbers = #tpu.dot_dimension_numbers<[1], [0], [0], [1], [0, 0, 1, 1], [], []>} : vector<2x64xbf16>, vector<64x256xbf16>, vector<2x256xf32> -> vector<2x256xf32>
    %590 = arith.addf %586, %589 : vector<2x256xf32>
    %591 = vector.extract_strided_slice %590 {offsets = [0, 0], sizes = [2, 64], strides = [1, 1]} : vector<2x256xf32> to vector<2x64xf32>
    %592 = arith.negf %591 : vector<2x64xf32>
    %593 = math.exp %592 : vector<2x64xf32>
    %cst_179 = arith.constant 1.000000e+00 : f32
    %594 = vector.broadcast %cst_179 : f32 to vector<2x64xf32>
    %595 = arith.addf %594, %593 : vector<2x64xf32>
    %596 = arith.divf %594, %595 : vector<2x64xf32>
    %597 = vector.extract_strided_slice %590 {offsets = [0, 64], sizes = [2, 64], strides = [1, 1]} : vector<2x256xf32> to vector<2x64xf32>
    %598 = arith.negf %597 : vector<2x64xf32>
    %599 = math.exp %598 : vector<2x64xf32>
    %cst_180 = arith.constant 1.000000e+00 : f32
    %600 = vector.broadcast %cst_180 : f32 to vector<2x64xf32>
    %601 = arith.addf %600, %599 : vector<2x64xf32>
    %602 = arith.divf %600, %601 : vector<2x64xf32>
    %603 = vector.extract_strided_slice %590 {offsets = [0, 128], sizes = [2, 64], strides = [1, 1]} : vector<2x256xf32> to vector<2x64xf32>
    %604 = math.tanh %603 : vector<2x64xf32>
    %605 = vector.extract_strided_slice %590 {offsets = [0, 192], sizes = [2, 64], strides = [1, 1]} : vector<2x256xf32> to vector<2x64xf32>
    %606 = arith.negf %605 : vector<2x64xf32>
    %607 = math.exp %606 : vector<2x64xf32>
    %cst_181 = arith.constant 1.000000e+00 : f32
    %608 = vector.broadcast %cst_181 : f32 to vector<2x64xf32>
    %609 = arith.addf %608, %607 : vector<2x64xf32>
    %610 = arith.divf %608, %609 : vector<2x64xf32>
    %611 = arith.mulf %602, %577 : vector<2x64xf32>
    %612 = arith.mulf %596, %604 : vector<2x64xf32>
    %613 = arith.addf %611, %612 : vector<2x64xf32>
    %614 = math.tanh %613 : vector<2x64xf32>
    %615 = arith.mulf %610, %614 : vector<2x64xf32>
    %616 = vector.extract_strided_slice %615 {offsets = [0, 0], sizes = [2, 32], strides = [1, 1]} : vector<2x64xf32> to vector<2x32xf32>
    %c14_182 = arith.constant 14 : index
    %c0_183 = arith.constant 0 : index
    %617 = vector.load %arg12[%c14_182, %c0_183] : memref<16x64xf32, #tpu.memory_space<vmem>>, vector<2x32xf32>
    tpu.vector_store %arg12[%c14_182, %c0_183], %616 {strides = array<i32>} : memref<16x64xf32, #tpu.memory_space<vmem>>, vector<2x32xf32>,
    %618 = vector.extract_strided_slice %615 {offsets = [0, 32], sizes = [2, 32], strides = [1, 1]} : vector<2x64xf32> to vector<2x32xf32>
    %c0_184 = arith.constant 0 : index
    %c32_185 = arith.constant 32 : index
    %619 = vector.load %arg12[%c0_184, %c32_185] : memref<16x64xf32, #tpu.memory_space<vmem>>, vector<2x32xf32>
    tpu.vector_store %arg12[%c0_184, %c32_185], %618 {strides = array<i32>} : memref<16x64xf32, #tpu.memory_space<vmem>>, vector<2x32xf32>,
    %c0_186 = arith.constant 0 : index
    %c0_187 = arith.constant 0 : index
    %620 = vector.load %arg12[%c0_186, %c0_187] : memref<16x64xf32, #tpu.memory_space<vmem>>, vector<16x64xf32>
    %621 = arith.truncf %620 : vector<16x64xf32> to vector<16x64xbf16>
    %c0_188 = arith.constant 0 : index
    %c0_189 = arith.constant 0 : index
    %622 = vector.load %arg9[%c0_188, %c0_189] : memref<64x128xbf16, #tpu.memory_space<vmem>>, vector<64x128xbf16>
    %cst_190 = arith.constant dense<0.000000e+00> : vector<16x128xf32>
    %623 = tpu.matmul %621, %622, %cst_190 {dimension_numbers = #tpu.dot_dimension_numbers<[1], [0], [0], [1], [0, 0, 1, 1], [], []>} : vector<16x64xbf16>, vector<64x128xbf16>, vector<16x128xf32> -> vector<16x128xf32>
    %c0_191 = arith.constant 0 : index
    %c0_192 = arith.constant 0 : index
    %624 = vector.load %arg10[%c0_191, %c0_192] : memref<1x128xf32, #tpu.memory_space<vmem>>, vector<1x128xf32>
    %625 = vector.broadcast %624 : vector<1x128xf32> to vector<16x128xf32>
    %626 = arith.addf %623, %625 : vector<16x128xf32>
    %c0_193 = arith.constant 0 : index
    %c0_194 = arith.constant 0 : index
    %627 = vector.load %arg11[%c0_193, %c0_194] : memref<16x128xf32, #tpu.memory_space<vmem>>, vector<16x128xf32>
    tpu.vector_store %arg11[%c0_193, %c0_194], %626 {strides = array<i32>} : memref<16x128xf32, #tpu.memory_space<vmem>>, vector<16x128xf32>,
    return
  }
}

</mosaic_0001>

<bundles_post_ra>
// kernel: tpu_custom_call.1
= control target key start
LH: loop header
LB: loop body
LE: loop exit
PB: predicated region body
PF: predicated region fallthrough
CT: control target
= control target key end

     0   :  { %16 = vsyncpa [#allocation4], 0  ;;  %s4371_s0 = inlined_call_operand.hbm [shape: f32[20,32], index: 0, kind: input, shape index: {}]   ;;  %s4372_s1 = inlined_call_operand.hbm [shape: bf16[3,32,256], index: 1, kind: input, shape index: {}]   ;;  %s4373_s2 = inlined_call_operand.vmem [shape: f32[1,256], index: 2, kind: input, shape index: {}]   ;;  %s4374_s3 = inlined_call_operand.hbm [shape: bf16[256,256], index: 3, kind: input, shape index: {}]   ;;  %s4375_s4 = inlined_call_operand.hbm [shape: bf16[64,256], index: 4, kind: input, shape index: {}]   ;;  %s4376_s5 = inlined_call_operand.vmem [shape: f32[1,256], index: 5, kind: input, shape index: {}]   ;;  %s4377_s6 = inlined_call_operand.hbm [shape: bf16[64,256], index: 6, kind: input, shape index: {}]   ;;  %s4378_s7 = inlined_call_operand.hbm [shape: bf16[64,256], index: 7, kind: input, shape index: {}]   ;;  %s4379_s8 = inlined_call_operand.vmem [shape: f32[1,256], index: 8, kind: input, shape index: {}]   ;;  %s4380_s9 = inlined_call_operand.hbm [shape: bf16[64,128], index: 9, kind: input, shape index: {}]   ;;  %s4381_s10 = inlined_call_operand.vmem [shape: f32[1,128], index: 10, kind: input, shape index: {}]   ;;  %s4382_s11 = inlined_call_operand.hbm [shape: f32[16,128], index: 11, kind: output, shape index: {}]  }
   0x1   :  { %17 = vsyncpa [#allocation7], 0 }
   0x2   :  { %18 = vsyncpa [#allocation10], 0 }
   0x3   :  { %19 = vsyncpa [#allocation13], 0 }
   0x4   :  { %20 = vsyncpa [#allocation5], 0  ;;  %s3784_s17 = smov [#allocation6]   ;;  %s3785_s19 = smov [#allocation9]  }
   0x5   :  { %s38_s18 = sshll.u32 %s3784_s17, 4  ;;  %s64_s20 = sshll.u32 %s3785_s19, 4  ;;  %s39_s18 = int_to_ptr.vmem [resolvable:$true] %s38_s18  ;;  %s65_s20 = int_to_ptr.vmem [resolvable:$true] %s64_s20 }
   0x6   :  { %s3622_s21 = scalar_lea.vmem %s39_s18, 1536  ;;  %p3627_p1 = scmp.lt.s32.totalorder %s39_s18, %s39_s18 }
   0x7   :  { %p3623_p0 = scmp.ne.s32.totalorder %s39_s18, %s3622_s21  ;;  %p3628_p2 = scmp.lt.s32.totalorder %s3622_s21, %s3622_s21 }
   0x9   :  { %p3629_p3 = por %p3628_p2, %p3627_p1 }
   0xb   :  { %p3630_p4 = pnand %p3629_p3, %p3623_p0 }
   0xd   :  { %3633 = shalt.err (!%p3630_p4)
}
   0xe   :  { %s3786_s22 = smov 128   ;;  %s3787_s23 = smov 8  }
   0xf   :  { %44 = dma.hbm_to_vmem [thread:$0]  %s4372_s1, 1536, %s39_s18, [#allocation7], %s3786_s22, %s3786_s22, %s3787_s23  }
  0x10   :  { %s3642_s26 = scalar_lea.vmem %s65_s20, 1024  ;;  %p3647_p6 = scmp.lt.s32.totalorder %s65_s20, %s65_s20 }
  0x11   :  { %p3643_p5 = scmp.ne.s32.totalorder %s65_s20, %s3642_s26  ;;  %p3648_p7 = scmp.lt.s32.totalorder %s3642_s26, %s3642_s26 }
  0x13   :  { %p3649_p8 = por %p3648_p7, %p3647_p6 }
  0x15   :  { %p3650_p9 = pnand %p3649_p8, %p3643_p5 }
  0x17   :  { %3653 = shalt.err (!%p3650_p9)
}
  0x18   :  { %70 = dma.hbm_to_vmem [thread:$0]  %s4375_s4, 1024, %s65_s20, [#allocation10], %s3786_s22, %s3786_s22, %s3787_s23  }
  0x19   :  { %s3788_s29 = smov [#allocation12]   ;;  %s3789_s12 = smov [#allocation3]  }
  0x1a   :  { %s90_s30 = sshll.u32 %s3788_s29, 4  ;;  %s26_s13 = sshll.u32 %s3789_s12, 4  ;;  %s91_s30 = int_to_ptr.vmem [resolvable:$true] %s90_s30  ;;  %s27_s13 = int_to_ptr.vmem [resolvable:$true] %s26_s13 }
  0x1b   :  { %s3662_s1 = scalar_lea.vmem %s91_s30, 1024  ;;  %p3667_p11 = scmp.lt.s32.totalorder %s91_s30, %s91_s30 }
  0x1c   :  { %p3663_p10 = scmp.ne.s32.totalorder %s91_s30, %s3662_s1  ;;  %p3668_p12 = scmp.lt.s32.totalorder %s3662_s1, %s3662_s1 }
  0x1e   :  { %p3669_p13 = por %p3668_p12, %p3667_p11 }
  0x20   :  { %p3670_p0 = pnand %p3669_p13, %p3663_p10 }
  0x22   :  { %3673 = shalt.err (!%p3670_p0)
}
  0x23   :  { %96 = dma.hbm_to_vmem [thread:$0]  %s4378_s7, 1024, %s91_s30, [#allocation13], %s3786_s22, %s3786_s22, %s3787_s23  }
  0x24   :  { %s3682_s4 = scalar_lea.vmem %s27_s13, 384  ;;  %p3687_p2 = scmp.lt.s32.totalorder %s27_s13, %s27_s13 }
  0x25   :  { %p3683_p1 = scmp.ne.s32.totalorder %s27_s13, %s3682_s4  ;;  %p3688_p3 = scmp.lt.s32.totalorder %s3682_s4, %s3682_s4 }
  0x27   :  { %p3689_p4 = por %p3688_p3, %p3687_p2 }
  0x29   :  { %p3690_p5 = pnand %p3689_p4, %p3683_p1 }
  0x2b   :  { %3693 = shalt.err (!%p3690_p5)
}
  0x2c   :  { %32 = dma.hbm_to_vmem [thread:$0]  %s4371_s0, 384, %s27_s13, [#allocation4], %s3786_s22, %s3786_s22, %s3787_s23  }
  0x2d   :  { %s3790_s18 = smov [#allocation8]   ;;  %s3791_s20 = smov [#allocation11]  }
  0x2e   :  { %s52_s19 = sshll.u32 %s3790_s18, 4  ;;  %s78_s21 = sshll.u32 %s3791_s20, 4  ;;  %s53_s19 = int_to_ptr.vmem [resolvable:$true] %s52_s19  ;;  %s79_s21 = int_to_ptr.vmem [resolvable:$true] %s78_s21 }
  0x2f   :  { %s3702_s7 = scalar_lea.vmem %s53_s19, 4096  ;;  %p3707_p7 = scmp.lt.s32.totalorder %s53_s19, %s53_s19 }
  0x30   :  { %p3703_p6 = scmp.ne.s32.totalorder %s53_s19, %s3702_s7  ;;  %p3708_p8 = scmp.lt.s32.totalorder %s3702_s7, %s3702_s7 }
  0x32   :  { %p3709_p9 = por %p3708_p8, %p3707_p7 }
  0x34   :  { %p3710_p10 = pnand %p3709_p9, %p3703_p6 }
  0x36   :  { %3713 = shalt.err (!%p3710_p10)
}
  0x37   :  { %58 = dma.hbm_to_vmem [thread:$0]  %s4374_s3, 4096, %s53_s19, [#allocation7], %s3786_s22, %s3786_s22, %s3787_s23  }
  0x38   :  { %s3722_s0 = scalar_lea.vmem %s79_s21, 1024  ;;  %p3727_p12 = scmp.lt.s32.totalorder %s79_s21, %s79_s21 }
  0x39   :  { %p3723_p11 = scmp.ne.s32.totalorder %s79_s21, %s3722_s0  ;;  %p3728_p13 = scmp.lt.s32.totalorder %s3722_s0, %s3722_s0 }
  0x3b   :  { %p3729_p0 = por %p3728_p13, %p3727_p12 }
  0x3d   :  { %p3730_p1 = pnand %p3729_p0, %p3723_p11 }
  0x3f   :  { %3733 = shalt.err (!%p3730_p1)
}
  0x40   :  { %84 = dma.hbm_to_vmem [thread:$0]  %s4377_s6, 1024, %s79_s21, [#allocation10], %s3786_s22, %s3786_s22, %s3787_s23  }
  0x41   :  { %s3792_s28 = smov [#allocation14]  }
  0x42   :  { %s104_s29 = sshll.u32 %s3792_s28, 4  ;;  %s105_s29 = int_to_ptr.vmem [resolvable:$true] %s104_s29 }
  0x43   :  { %s3742_s30 = scalar_lea.vmem %s105_s29, 512  ;;  %p3747_p3 = scmp.lt.s32.totalorder %s105_s29, %s105_s29 }
  0x44   :  { %p3743_p2 = scmp.ne.s32.totalorder %s105_s29, %s3742_s30  ;;  %p3748_p4 = scmp.lt.s32.totalorder %s3742_s30, %s3742_s30 }
  0x46   :  { %p3749_p5 = por %p3748_p4, %p3747_p3 }
  0x48   :  { %p3750_p6 = pnand %p3749_p5, %p3743_p2 }
  0x4a   :  { %3753 = shalt.err (!%p3750_p6)
}
  0x4b   :  { %s3793_s3 = smov 64   ;;  %s3794_s12 = smov 4  }
  0x4c   :  { %110 = dma.hbm_to_vmem [thread:$0]  %s4380_s9, 512, %s105_s29, [#allocation13], %s3793_s3, %s3793_s3, %s3794_s12  }
  0x4d   :  { %3774 = dma.done.wait [#allocation4], 384  }
  0x4e   :  { %3775 = vsyncadd [#allocation4], 4294966912 }
  0x4f   :  { %3776 = dma.done.wait [#allocation7], 5632  }
  0x50   :  { %3777 = vsyncadd [#allocation7], 4294961664 }
  0x51   :  { %3778 = dma.done.wait [#allocation10], 2048  }
  0x52   :  { %3779 = vsyncadd [#allocation10], 4294965248 }
  0x53   :  { %3780 = dma.done.wait [#allocation13], 1536  }
  0x54   :  { %3781 = vsyncadd [#allocation13], 4294965760  ;;  %v3795_v0 = vmov 0   ;;  %v3316_v1 = vld [vmem:[#allocation6 + $0x34] ss:$8 sps:$4 sm:$0xff]   ;;  %v149_v9 = vld [vmem:[#allocation3 + $0x2] sm:$0xff] }
  0x55   :  { %213 = vmatprep.mubr.bf16.mxu0 %v3795_v0  ;;  %279 = vmatprep.mubr.bf16.mxu1 %v3795_v0  ;;  %v3318_v2 = vld [vmem:[#allocation6 + $0x14] ss:$8 sps:$4 sm:$0xff]   ;;  %v3320_v3 = vld [vmem:[#allocation6 + $0x30] ss:$8 sps:$4 sm:$0xff]   ;;  %v3322_v5 = vld [vmem:[#allocation6 + $0x24] ss:$8 sps:$4 sm:$0xff]  }
  0x56   :  { %193 = vmatprep.subr.bf16.mxu0 %v3316_v1  ;;  %v3321_v4 = vld [vmem:[#allocation6 + $0x10] ss:$8 sps:$4 sm:$0xff]   ;;  %259 = vmatprep.subr.bf16.mxu1 %v3318_v2  ;;  %v3324_v6 = vld [vmem:[#allocation6 + $0x4] ss:$8 sps:$4 sm:$0xff]   ;;  %v3326_v7 = vld [vmem:[#allocation6 + $0x20] ss:$8 sps:$4 sm:$0xff]   ;;  %v135_v1 = vlaneseq }
  0x57   :  { %194 = vmatpush1.bf16.msra.mxu0 %v3320_v3  ;;  %260 = vmatpush1.bf16.msra.mxu1 %v3321_v4  ;;  %v3327_v8 = vld [vmem:[#allocation6] ss:$8 sps:$4 sm:$0xff]   ;;  %v150_v10 = vld [vmem:[#allocation3 + $0xa] sm:$0xff]  ;;  %vm177_vm0 = vcmask 261120   ;;  %v3333_v17 = vld [vmem:[#allocation6 + $0x44] ss:$8 sps:$4 sm:$0xff]  }
  0x58   :  { %195 = vmatprep.subr.bf16.mxu0 %v3322_v5  ;;  %261 = vmatprep.subr.bf16.mxu1 %v3324_v6  ;;  %v142_v11 = vld [vmem:[#allocation3] sm:$0xff]  ;;  %v143_v12 = vld [vmem:[#allocation3 + $0x8] sm:$0xff]  ;;  %v151_v13 = vpack.c.bf16 %v150_v10, %v149_v9  ;;  %v371_v5 = vshrl.u32 %v135_v1, 7  ;;  %vm693_vm3 = vcmask 523264   ;;  %vm766_vm4 = vcmask 254976   ;;  %s3798_s16 = smov [#allocation15]  }
  0x59   :  { %v144_v14 = vpack.c.bf16 %v143_v12, %v142_v11  ;;  %v3330_v15 = vld [vmem:[#allocation6 + $0x54] ss:$8 sps:$4 sm:$0xff]   ;;  %v3328_v16 = vld [vmem:[#allocation6 + $0x50] ss:$8 sps:$4 sm:$0xff]   ;;  %v3331_v18 = vld [vmem:[#allocation6 + $0x40] ss:$8 sps:$4 sm:$0xff]  }
  0x5a   :  { %v290_v19 = vld [vmem:[#allocation3 + $0x4] sm:$0xff]  ;;  %v3336_v21 = vld [vmem:[#allocation8 + $0x74] ss:$8 sps:$4 sm:$0xff]   ;;  %v3337_v24 = vld [vmem:[#allocation8 + $0x60] ss:$8 sps:$4 sm:$0xff]   ;;  %v3945_v10 = vsub.s32 0, %v371_v5 }
  0x5b   :  { %196 = vmatpush1.bf16.msra.mxu0 %v3326_v7  ;;  %262 = vmatpush1.bf16.msra.mxu1 %v3327_v8  ;;  %v3334_v20 = vld [vmem:[#allocation8 + $0x70] ss:$8 sps:$4 sm:$0xff]   ;;  %v3339_v23 = vld [vmem:[#allocation8 + $0x64] ss:$8 sps:$4 sm:$0xff]   ;;  %v3342_v26 = vld [vmem:[#allocation8 + $0x54] ss:$8 sps:$4 sm:$0xff]  }
  0x5c   :  { %333 = vmatprep.subr.bf16.mxu0 %v3330_v15  ;;  %v291_v22 = vld [vmem:[#allocation3 + $0xc] sm:$0xff]  ;;  %594 = vmatprep.subr.bf16.mxu1 %v3336_v21  ;;  %v3345_v28 = vld [vmem:[#allocation8 + $0x44] ss:$8 sps:$4 sm:$0xff]   ;;  %v3343_v29 = vld [vmem:[#allocation8 + $0x40] ss:$8 sps:$4 sm:$0xff]   ;;  %v3943_v8 = vsub.s32 1, %v371_v5 }
  0x5d   :  { %v292_v25 = vpack.c.bf16 %v291_v22, %v290_v19  ;;  %v3340_v27 = vld [vmem:[#allocation8 + $0x50] ss:$8 sps:$4 sm:$0xff]   ;;  %v3348_v30 = vld [vmem:[#allocation8 + $0x34] ss:$8 sps:$4 sm:$0xff]   ;;  %v3351_v32 = vld [vmem:[#allocation8 + $0x24] ss:$8 sps:$4 sm:$0xff]  }
  0x5e   :  { %3052 = vmatmul.mubr.msk.bf16.vlgmr.msra.gmra.mxu0 %vm177_vm0, %v151_v13  ;;  %3057 = vmatmul.mubr.msk.bf16.vlgmr.msra.gmra.mxu1 %vm177_vm0, %v144_v14  ;;  %v3346_v31 = vld [vmem:[#allocation8 + $0x30] ss:$8 sps:$4 sm:$0xff]   ;;  %v3349_v33 = vld [vmem:[#allocation8 + $0x20] ss:$8 sps:$4 sm:$0xff]   ;;  %v3354_v34 = vld [vmem:[#allocation8 + $0x14] ss:$8 sps:$4 sm:$0xff]  }
  0x5f   :  { %334 = vmatpush1.bf16.msra.mxu0 %v3328_v16  ;;  %353 = vmatprep.mubr.bf16.mxu0 %v3795_v0  ;;  %v3352_v35 = vld [vmem:[#allocation8 + $0x10] ss:$8 sps:$4 sm:$0xff]   ;;  %v3357_v36 = vld [vmem:[#allocation8 + $0x4] ss:$8 sps:$4 sm:$0xff]   ;;  %v3355_v37 = vld [vmem:[#allocation8] ss:$8 sps:$4 sm:$0xff]  }
  0x60   :  { %335 = vmatprep.subr.bf16.mxu0 %v3333_v17  ;;  %595 = vmatpush1.bf16.msra.mxu1 %v3334_v20  ;;  %v3360_v38 = vld [vmem:[#allocation8 + $0xf4] ss:$8 sps:$4 sm:$0xff]   ;;  %v3358_v39 = vld [vmem:[#allocation8 + $0xf0] ss:$8 sps:$4 sm:$0xff]   ;;  %v3363_v40 = vld [vmem:[#allocation8 + $0xe4] ss:$8 sps:$4 sm:$0xff]  }
  0x61   :  { %596 = vmatprep.subr.bf16.mxu1 %v3339_v23  ;;  %v3361_v41 = vld [vmem:[#allocation8 + $0xe0] ss:$8 sps:$4 sm:$0xff]   ;;  %v3366_v42 = vld [vmem:[#allocation8 + $0xd4] ss:$8 sps:$4 sm:$0xff]   ;;  %v3364_v43 = vld [vmem:[#allocation8 + $0xd0] ss:$8 sps:$4 sm:$0xff]  }
  0x62   :  { %v3369_v44 = vld [vmem:[#allocation8 + $0xc4] ss:$8 sps:$4 sm:$0xff]   ;;  %v3367_v45 = vld [vmem:[#allocation8 + $0xc0] ss:$8 sps:$4 sm:$0xff]   ;;  %v3372_v46 = vld [vmem:[#allocation8 + $0xb4] ss:$8 sps:$4 sm:$0xff]  }
  0x63   :  { %336 = vmatpush1.bf16.msra.mxu0 %v3331_v18  ;;  %v3370_v47 = vld [vmem:[#allocation8 + $0xb0] ss:$8 sps:$4 sm:$0xff]   ;;  %v3907_v48 = vld [vmem:[#allocation9 + $0x34] ss:$8 sps:$4 sm:$0xff]   ;;  %v3375_v49 = vld [vmem:[#allocation8 + $0xa4] ss:$8 sps:$4 sm:$0xff]  }
  0x64   :  { %597 = vmatpush1.bf16.msra.mxu1 %v3337_v24  ;;  %v3909_v50 = vld [vmem:[#allocation9 + $0x30] ss:$8 sps:$4 sm:$0xff]   ;;  %v3373_v51 = vld [vmem:[#allocation8 + $0xa0] ss:$8 sps:$4 sm:$0xff]   ;;  %705 = vmatprep.subr.bf16.mxu0 %v3907_v48  ;;  %v3913_v52 = vld [vmem:[#allocation9 + $0x24] ss:$8 sps:$4 sm:$0xff]  }
  0x65   :  { %598 = vmatprep.subr.bf16.mxu1 %v3342_v26  ;;  %v3381_v53 = vld [vmem:[#allocation8 + $0x94] ss:$8 sps:$4 sm:$0xff]   ;;  %v3915_v54 = vld [vmem:[#allocation9 + $0x20] ss:$8 sps:$4 sm:$0xff]   ;;  %v3379_v55 = vld [vmem:[#allocation8 + $0x90] ss:$8 sps:$4 sm:$0xff]  }
  0x66   :  { %3062 = vmatmul.mubr.msk.bf16.vlgmr.msra.gmra.mxu0 %vm177_vm0, %v292_v25  ;;  %v3919_v56 = vld [vmem:[#allocation9 + $0x14] ss:$8 sps:$4 sm:$0xff]   ;;  %v3387_v57 = vld [vmem:[#allocation8 + $0x84] ss:$8 sps:$4 sm:$0xff]   ;;  %v3921_v58 = vld [vmem:[#allocation9 + $0x10] ss:$8 sps:$4 sm:$0xff]  }
  0x67   :  { %729 = vmatprep.mubr.bf16.mxu0 %v3795_v0  ;;  %706 = vmatpush1.bf16.msra.mxu0 %v3909_v50  ;;  %v3385_v59 = vld [vmem:[#allocation8 + $0x80] ss:$8 sps:$4 sm:$0xff]   ;;  %v3925_v60 = vld [vmem:[#allocation9 + $0x4] ss:$8 sps:$4 sm:$0xff]   ;;  %v368_v12 = vld [vmem:[%s4373_s2] sm:$0x3] }
  0x68   :  { %599 = vmatpush1.bf16.msra.mxu1 %v3340_v27  ;;  %707 = vmatprep.subr.bf16.mxu0 %v3913_v52  ;;  %v3927_v61 = vld [vmem:[#allocation9] ss:$8 sps:$4 sm:$0xff]   ;;  %v377_v18 = vrot.slane %v368_v12, %v3943_v8  ;;  %v373_v20 = vrot.slane %v368_v12, %v3945_v10  ;;  %vm768_vm5 = vcmask 517376   ;;  %vm1047_vm6 = vcmask 259076   ;;  %s3033_s17 = sshll.u32 %s3798_s16, 4  ;;  %s3034_s17 = int_to_ptr.vmem [resolvable:$true] %s3033_s17 }
  0x69   :  { %600 = vmatprep.subr.bf16.mxu1 %v3345_v28  ;;  %vm1049_vm7 = vcmask 521476   ;;  %vm909_vm8 = vcmask 257026   ;;  %vm911_vm9 = vcmask 519426   ;;  %vm1185_vm10 = vcmask 261126   ;;  %s3754_s18 = scalar_lea.vmem %s3034_s17, 256  ;;  %p3759_p8 = scmp.lt.s32.totalorder %s3034_s17, %s3034_s17 }
  0x6a   :  { %vm1187_vm11 = vcmask 523526   ;;  %vm3797_vm12 = vmmov 0   ;;  %p3755_p7 = scmp.ne.s32.totalorder %s3034_s17, %s3754_s18  ;;  %p3760_p9 = scmp.lt.s32.totalorder %s3754_s18, %s3754_s18 }
  0x6b   :  { %708 = vmatpush1.bf16.msra.mxu0 %v3915_v54 }
  0x6c   :  { %601 = vmatpush1.bf16.msra.mxu1 %v3343_v29  ;;  %709 = vmatprep.subr.bf16.mxu0 %v3919_v56  ;;  %p3761_p10 = por %p3760_p9, %p3759_p8 }
  0x6d   :  { %602 = vmatprep.subr.bf16.mxu1 %v3348_v30 }
  0x6e   :  { %p3762_p11 = pnand %p3761_p10, %p3755_p7 }
  0x6f   :  { %710 = vmatpush1.bf16.msra.mxu0 %v3921_v58 }
  0x70   :  { %603 = vmatpush1.bf16.msra.mxu1 %v3346_v31  ;;  %711 = vmatprep.subr.bf16.mxu0 %v3925_v60 }
  0x71   :  { %604 = vmatprep.subr.bf16.mxu1 %v3351_v32 }
  0x73   :  { %712 = vmatpush1.bf16.msra.mxu0 %v3927_v61 }
  0x74   :  { %605 = vmatpush1.bf16.msra.mxu1 %v3349_v33  ;;  %839 = vmatprep.subr.bf16.mxu0 %v3907_v48 }
  0x75   :  { %606 = vmatprep.subr.bf16.mxu1 %v3354_v34 }
  0x76   :  { %730 = vmatmul.mubr.bf16.vlgmr.msra.gmra.mxu0 %v3795_v0 }
  0x77   :  { %840 = vmatpush1.bf16.msra.mxu0 %v3909_v50  ;;  %863 = vmatprep.mubr.bf16.mxu0 %v3795_v0 }
  0x78   :  { %607 = vmatpush1.bf16.msra.mxu1 %v3352_v35  ;;  %841 = vmatprep.subr.bf16.mxu0 %v3913_v52 }
  0x79   :  { %608 = vmatprep.subr.bf16.mxu1 %v3357_v36 }
  0x7b   :  { %842 = vmatpush1.bf16.msra.mxu0 %v3915_v54 }
  0x7c   :  { %609 = vmatpush1.bf16.msra.mxu1 %v3355_v37  ;;  %843 = vmatprep.subr.bf16.mxu0 %v3919_v56 }
  0x7d   :  { %610 = vmatprep.subr.bf16.mxu1 %v3360_v38 }
  0x7f   :  { %844 = vmatpush1.bf16.msra.mxu0 %v3921_v58 }
  0x80   :  { %611 = vmatpush2.bf16.msra.mxu1 %v3358_v39  ;;  %845 = vmatprep.subr.bf16.mxu0 %v3925_v60 }
  0x81   :  { %612 = vmatprep.subr.bf16.mxu1 %v3363_v40  ;;  %v136_v40 = vand.u32 127, %v135_v1 }
  0x83   :  { %846 = vmatpush1.bf16.msra.mxu0 %v3927_v61 }
  0x84   :  { %613 = vmatpush2.bf16.msra.mxu1 %v3361_v41  ;;  %977 = vmatprep.subr.bf16.mxu0 %v3907_v48  ;;  %v422_v41 = vld [vmem:[%s4376_s5] sm:$0x3] }
  0x85   :  { %614 = vmatprep.subr.bf16.mxu1 %v3366_v42  ;;  %v427_v42 = vrot.slane %v422_v41, %v3945_v10 }
  0x88   :  { %615 = vmatpush2.bf16.msra.mxu1 %v3364_v43  ;;  %v137_v43 = vadd.s32 128, %v136_v40 }
  0x89   :  { %616 = vmatprep.subr.bf16.mxu1 %v3369_v44  ;;  %v138_v44 = vand.u32 32, %v136_v40 }
  0x8b   :  { %vm3966_vm1 = vcmp.eq.s32.totalorder %v138_v44, 0 }
  0x8c   :  { %617 = vmatpush2.bf16.msra.mxu1 %v3367_v45 }
  0x8d   :  { %618 = vmatprep.subr.bf16.mxu1 %v3372_v46  ;;  %v431_v46 = vrot.slane %v422_v41, %v3943_v8 }
  0x90   :  { %619 = vmatpush2.bf16.msra.mxu1 %v3370_v47 }
  0x91   :  { %620 = vmatprep.subr.bf16.mxu1 %v3375_v49  ;;  %v139_v49 = vand.u32 32, %v137_v43 }
  0x93   :  { %vm3970_vm2 = vcmp.eq.s32.totalorder %v139_v49, 0 }
  0x94   :  { %621 = vmatpush2.bf16.msra.mxu1 %v3373_v51 }
  0x95   :  { %622 = vmatprep.subr.bf16.mxu1 %v3381_v53 }
  0x98   :  { %623 = vmatpush2.bf16.msra.mxu1 %v3379_v55 }
  0x99   :  { %624 = vmatprep.subr.bf16.mxu1 %v3387_v57 }
  0x9c   :  { %625 = vmatpush2.bf16.msra.mxu1 %v3385_v59 }
  0x9d   :  { %1261 = vmatprep.subr.bf16.mxu1 %v3907_v48 }
 0x11e   :  { %v215_v62 = vpop.f32.mrf.mxu0  ;;  %v281_v63 = vpop.f32.mrf.mxu1 }
 0x11f   :  { %v282_v13 = vadd.f32 %v281_v63, %v215_v62 }
 0x120   :  { %v217_v2 = vpop.f32.mrf.mxu0  ;;  %v283_v3 = vpop.f32.mrf.mxu1 }
 0x121   :  { %v284_v11 = vadd.f32 %v283_v3, %v217_v2 }
 0x122   :  { %v219_v4 = vpop.f32.mrf.mxu0  ;;  %v285_v6 = vpop.f32.mrf.mxu1 }
 0x123   :  { %v286_v16 = vadd.f32 %v285_v6, %v219_v4 }
 0x124   :  { %v221_v7 = vpop.f32.mrf.mxu0  ;;  %v287_v14 = vpop.f32.mrf.mxu1 }
 0x125   :  { %v288_v22 = vadd.f32 %v287_v14, %v221_v7 }
 0x126   :  { %v355_v9 = vpop.f32.mrf.mxu0 }
 0x127   :  { %v364_v19 = vadd.f32 %v355_v9, %v282_v13 }
 0x128   :  { %v357_v15 = vpop.f32.mrf.mxu0 }
 0x129   :  { %v365_v17 = vadd.f32 %v357_v15, %v284_v11  ;;  %v380_v28 = vadd.f32 %v373_v20, %v364_v19 }
 0x12a   :  { %v359_v21 = vpop.f32.mrf.mxu0 }
 0x12b   :  { %v366_v23 = vadd.f32 %v359_v21, %v286_v16  ;;  %v381_v25 = vadd.f32 %v377_v18, %v365_v17  ;;  %v384_v33 = vmax.f32 %v380_v28, 0.0 }
 0x12c   :  { %v361_v24 = vpop.f32.mrf.mxu0 }
 0x12d   :  { %v382_v26 = vadd.f32 %v373_v20, %v366_v23  ;;  %v367_v27 = vadd.f32 %v361_v24, %v288_v22  ;;  %v385_v31 = vmax.f32 %v381_v25, 0.0 }
 0x12f   :  { %v383_v29 = vadd.f32 %v377_v18, %v367_v27  ;;  %v386_v30 = vmax.f32 %v382_v26, 0.0 }
 0x131   :  { %v387_v32 = vmax.f32 %v383_v29, 0.0  ;;  %v388_v35 = vpack.c.bf16 %v386_v30, %v384_v33 }
 0x133   :  { %v389_v34 = vpack.c.bf16 %v387_v32, %v385_v31 }
 0x135   :  { %626 = vmatprep.mubr.bf16.mxu1 %v389_v34 }
 0x136   :  { %627 = vmatmul.mubr.bf16.vlgmr.msra.gmra.mxu1 %v388_v35  ;;  %v731_v36 = vpop.f32.mrf.mxu0 }
 0x137   :  { %1262 = vmatpush1.bf16.msra.mxu1 %v3909_v50  ;;  %1285 = vmatprep.mubr.bf16.mxu1 %v3795_v0 }
 0x138   :  { %1263 = vmatprep.subr.bf16.mxu1 %v3913_v52  ;;  %v733_v37 = vpop.f32.mrf.mxu0 }
 0x13a   :  { %v735_v38 = vpop.f32.mrf.mxu0 }
 0x13b   :  { %1264 = vmatpush1.bf16.msra.mxu1 %v3915_v54 }
 0x13c   :  { %1265 = vmatprep.subr.bf16.mxu1 %v3919_v56  ;;  %v736_v39 = vpop.f32.mrf.mxu0 }
 0x13f   :  { %1266 = vmatpush1.bf16.msra.mxu1 %v3921_v58 }
 0x140   :  { %1267 = vmatprep.subr.bf16.mxu1 %v3925_v60 }
 0x143   :  { %1268 = vmatpush1.bf16.msra.mxu1 %v3927_v61 }
 0x144   :  { %1532 = vmatprep.subr.bf16.mxu1 %v3907_v48 }
 0x1f6   :  { %v628_v45 = vpop.f32.mrf.mxu1 }
 0x1f7   :  { %v629_v47 = vadd.f32 %v628_v45, %v427_v42 }
 0x1f8   :  { %v630_v51 = vpop.f32.mrf.mxu1 }
 0x1f9   :  { %v631_v53 = vadd.f32 %v630_v51, %v431_v46  ;;  %v1191_v62 = vrot.slane %v629_v47, 6  ;;  %v1327_v2 = vrot.slane %v629_v47, 2 }
 0x1fa   :  { %v632_v55 = vpop.f32.mrf.mxu1 }
 0x1fb   :  { %v633_v59 = vadd.f32 %v632_v55, %v427_v42  ;;  %v1192_v7 = vrot.slane %v631_v53, 6  ;;  %v1328_v11 = vrot.slane %v631_v53, 2 }
 0x1fc   :  { %v634_v63 = vpop.f32.mrf.mxu1 }
 0x1fd   :  { %v639_v3 = vrot.slane %v633_v59, 6  ;;  %v635_v4 = vadd.f32 %v634_v63, %v431_v46  ;;  %v770_v5 = vrot.slane %v633_v59, 2  ;;  %v3976_v6 = vsel %vm3966_vm1, %v633_v59, %v1191_v62 }
 0x1fe   :  { %v3980_v9 = vsel %vm3966_vm1, %v633_v59, %v1327_v2 }
 0x1ff   :  { %v3984_v12 = vsel %vm3966_vm1, %v629_v47, %v639_v3  ;;  %v3988_v13 = vsel %vm3966_vm1, %v629_v47, %v770_v5  ;;  %v771_v14 = vrot.slane %v635_v4, 2  ;;  %v3993_v16 = vsel %vm3970_vm2, %v635_v4, %v1192_v7 }
 0x200   :  { %v738_v15 = vadd.f32 %v731_v36, %v3984_v12  ;;  %v3997_v17 = vsel %vm3970_vm2, %v635_v4, %v1328_v11  ;;  %v640_v20 = vrot.slane %v635_v4, 6 }
 0x201   :  { %v4001_v18 = vsel %vm3970_vm2, %v631_v53, %v771_v14 }
 0x202   :  { %v3103_v19 = vmul.f32 -1.442695, %v738_v15  ;;  %v4005_v21 = vsel %vm3970_vm2, %v631_v53, %v640_v20 }
 0x203   :  { %v739_v22 = vadd.f32 %v733_v37, %v4005_v21 }
 0x204   :  { %3422 = vpow2.f32 %v3103_v19 }
 0x205   :  { %3424 = vtanh.f32 %v739_v22  ;;  %v3104_v28 = vmul.f32 -1.442695, %v739_v22 }
 0x211   :  { %v3423_v23 = vpop.eup %3422 }
 0x212   :  { %v743_v24 = vadd.f32 1.0, %v3423_v23  ;;  %v3425_v25 = vpop.eup %3424 }
 0x214   :  { %3426 = vrcp.f32 %v743_v24 }
 0x215   :  { %3428 = vpow2.f32 %v3104_v28 }
 0x221   :  { %v3427_v26 = vpop.eup %3426 }
 0x222   :  { %v754_v27 = vmul.f32 %v3427_v26, %v3425_v25  ;;  %v3429_v29 = vpop.eup %3428  ;;  %v753_v31 = vmul.f32 0.0, %v3427_v26 }
 0x223   :  { %v750_v30 = vadd.f32 1.0, %v3429_v29 }
 0x224   :  { %756 = vrot.lane.b32.xlu0 %v754_v27, %s3793_s3 }
 0x225   :  { %3430 = vrcp.f32 %v750_v30 }
 0x232   :  { %v3431_v34 = vpop.eup %3430 }
 0x296   :  { %v757_v32 = vpop.permute.xlu0 %756 }
 0x297   :  { %v759_v33 = vadd.f32 %v757_v32, %v753_v31 }
 0x299   :  { %3432 = vtanh.f32 %v759_v33  ;;  %v894_v55 = vrot.slane %v759_v33, 6 }
 0x2a6   :  { %v3433_v35 = vpop.eup %3432 }
 0x2a7   :  { %v4009_v36 = vmul.f32 %v3433_v35, %v3431_v34 }
 0x2a9   :  { %v776_v37 = vpack.c.bf16 %v4009_v36, %v4009_v36 }
 0x2ab   :  { %786 = vrot.lane.b32.xlu0 %v776_v37, %s3793_s3 }
 0x31d   :  { %v787_v38 = vpop.permute.xlu0 %786 }
 0x31e   :  { %3113 = vmatmul.mubr.msk.bf16.vlgmr.msra.gmra.mxu0 %vm693_vm3, %v787_v38 }
 0x31f   :  { %978 = vmatpush1.bf16.msra.mxu0 %v3909_v50  ;;  %1001 = vmatprep.mubr.bf16.mxu0 %v3795_v0 }
 0x320   :  { %979 = vmatprep.subr.bf16.mxu0 %v3913_v52 }
 0x323   :  { %980 = vmatpush1.bf16.msra.mxu0 %v3915_v54 }
 0x324   :  { %981 = vmatprep.subr.bf16.mxu0 %v3919_v56 }
 0x327   :  { %982 = vmatpush1.bf16.msra.mxu0 %v3921_v58 }
 0x328   :  { %983 = vmatprep.subr.bf16.mxu0 %v3925_v60 }
 0x32b   :  { %984 = vmatpush1.bf16.msra.mxu0 %v3927_v61 }
 0x32c   :  { %1115 = vmatprep.subr.bf16.mxu0 %v3907_v48 }
 0x3de   :  { %v865_v39 = vpop.f32.mrf.mxu0 }
 0x3df   :  { %v874_v40 = vrot.slane %v865_v39, 6 }
 0x3e0   :  { %v867_v41 = vpop.f32.mrf.mxu0 }
 0x3e1   :  { %v878_v42 = vadd.f32 %v874_v40, %v3988_v13  ;;  %v875_v46 = vrot.slane %v867_v41, 6 }
 0x3e2   :  { %v869_v43 = vpop.f32.mrf.mxu0 }
 0x3e3   :  { %v3114_v44 = vmul.f32 -1.442695, %v878_v42  ;;  %v879_v47 = vadd.f32 %v875_v46, %v4001_v18 }
 0x3e4   :  { %v870_v45 = vpop.f32.mrf.mxu0 }
 0x3e5   :  { %3434 = vpow2.f32 %v3114_v44  ;;  %v3115_v2 = vmul.f32 -1.442695, %v879_v47 }
 0x3e6   :  { %3436 = vtanh.f32 %v879_v47 }
 0x3f2   :  { %v3435_v49 = vpop.eup %3434 }
 0x3f3   :  { %v883_v51 = vadd.f32 1.0, %v3435_v49  ;;  %v3437_v53 = vpop.eup %3436 }
 0x3f5   :  { %3438 = vrcp.f32 %v883_v51 }
 0x3f6   :  { %3440 = vpow2.f32 %v3115_v2 }
 0x402   :  { %v3439_v59 = vpop.eup %3438 }
 0x403   :  { %v897_v62 = vmul.f32 %v3439_v59, %v3437_v53  ;;  %v896_v63 = vmul.f32 %v3439_v59, %v894_v55  ;;  %v3441_v3 = vpop.eup %3440 }
 0x404   :  { %v890_v4 = vadd.f32 1.0, %v3441_v3 }
 0x405   :  { %899 = vrot.lane.b32.xlu1 %v897_v62, %s3793_s3 }
 0x406   :  { %3442 = vrcp.f32 %v890_v4 }
 0x413   :  { %v3443_v11 = vpop.eup %3442 }
 0x477   :  { %v900_v5 = vpop.permute.xlu1 %899 }
 0x478   :  { %v902_v7 = vadd.f32 %v900_v5, %v896_v63 }
 0x47a   :  { %3444 = vtanh.f32 %v902_v7  ;;  %v1032_v35 = vrot.slane %v902_v7, 6 }
 0x487   :  { %v3445_v14 = vpop.eup %3444 }
 0x488   :  { %v4027_v15 = vmul.f32 %v3445_v14, %v3443_v11 }
 0x48a   :  { %v913_v19 = vpack.c.bf16 %v4027_v15, %v4027_v15 }
 0x48c   :  { %v923_v20 = vrot.slane %v913_v19, 1 }
 0x48e   :  { %924 = vrot.lane.b32.xlu1 %v923_v20, %s3793_s3 }
 0x500   :  { %v925_v22 = vpop.permute.xlu1 %924 }
 0x501   :  { %3124 = vmatmul.mubr.msk.bf16.vlgmr.msra.gmra.mxu0 %vm693_vm3, %v925_v22 }
 0x502   :  { %1116 = vmatpush1.bf16.msra.mxu0 %v3909_v50  ;;  %1139 = vmatprep.mubr.bf16.mxu0 %v3795_v0 }
 0x503   :  { %1117 = vmatprep.subr.bf16.mxu0 %v3913_v52 }
 0x506   :  { %1118 = vmatpush1.bf16.msra.mxu0 %v3915_v54 }
 0x507   :  { %1119 = vmatprep.subr.bf16.mxu0 %v3919_v56 }
 0x50a   :  { %1120 = vmatpush1.bf16.msra.mxu0 %v3921_v58 }
 0x50b   :  { %1121 = vmatprep.subr.bf16.mxu0 %v3925_v60 }
 0x50e   :  { %1122 = vmatpush1.bf16.msra.mxu0 %v3927_v61 }
 0x50f   :  { %1396 = vmatprep.subr.bf16.mxu0 %v3907_v48 }
 0x5c1   :  { %v1003_v23 = vpop.f32.mrf.mxu0 }
 0x5c2   :  { %v1012_v24 = vrot.slane %v1003_v23, 4 }
 0x5c3   :  { %v1005_v25 = vpop.f32.mrf.mxu0 }
 0x5c4   :  { %v1016_v26 = vadd.f32 %v1012_v24, %v3984_v12  ;;  %v1013_v30 = vrot.slane %v1005_v25, 4 }
 0x5c5   :  { %v1007_v27 = vpop.f32.mrf.mxu0 }
 0x5c6   :  { %v3125_v28 = vmul.f32 -1.442695, %v1016_v26  ;;  %v1017_v31 = vadd.f32 %v1013_v30, %v4005_v21 }
 0x5c7   :  { %v1008_v29 = vpop.f32.mrf.mxu0 }
 0x5c8   :  { %3446 = vpow2.f32 %v3125_v28  ;;  %v3126_v40 = vmul.f32 -1.442695, %v1017_v31 }
 0x5c9   :  { %3448 = vtanh.f32 %v1017_v31 }
 0x5d5   :  { %v3447_v32 = vpop.eup %3446 }
 0x5d6   :  { %v1021_v33 = vadd.f32 1.0, %v3447_v32  ;;  %v3449_v34 = vpop.eup %3448 }
 0x5d8   :  { %3450 = vrcp.f32 %v1021_v33 }
 0x5d9   :  { %3452 = vpow2.f32 %v3126_v40 }
 0x5e5   :  { %v3451_v37 = vpop.eup %3450 }
 0x5e6   :  { %v1035_v38 = vmul.f32 %v3451_v37, %v3449_v34  ;;  %v1034_v39 = vmul.f32 %v3451_v37, %v1032_v35  ;;  %v3453_v12 = vpop.eup %3452 }
 0x5e7   :  { %v1028_v41 = vadd.f32 1.0, %v3453_v12 }
 0x5e8   :  { %1037 = vrot.lane.b32.xlu0 %v1035_v38, %s3793_s3 }
 0x5e9   :  { %3454 = vrcp.f32 %v1028_v41 }
 0x5f6   :  { %v3455_v21 = vpop.eup %3454 }
 0x65a   :  { %v1038_v42 = vpop.permute.xlu0 %1037 }
 0x65b   :  { %v1040_v43 = vadd.f32 %v1038_v42, %v1034_v39 }
 0x65d   :  { %3456 = vtanh.f32 %v1040_v43  ;;  %v1170_v14 = vrot.slane %v1040_v43, 6 }
 0x66a   :  { %v3457_v44 = vpop.eup %3456 }
 0x66b   :  { %v4045_v45 = vmul.f32 %v3457_v44, %v3455_v21 }
 0x66d   :  { %v1051_v46 = vpack.c.bf16 %v4045_v45, %v4045_v45 }
 0x66f   :  { %v1061_v47 = vrot.slane %v1051_v46, 2 }
 0x671   :  { %1062 = vrot.lane.b32.xlu1 %v1061_v47, %s3793_s3 }
 0x6e3   :  { %v1063_v49 = vpop.permute.xlu1 %1062 }
 0x6e4   :  { %3135 = vmatmul.mubr.msk.bf16.vlgmr.msra.gmra.mxu0 %vm693_vm3, %v1063_v49 }
 0x6e5   :  { %1397 = vmatpush1.bf16.msra.mxu0 %v3909_v50  ;;  %1420 = vmatprep.mubr.bf16.mxu0 %v3795_v0 }
 0x6e6   :  { %1398 = vmatprep.subr.bf16.mxu0 %v3913_v52 }
 0x6e9   :  { %1399 = vmatpush1.bf16.msra.mxu0 %v3915_v54 }
 0x6ea   :  { %1400 = vmatprep.subr.bf16.mxu0 %v3919_v56 }
 0x6ed   :  { %1401 = vmatpush1.bf16.msra.mxu0 %v3921_v58 }
 0x6ee   :  { %1402 = vmatprep.subr.bf16.mxu0 %v3925_v60 }
 0x6f1   :  { %1403 = vmatpush1.bf16.msra.mxu0 %v3927_v61 }
 0x6f2   :  { %1668 = vmatprep.subr.bf16.mxu0 %v3907_v48 }
 0x7a4   :  { %v1141_v51 = vpop.f32.mrf.mxu0 }
 0x7a5   :  { %v1150_v53 = vrot.slane %v1141_v51, 2 }
 0x7a6   :  { %v1143_v55 = vpop.f32.mrf.mxu0 }
 0x7a7   :  { %v1154_v59 = vadd.f32 %v1150_v53, %v3988_v13  ;;  %v1151_v3 = vrot.slane %v1143_v55, 2 }
 0x7a8   :  { %v1145_v62 = vpop.f32.mrf.mxu0 }
 0x7a9   :  { %v3136_v63 = vmul.f32 -1.442695, %v1154_v59  ;;  %v1155_v4 = vadd.f32 %v1151_v3, %v4001_v18 }
 0x7aa   :  { %v1146_v2 = vpop.f32.mrf.mxu0 }
 0x7ab   :  { %3458 = vpow2.f32 %v3136_v63  ;;  %v3137_v22 = vmul.f32 -1.442695, %v1155_v4 }
 0x7ac   :  { %3460 = vtanh.f32 %v1155_v4 }
 0x7b8   :  { %v3459_v5 = vpop.eup %3458 }
 0x7b9   :  { %v1159_v7 = vadd.f32 1.0, %v3459_v5  ;;  %v3461_v11 = vpop.eup %3460 }
 0x7bb   :  { %3462 = vrcp.f32 %v1159_v7 }
 0x7bc   :  { %3464 = vpow2.f32 %v3137_v22 }
 0x7c8   :  { %v3463_v19 = vpop.eup %3462 }
 0x7c9   :  { %v1173_v48 = vmul.f32 %v3463_v19, %v3461_v11  ;;  %v1172_v20 = vmul.f32 %v3463_v19, %v1170_v14  ;;  %v3465_v13 = vpop.eup %3464 }
 0x7ca   :  { %v1166_v23 = vadd.f32 1.0, %v3465_v13 }
 0x7cb   :  { %1175 = vrot.lane.b32.xlu0 %v1173_v48, %s3793_s3 }
 0x7cc   :  { %3466 = vrcp.f32 %v1166_v23 }
 0x7d9   :  { %v3467_v18 = vpop.eup %3466 }
 0x83d   :  { %v1176_v24 = vpop.permute.xlu0 %1175 }
 0x83e   :  { %v1178_v25 = vadd.f32 %v1176_v24, %v1172_v20 }
 0x840   :  { %3468 = vtanh.f32 %v1178_v25  ;;  %v1310_v41 = vrot.slane %v1178_v25, 6 }
 0x84d   :  { %v3469_v26 = vpop.eup %3468 }
 0x84e   :  { %v4063_v27 = vmul.f32 %v3469_v26, %v3467_v18 }
 0x850   :  { %v1197_v28 = vpack.c.bf16 %v4063_v27, %v4063_v27 }
 0x852   :  { %v1207_v29 = vrot.slane %v1197_v28, 3 }
 0x854   :  { %1208 = vrot.lane.b32.xlu1 %v1207_v29, %s3793_s3 }
 0x8c6   :  { %v1209_v30 = vpop.permute.xlu1 %1208 }
 0x8c7   :  { %3146 = vmatmul.mubr.msk.bf16.vlgmr.msra.gmra.mxu1 %vm693_vm3, %v1209_v30 }
 0x8c8   :  { %1533 = vmatpush1.bf16.msra.mxu1 %v3909_v50  ;;  %1556 = vmatprep.mubr.bf16.mxu1 %v3795_v0 }
 0x8c9   :  { %1534 = vmatprep.subr.bf16.mxu1 %v3913_v52 }
 0x8cc   :  { %1535 = vmatpush1.bf16.msra.mxu1 %v3915_v54 }
 0x8cd   :  { %1536 = vmatprep.subr.bf16.mxu1 %v3919_v56 }
 0x8d0   :  { %1537 = vmatpush1.bf16.msra.mxu1 %v3921_v58 }
 0x8d1   :  { %1538 = vmatprep.subr.bf16.mxu1 %v3925_v60 }
 0x8d4   :  { %1539 = vmatpush1.bf16.msra.mxu1 %v3927_v61 }
 0x987   :  { %v1287_v31 = vpop.f32.mrf.mxu1 }
 0x988   :  { %v1294_v32 = vadd.f32 %v1287_v31, %v3976_v6 }
 0x989   :  { %v1289_v33 = vpop.f32.mrf.mxu1 }
 0x98a   :  { %v3147_v34 = vmul.f32 -1.442695, %v1294_v32  ;;  %v1295_v38 = vadd.f32 %v1289_v33, %v3993_v16 }
 0x98b   :  { %v1291_v35 = vpop.f32.mrf.mxu1 }
 0x98c   :  { %3470 = vpow2.f32 %v3147_v34  ;;  %v3148_v44 = vmul.f32 -1.442695, %v1295_v38 }
 0x98d   :  { %v1292_v37 = vpop.f32.mrf.mxu1  ;;  %3472 = vtanh.f32 %v1295_v38 }
 0x999   :  { %v3471_v39 = vpop.eup %3470 }
 0x99a   :  { %v1299_v40 = vadd.f32 1.0, %v3471_v39  ;;  %v3473_v12 = vpop.eup %3472 }
 0x99c   :  { %3474 = vrcp.f32 %v1299_v40 }
 0x99d   :  { %3476 = vpow2.f32 %v3148_v44 }
 0x9a9   :  { %v3475_v42 = vpop.eup %3474 }
 0x9aa   :  { %v1313_v43 = vmul.f32 %v3475_v42, %v3473_v12  ;;  %v1312_v21 = vmul.f32 %v3475_v42, %v1310_v41  ;;  %v3477_v46 = vpop.eup %3476 }
 0x9ab   :  { %v1306_v47 = vadd.f32 1.0, %v3477_v46 }
 0x9ac   :  { %1315 = vrot.lane.b32.xlu0 %v1313_v43, %s3793_s3 }
 0x9ad   :  { %3478 = vrcp.f32 %v1306_v47 }
 0x9ba   :  { %v3479_v53 = vpop.eup %3478 }
 0xa1e   :  { %v1316_v49 = vpop.permute.xlu0 %1315 }
 0xa1f   :  { %v1318_v51 = vadd.f32 %v1316_v49, %v1312_v21 }
 0xa21   :  { %3480 = vtanh.f32 %v1318_v51 }
 0xa2e   :  { %v3481_v55 = vpop.eup %3480 }
 0xa2f   :  { %v4080_v59 = vmul.f32 %v3481_v55, %v3479_v53 }
 0xa31   :  { %v1333_v62 = vpack.c.bf16 %v4080_v59, %v4080_v59 }
 0xa33   :  { %1343 = vrot.lane.b32.xlu1 %v1333_v62, %s3793_s3 }
 0xaa5   :  { %v1344_v63 = vpop.permute.xlu1 %1343 }
 0xaa6   :  { %3157 = vmatmul.mubr.msk.bf16.vlgmr.msra.gmra.mxu0 %vm693_vm3, %v1344_v63 }
 0xaa7   :  { %1669 = vmatpush1.bf16.msra.mxu0 %v3909_v50  ;;  %1692 = vmatprep.mubr.bf16.mxu0 %v3795_v0 }
 0xaa8   :  { %1670 = vmatprep.subr.bf16.mxu0 %v3913_v52 }
 0xaab   :  { %1671 = vmatpush1.bf16.msra.mxu0 %v3915_v54 }
 0xaac   :  { %1672 = vmatprep.subr.bf16.mxu0 %v3919_v56 }
 0xaaf   :  { %1673 = vmatpush1.bf16.msra.mxu0 %v3921_v58 }
 0xab0   :  { %1674 = vmatprep.subr.bf16.mxu0 %v3925_v60  ;;  %v1451_v60 = vrot.slane %v1318_v51, 6 }
 0xab3   :  { %1675 = vmatpush1.bf16.msra.mxu0 %v3927_v61 }
 0xb66   :  { %v1422_v2 = vpop.f32.mrf.mxu0 }
 0xb67   :  { %v1431_v3 = vrot.slane %v1422_v2, 6 }
 0xb68   :  { %v1424_v4 = vpop.f32.mrf.mxu0 }
 0xb69   :  { %v1435_v5 = vadd.f32 %v1431_v3, %v3980_v9  ;;  %v1432_v52 = vrot.slane %v1424_v4, 6 }
 0xb6a   :  { %v1426_v50 = vpop.f32.mrf.mxu0 }
 0xb6b   :  { %v3158_v7 = vmul.f32 -1.442695, %v1435_v5  ;;  %v1436_v54 = vadd.f32 %v1432_v52, %v3997_v17 }
 0xb6c   :  { %v1427_v11 = vpop.f32.mrf.mxu0 }
 0xb6d   :  { %3482 = vpow2.f32 %v3158_v7  ;;  %v3159_v20 = vmul.f32 -1.442695, %v1436_v54 }
 0xb6e   :  { %3484 = vtanh.f32 %v1436_v54 }
 0xb7a   :  { %v3483_v14 = vpop.eup %3482 }
 0xb7b   :  { %v1440_v56 = vadd.f32 1.0, %v3483_v14  ;;  %v3485_v58 = vpop.eup %3484 }
 0xb7d   :  { %3486 = vrcp.f32 %v1440_v56 }
 0xb7e   :  { %3488 = vpow2.f32 %v3159_v20 }
 0xb8a   :  { %v3487_v19 = vpop.eup %3486 }
 0xb8b   :  { %v1454_v61 = vmul.f32 %v3487_v19, %v3485_v58  ;;  %v1453_v48 = vmul.f32 %v3487_v19, %v1451_v60  ;;  %v3489_v22 = vpop.eup %3488 }
 0xb8c   :  { %v1447_v13 = vadd.f32 1.0, %v3489_v22  ;;  %v3396_v22 = vld [vmem:[#allocation11 + $0x34] ss:$8 sps:$4 sm:$0xff]  }
 0xb8d   :  { %1456 = vrot.lane.b32.xlu0 %v1454_v61, %s3793_s3  ;;  %1814 = vmatprep.subr.bf16.mxu1 %v3396_v22 }
 0xb8e   :  { %3490 = vrcp.f32 %v1447_v13  ;;  %v3399_v13 = vld [vmem:[#allocation11 + $0x24] ss:$8 sps:$4 sm:$0xff]  }
 0xb9b   :  { %v3491_v25 = vpop.eup %3490 }
 0xbff   :  { %v1457_v23 = vpop.permute.xlu0 %1456 }
 0xc00   :  { %v1459_v24 = vadd.f32 %v1457_v23, %v1453_v48  ;;  %v4126_v23 = vld [vmem:[#allocation12 + $0x30] ss:$8 sps:$4 sm:$0xff]  }
 0xc02   :  { %3492 = vtanh.f32 %v1459_v24  ;;  %v1587_v43 = vrot.slane %v1459_v24, 6  ;;  %v3397_v24 = vld [vmem:[#allocation11 + $0x20] ss:$8 sps:$4 sm:$0xff]  }
 0xc0f   :  { %v3493_v18 = vpop.eup %3492 }
 0xc10   :  { %v4097_v26 = vmul.f32 %v3493_v18, %v3491_v25 }
 0xc12   :  { %v1468_v28 = vpack.c.bf16 %v4097_v26, %v4097_v26 }
 0xc14   :  { %v1478_v29 = vrot.slane %v1468_v28, 1 }
 0xc16   :  { %1479 = vrot.lane.b32.xlu1 %v1478_v29, %s3793_s3 }
 0xc88   :  { %v1480_v30 = vpop.permute.xlu1 %1479 }
 0xc89   :  { %3168 = vmatmul.mubr.msk.bf16.vlgmr.msra.gmra.mxu1 %vm693_vm3, %v1480_v30 }
 0xc8a   :  { %1838 = vmatprep.mubr.bf16.mxu1 %v3795_v0 }
 0xd49   :  { %v1558_v31 = vpop.f32.mrf.mxu1 }
 0xd4a   :  { %v1567_v32 = vrot.slane %v1558_v31, 4 }
 0xd4b   :  { %v1560_v33 = vpop.f32.mrf.mxu1 }
 0xd4c   :  { %v1571_v34 = vadd.f32 %v1567_v32, %v3976_v6  ;;  %v1568_v39 = vrot.slane %v1560_v33, 4  ;;  %v3405_v32 = vld [vmem:[#allocation11 + $0x14] ss:$8 sps:$4 sm:$0xff]   ;;  %v4140_v33 = vld [vmem:[#allocation12 + $0x20] ss:$8 sps:$4 sm:$0xff]  }
 0xd4d   :  { %v1562_v35 = vpop.f32.mrf.mxu1 }
 0xd4e   :  { %v3169_v37 = vmul.f32 -1.442695, %v1571_v34  ;;  %v1572_v40 = vadd.f32 %v1568_v39, %v3993_v16  ;;  %v4142_v34 = vld [vmem:[#allocation12 + $0x24] ss:$8 sps:$4 sm:$0xff]   ;;  %v3409_v39 = vld [vmem:[#allocation11] ss:$8 sps:$4 sm:$0xff]  }
 0xd4f   :  { %v1563_v38 = vpop.f32.mrf.mxu1  ;;  %v3411_v35 = vld [vmem:[#allocation11 + $0x4] ss:$8 sps:$4 sm:$0xff]  }
 0xd50   :  { %3494 = vpow2.f32 %v3169_v37  ;;  %v3170_v47 = vmul.f32 -1.442695, %v1572_v40  ;;  %v4144_v38 = vld [vmem:[#allocation12 + $0x14] ss:$8 sps:$4 sm:$0xff]  }
 0xd51   :  { %3496 = vtanh.f32 %v1572_v40  ;;  %v4152_v40 = vld [vmem:[#allocation12 + $0x10] ss:$8 sps:$4 sm:$0xff]  }
 0xd5d   :  { %v3495_v12 = vpop.eup %3494 }
 0xd5e   :  { %v1576_v41 = vadd.f32 1.0, %v3495_v12  ;;  %v3497_v42 = vpop.eup %3496 }
 0xd60   :  { %3498 = vrcp.f32 %v1576_v41  ;;  %v4158_v41 = vld [vmem:[#allocation12 + $0x4] ss:$8 sps:$4 sm:$0xff]  }
 0xd61   :  { %3500 = vpow2.f32 %v3170_v47 }
 0xd6d   :  { %v3499_v21 = vpop.eup %3498 }
 0xd6e   :  { %v1590_v44 = vmul.f32 %v3499_v21, %v3497_v42  ;;  %v1589_v46 = vmul.f32 %v3499_v21, %v1587_v43  ;;  %v3501_v6 = vpop.eup %3500  ;;  %v4161_v43 = vld [vmem:[#allocation12] ss:$8 sps:$4 sm:$0xff]  }
 0xd6f   :  { %v1583_v49 = vadd.f32 1.0, %v3501_v6 }
 0xd70   :  { %1592 = vrot.lane.b32.xlu0 %v1590_v44, %s3793_s3 }
 0xd71   :  { %3502 = vrcp.f32 %v1583_v49 }
 0xd7e   :  { %v3503_v16 = vpop.eup %3502 }
 0xde2   :  { %v1593_v51 = vpop.permute.xlu0 %1592 }
 0xde3   :  { %v1595_v53 = vadd.f32 %v1593_v51, %v1589_v46 }
 0xde5   :  { %3504 = vtanh.f32 %v1595_v53  ;;  %v1723_v19 = vrot.slane %v1595_v53, 6 }
 0xdf2   :  { %v3505_v55 = vpop.eup %3504 }
 0xdf3   :  { %v1597_v62 = vmul.f32 %v3505_v55, %v3503_v16 }
 0xdf5   :  { %v1604_v63 = vpack.c.bf16 %v1597_v62, %v1597_v62 }
 0xdf7   :  { %v1614_v2 = vrot.slane %v1604_v63, 2 }
 0xdf9   :  { %1615 = vrot.lane.b32.xlu1 %v1614_v2, %s3793_s3 }
 0xdfd   :  { %763 = vrot.lane.b32.xlu1 %v4009_v36, %s3793_s3 }
 0xe01   :  { %1044 = vrot.lane.b32.xlu1 %v4045_v45, %s3793_s3 }
 0xe05   :  { %1322 = vrot.lane.b32.xlu1 %v4080_v59, %s3793_s3 }
 0xe09   :  { %1599 = vrot.lane.b32.xlu1 %v1597_v62, %s3793_s3  ;;  %v1751_v62 = vld [vmem:[%s4379_s8] sm:$0x3] }
 0xe0a   :  { %v1756_v63 = vrot.slane %v1751_v62, %v3945_v10 }
 0xe6b   :  { %v1616_v3 = vpop.permute.xlu1 %1615 }
 0xe6c   :  { %3179 = vmatmul.mubr.msk.bf16.vlgmr.msra.gmra.mxu0 %vm693_vm3, %v1616_v3  ;;  %v1760_v3 = vrot.slane %v1751_v62, %v3943_v8 }
 0xe6d   :  { %1937 = vmatprep.mubr.bf16.mxu0 %v3795_v0 }
 0xe6f   :  { %v764_v4 = vpop.permute.xlu1 %763 }
 0xe70   :  { %767 = vst.msk [vmem:[#allocation2] sm:$0x3] %vm766_vm4, %v764_v4 }
 0xe71   :  { %769 = vst.msk [vmem:[#allocation2 + $0xe] sm:$0x3] %vm768_vm5, %v764_v4 }
 0xe73   :  { %v1045_v36 = vpop.permute.xlu1 %1044 }
 0xe74   :  { %1048 = vst.msk [vmem:[#allocation2] sm:$0x30] %vm1047_vm6, %v1045_v36 }
 0xe75   :  { %1050 = vst.msk [vmem:[#allocation2 + $0x6] sm:$0x30] %vm1049_vm7, %v1045_v36 }
 0xe77   :  { %v1323_v28 = vpop.permute.xlu1 %1322 }
 0xe7b   :  { %v1600_v31 = vpop.permute.xlu1 %1599 }
 0xf2c   :  { %v1694_v45 = vpop.f32.mrf.mxu0 }
 0xf2d   :  { %v1703_v59 = vrot.slane %v1694_v45, 2 }
 0xf2e   :  { %v1696_v5 = vpop.f32.mrf.mxu0 }
 0xf2f   :  { %v1707_v50 = vadd.f32 %v1703_v59, %v3980_v9  ;;  %v1704_v54 = vrot.slane %v1696_v5, 2  ;;  %v3394_v9 = vld [vmem:[#allocation11 + $0x30] ss:$8 sps:$4 sm:$0xff]  }
 0xf30   :  { %v1698_v7 = vpop.f32.mrf.mxu0  ;;  %1815 = vmatpush1.bf16.msra.mxu1 %v3394_v9 }
 0xf31   :  { %v3180_v11 = vmul.f32 -1.442695, %v1707_v50  ;;  %v1708_v14 = vadd.f32 %v1704_v54, %v3997_v17  ;;  %v4128_v17 = vld [vmem:[#allocation12 + $0x34] ss:$8 sps:$4 sm:$0xff]   ;;  %1816 = vmatprep.subr.bf16.mxu1 %v3399_v13 }
 0xf32   :  { %v1699_v52 = vpop.f32.mrf.mxu0  ;;  %1913 = vmatprep.subr.bf16.mxu0 %v4128_v17 }
 0xf33   :  { %3506 = vpow2.f32 %v3180_v11  ;;  %1914 = vmatpush1.bf16.msra.mxu0 %v4126_v23 }
 0xf34   :  { %3508 = vtanh.f32 %v1708_v14  ;;  %1817 = vmatpush1.bf16.msra.mxu1 %v3397_v24  ;;  %1915 = vmatprep.subr.bf16.mxu0 %v4142_v34 }
 0xf35   :  { %1818 = vmatprep.subr.bf16.mxu1 %v3405_v32 }
 0xf37   :  { %1916 = vmatpush1.bf16.msra.mxu0 %v4140_v33 }
 0xf38   :  { %1917 = vmatprep.subr.bf16.mxu0 %v4144_v38 }
 0xf3b   :  { %1918 = vmatpush1.bf16.msra.mxu0 %v4152_v40 }
 0xf3c   :  { %1919 = vmatprep.subr.bf16.mxu0 %v4158_v41 }
 0xf3f   :  { %1920 = vmatpush1.bf16.msra.mxu0 %v4161_v43 }
 0xf40   :  { %v3507_v56 = vpop.eup %3506  ;;  %2181 = vmatprep.subr.bf16.mxu0 %v4128_v17 }
 0xf41   :  { %v1712_v58 = vadd.f32 1.0, %v3507_v56  ;;  %v3509_v60 = vpop.eup %3508 }
 0xf42   :  { %1938 = vmatmul.mubr.bf16.vlgmr.msra.gmra.mxu0 %v3795_v0 }
 0xf43   :  { %3510 = vrcp.f32 %v1712_v58  ;;  %2182 = vmatpush1.bf16.msra.mxu0 %v4126_v23  ;;  %2205 = vmatprep.mubr.bf16.mxu0 %v3795_v0 }
 0xf44   :  { %2183 = vmatprep.subr.bf16.mxu0 %v4142_v34 }
 0xf47   :  { %2184 = vmatpush1.bf16.msra.mxu0 %v4140_v33 }
 0xf48   :  { %2185 = vmatprep.subr.bf16.mxu0 %v4144_v38 }
 0xf4b   :  { %2186 = vmatpush1.bf16.msra.mxu0 %v4152_v40 }
 0xf4c   :  { %2187 = vmatprep.subr.bf16.mxu0 %v4158_v41 }
 0xf4f   :  { %2188 = vmatpush1.bf16.msra.mxu0 %v4161_v43 }
 0xf50   :  { %v3511_v61 = vpop.eup %3510  ;;  %2461 = vmatprep.subr.bf16.mxu0 %v4128_v17 }
 0xf51   :  { %v1726_v48 = vmul.f32 %v3511_v61, %v3509_v60  ;;  %v1725_v20 = vmul.f32 %v3511_v61, %v1723_v19 }
 0xf53   :  { %1728 = vrot.lane.b32.xlu0 %v1726_v48, %s3793_s3 }
 0xf57   :  { %906 = vrot.lane.b32.xlu0 %v4027_v15, %s3793_s3  ;;  %v3181_v15 = vmul.f32 -1.442695, %v1708_v14 }
 0xf59   :  { %3512 = vpow2.f32 %v3181_v15 }
 0xf5b   :  { %1182 = vrot.lane.b32.xlu0 %v4063_v27, %s3793_s3 }
 0xf5f   :  { %1463 = vrot.lane.b32.xlu0 %v4097_v26, %s3793_s3  ;;  %v3403_v26 = vld [vmem:[#allocation11 + $0x10] ss:$8 sps:$4 sm:$0xff]  }
 0xf60   :  { %1819 = vmatpush1.bf16.msra.mxu1 %v3403_v26 }
 0xf61   :  { %1820 = vmatprep.subr.bf16.mxu1 %v3411_v35 }
 0xf64   :  { %1821 = vmatpush1.bf16.msra.mxu1 %v3409_v39 }
 0xf65   :  { %2045 = vmatprep.subr.bf16.mxu1 %v4128_v17 }
 0xf66   :  { %v3513_v25 = vpop.eup %3512 }
 0xf67   :  { %v1719_v18 = vadd.f32 1.0, %v3513_v25 }
 0xf69   :  { %3514 = vrcp.f32 %v1719_v18 }
 0xf76   :  { %v3515_v42 = vpop.eup %3514 }
 0xfc5   :  { %v1729_v29 = vpop.permute.xlu0 %1728 }
 0xfc6   :  { %v1731_v30 = vadd.f32 %v1729_v29, %v1725_v20 }
 0xfc8   :  { %3516 = vtanh.f32 %v1731_v30 }
 0xfc9   :  { %v907_v27 = vpop.permute.xlu0 %906 }
 0xfca   :  { %910 = vst.msk [vmem:[#allocation2] sm:$0xc] %vm909_vm8, %v907_v27 }
 0xfcb   :  { %912 = vst.msk [vmem:[#allocation2 + $0xa] sm:$0xc] %vm911_vm9, %v907_v27 }
 0xfcc   :  { %1602 = vst.msk [vmem:[#allocation2 + $0x8] sm:$0x30] %vm1047_vm6, %v1600_v31 }
 0xfcd   :  { %1603 = vst.msk [vmem:[#allocation2 - $0x2] sm:$0x30] %vm1049_vm7, %v1600_v31  ;;  %v1183_v37 = vpop.permute.xlu0 %1182 }
 0xfce   :  { %1186 = vst.msk [vmem:[#allocation2] sm:$0xc0] %vm1185_vm10, %v1183_v37 }
 0xfcf   :  { %1188 = vst.msk [vmem:[#allocation2 + $0x2] sm:$0xc0] %vm1187_vm11, %v1183_v37 }
 0xfd0   :  { %1325 = vst.msk [vmem:[#allocation2 + $0x8] sm:$0x3] %vm766_vm4, %v1323_v28 }
 0xfd1   :  { %1326 = vst.msk [vmem:[#allocation2 + $0x6] sm:$0x3] %vm768_vm5, %v1323_v28  ;;  %v1464_v12 = vpop.permute.xlu0 %1463 }
 0xfd2   :  { %1466 = vst.msk [vmem:[#allocation2 + $0x8] sm:$0xc] %vm909_vm8, %v1464_v12 }
 0xfd3   :  { %1467 = vst.msk [vmem:[#allocation2 + $0x2] sm:$0xc] %vm911_vm9, %v1464_v12 }
 0xfd5   :  { %v3517_v21 = vpop.eup %3516 }
 0xfd6   :  { %v1733_v44 = vmul.f32 %v3517_v21, %v3515_v42 }
 0xfd8   :  { %1735 = vrot.lane.b32.xlu0 %v1733_v44, %s3793_s3 }
0x1002   :  { %v1939_v51 = vpop.f32.mrf.mxu0 }
0x1004   :  { %v1941_v53 = vpop.f32.mrf.mxu0 }
0x1006   :  { %v1943_v16 = vpop.f32.mrf.mxu0 }
0x1008   :  { %v1944_v55 = vpop.f32.mrf.mxu0 }
0x104a   :  { %v1736_v46 = vpop.permute.xlu0 %1735 }
0x104b   :  { %1738 = vst.msk [vmem:[#allocation2 + $0x8] sm:$0xc0] %vm1185_vm10, %v1736_v46 }
0x104c   :  { %1739 = vst.msk [vmem:[#allocation2 - $0x6] sm:$0xc0] %vm1187_vm11, %v1736_v46 }
0x1052   :  { %v1741_v6 = vld [vmem:[#allocation2 + $0x8] sm:$0xff] }
0x1053   :  { %v1740_v47 = vld [vmem:[#allocation2] sm:$0xff] }
0x1054   :  { %v1742_v49 = vpack.c.bf16 %v1741_v6, %v1740_v47 }
0x1056   :  { %3190 = vmatmul.mubr.msk.bf16.vlgmr.msra.gmra.mxu1 %vm693_vm3, %v1742_v49 }
0x1057   :  { %2046 = vmatpush1.bf16.msra.mxu1 %v4126_v23  ;;  %2069 = vmatprep.mubr.bf16.mxu1 %v3795_v0 }
0x1058   :  { %2047 = vmatprep.subr.bf16.mxu1 %v4142_v34 }
0x105b   :  { %2048 = vmatpush1.bf16.msra.mxu1 %v4140_v33 }
0x105c   :  { %2049 = vmatprep.subr.bf16.mxu1 %v4144_v38 }
0x105f   :  { %2050 = vmatpush1.bf16.msra.mxu1 %v4152_v40 }
0x1060   :  { %2051 = vmatprep.subr.bf16.mxu1 %v4158_v41 }
0x1063   :  { %2052 = vmatpush1.bf16.msra.mxu1 %v4161_v43 }
0x1064   :  { %2317 = vmatprep.subr.bf16.mxu1 %v4128_v17 }
0x1116   :  { %v1840_v2 = vpop.f32.mrf.mxu1 }
0x1117   :  { %v1841_v4 = vadd.f32 %v1840_v2, %v1756_v63 }
0x1118   :  { %v1842_v36 = vpop.f32.mrf.mxu1 }
0x1119   :  { %v1843_v45 = vadd.f32 %v1842_v36, %v1760_v3  ;;  %v2391_v50 = vrot.slane %v1841_v4, 6  ;;  %v2527_v11 = vrot.slane %v1841_v4, 2 }
0x111a   :  { %v1844_v59 = vpop.f32.mrf.mxu1 }
0x111b   :  { %v1845_v5 = vadd.f32 %v1844_v59, %v1756_v63  ;;  %v2392_v58 = vrot.slane %v1843_v45, 6  ;;  %v2528_v8 = vrot.slane %v1843_v45, 2 }
0x111c   :  { %v1846_v7 = vpop.f32.mrf.mxu1 }
0x111d   :  { %v1851_v52 = vrot.slane %v1845_v5, 6  ;;  %v1847_v54 = vadd.f32 %v1846_v7, %v1760_v3  ;;  %v1976_v14 = vrot.slane %v1845_v5, 2  ;;  %v4196_v56 = vsel %vm3966_vm1, %v1845_v5, %v2391_v50 }
0x111e   :  { %v4200_v10 = vsel %vm3966_vm1, %v1845_v5, %v2527_v11 }
0x111f   :  { %v4204_v60 = vsel %vm3966_vm1, %v1841_v4, %v1851_v52  ;;  %v4208_v19 = vsel %vm3966_vm1, %v1841_v4, %v1976_v14  ;;  %v1977_v61 = vrot.slane %v1847_v54, 2  ;;  %v4213_v20 = vsel %vm3970_vm2, %v1847_v54, %v2392_v58 }
0x1120   :  { %v1946_v48 = vadd.f32 %v1939_v51, %v4204_v60  ;;  %v4217_v9 = vsel %vm3970_vm2, %v1847_v54, %v2528_v8  ;;  %v1852_v57 = vrot.slane %v1847_v54, 6 }
0x1121   :  { %v4221_v22 = vsel %vm3970_vm2, %v1843_v45, %v1977_v61 }
0x1122   :  { %v3199_v13 = vmul.f32 -1.442695, %v1946_v48  ;;  %v4225_v24 = vsel %vm3970_vm2, %v1843_v45, %v1852_v57 }
0x1123   :  { %v1947_v15 = vadd.f32 %v1941_v53, %v4225_v24 }
0x1124   :  { %3518 = vpow2.f32 %v3199_v13 }
0x1125   :  { %3520 = vtanh.f32 %v1947_v15  ;;  %v3200_v27 = vmul.f32 -1.442695, %v1947_v15 }
0x1131   :  { %v3519_v25 = vpop.eup %3518 }
0x1132   :  { %v1951_v18 = vadd.f32 1.0, %v3519_v25  ;;  %v3521_v28 = vpop.eup %3520 }
0x1134   :  { %3522 = vrcp.f32 %v1951_v18 }
0x1135   :  { %3524 = vpow2.f32 %v3200_v27 }
0x1141   :  { %v3523_v29 = vpop.eup %3522 }
0x1142   :  { %v1962_v30 = vmul.f32 %v3523_v29, %v3521_v28  ;;  %v3525_v31 = vpop.eup %3524  ;;  %v1961_v32 = vmul.f32 0.0, %v3523_v29 }
0x1143   :  { %v1958_v26 = vadd.f32 1.0, %v3525_v31 }
0x1144   :  { %1964 = vrot.lane.b32.xlu1 %v1962_v30, %s3793_s3 }
0x1145   :  { %3526 = vrcp.f32 %v1958_v26 }
0x1152   :  { %v3527_v37 = vpop.eup %3526 }
0x11b6   :  { %v1965_v35 = vpop.permute.xlu1 %1964 }
0x11b7   :  { %v1967_v1 = vadd.f32 %v1965_v35, %v1961_v32 }
0x11b9   :  { %3528 = vtanh.f32 %v1967_v1  ;;  %v2100_v3 = vrot.slane %v1967_v1, 6 }
0x11c6   :  { %v3529_v39 = vpop.eup %3528 }
0x11c7   :  { %v4229_v12 = vmul.f32 %v3529_v39, %v3527_v37 }
0x11c9   :  { %v1982_v42 = vpack.c.bf16 %v4229_v12, %v4229_v12 }
0x11cb   :  { %1992 = vrot.lane.b32.xlu0 %v1982_v42, %s3793_s3 }
0x123d   :  { %v1993_v21 = vpop.permute.xlu0 %1992 }
0x123e   :  { %3209 = vmatmul.mubr.msk.bf16.vlgmr.msra.gmra.mxu1 %vm693_vm3, %v1993_v21 }
0x123f   :  { %2318 = vmatpush1.bf16.msra.mxu1 %v4126_v23  ;;  %2341 = vmatprep.mubr.bf16.mxu1 %v3795_v0 }
0x1240   :  { %2319 = vmatprep.subr.bf16.mxu1 %v4142_v34 }
0x1243   :  { %2320 = vmatpush1.bf16.msra.mxu1 %v4140_v33 }
0x1244   :  { %2321 = vmatprep.subr.bf16.mxu1 %v4144_v38 }
0x1247   :  { %2322 = vmatpush1.bf16.msra.mxu1 %v4152_v40 }
0x1248   :  { %2323 = vmatprep.subr.bf16.mxu1 %v4158_v41 }
0x124b   :  { %2324 = vmatpush1.bf16.msra.mxu1 %v4161_v43 }
0x124c   :  { %2596 = vmatprep.subr.bf16.mxu1 %v4128_v17 }
0x12fe   :  { %v2071_v44 = vpop.f32.mrf.mxu1 }
0x12ff   :  { %v2080_v46 = vrot.slane %v2071_v44, 6 }
0x1300   :  { %v2073_v47 = vpop.f32.mrf.mxu1 }
0x1301   :  { %v2084_v6 = vadd.f32 %v2080_v46, %v4208_v19  ;;  %v2081_v16 = vrot.slane %v2073_v47, 6 }
0x1302   :  { %v2075_v49 = vpop.f32.mrf.mxu1 }
0x1303   :  { %v3210_v51 = vmul.f32 -1.442695, %v2084_v6  ;;  %v2085_v55 = vadd.f32 %v2081_v16, %v4221_v22 }
0x1304   :  { %v2076_v53 = vpop.f32.mrf.mxu1 }
0x1305   :  { %3530 = vpow2.f32 %v3210_v51  ;;  %v3211_v59 = vmul.f32 -1.442695, %v2085_v55 }
0x1306   :  { %3532 = vtanh.f32 %v2085_v55 }
0x1312   :  { %v3531_v62 = vpop.eup %3530 }
0x1313   :  { %v2089_v63 = vadd.f32 1.0, %v3531_v62  ;;  %v3533_v2 = vpop.eup %3532 }
0x1315   :  { %3534 = vrcp.f32 %v2089_v63 }
0x1316   :  { %3536 = vpow2.f32 %v3211_v59 }
0x1322   :  { %v3535_v4 = vpop.eup %3534 }
0x1323   :  { %v2103_v36 = vmul.f32 %v3535_v4, %v3533_v2  ;;  %v2102_v45 = vmul.f32 %v3535_v4, %v2100_v3  ;;  %v3537_v5 = vpop.eup %3536 }
0x1324   :  { %v2096_v50 = vadd.f32 1.0, %v3537_v5 }
0x1325   :  { %2105 = vrot.lane.b32.xlu1 %v2103_v36, %s3793_s3 }
0x1326   :  { %3538 = vrcp.f32 %v2096_v50 }
0x1333   :  { %v3539_v52 = vpop.eup %3538 }
0x1397   :  { %v2106_v7 = vpop.permute.xlu1 %2105 }
0x1398   :  { %v2108_v11 = vadd.f32 %v2106_v7, %v2102_v45 }
0x139a   :  { %3540 = vtanh.f32 %v2108_v11  ;;  %v2236_v32 = vrot.slane %v2108_v11, 6 }
0x13a7   :  { %v3541_v54 = vpop.eup %3540 }
0x13a8   :  { %v4247_v14 = vmul.f32 %v3541_v54, %v3539_v52 }
0x13aa   :  { %v2117_v58 = vpack.c.bf16 %v4247_v14, %v4247_v14 }
0x13ac   :  { %v2127_v8 = vrot.slane %v2117_v58, 1 }
0x13ae   :  { %2128 = vrot.lane.b32.xlu0 %v2127_v8, %s3793_s3 }
0x1420   :  { %v2129_v61 = vpop.permute.xlu0 %2128 }
0x1421   :  { %3220 = vmatmul.mubr.msk.bf16.vlgmr.msra.gmra.mxu0 %vm693_vm3, %v2129_v61 }
0x1422   :  { %2462 = vmatpush1.bf16.msra.mxu0 %v4126_v23  ;;  %2485 = vmatprep.mubr.bf16.mxu0 %v3795_v0 }
0x1423   :  { %2463 = vmatprep.subr.bf16.mxu0 %v4142_v34 }
0x1426   :  { %2464 = vmatpush1.bf16.msra.mxu0 %v4140_v33 }
0x1427   :  { %2465 = vmatprep.subr.bf16.mxu0 %v4144_v38 }
0x142a   :  { %2466 = vmatpush1.bf16.msra.mxu0 %v4152_v40 }
0x142b   :  { %2467 = vmatprep.subr.bf16.mxu0 %v4158_v41 }
0x142e   :  { %2468 = vmatpush1.bf16.msra.mxu0 %v4161_v43 }
0x142f   :  { %2732 = vmatprep.subr.bf16.mxu0 %v4128_v17 }
0x14e1   :  { %v2207_v48 = vpop.f32.mrf.mxu0 }
0x14e2   :  { %v2216_v13 = vrot.slane %v2207_v48, 4 }
0x14e3   :  { %v2209_v57 = vpop.f32.mrf.mxu0 }
0x14e4   :  { %v2220_v15 = vadd.f32 %v2216_v13, %v4204_v60  ;;  %v2217_v29 = vrot.slane %v2209_v57, 4 }
0x14e5   :  { %v2211_v25 = vpop.f32.mrf.mxu0 }
0x14e6   :  { %v3221_v18 = vmul.f32 -1.442695, %v2220_v15  ;;  %v2221_v30 = vadd.f32 %v2217_v29, %v4225_v24 }
0x14e7   :  { %v2212_v28 = vpop.f32.mrf.mxu0 }
0x14e8   :  { %3542 = vpow2.f32 %v3221_v18  ;;  %v3222_v39 = vmul.f32 -1.442695, %v2221_v30 }
0x14e9   :  { %3544 = vtanh.f32 %v2221_v30 }
0x14f5   :  { %v3543_v27 = vpop.eup %3542 }
0x14f6   :  { %v2225_v31 = vadd.f32 1.0, %v3543_v27  ;;  %v3545_v26 = vpop.eup %3544 }
0x14f8   :  { %3546 = vrcp.f32 %v2225_v31 }
0x14f9   :  { %3548 = vpow2.f32 %v3222_v39 }
0x1505   :  { %v3547_v35 = vpop.eup %3546 }
0x1506   :  { %v2239_v1 = vmul.f32 %v3547_v35, %v3545_v26  ;;  %v2238_v37 = vmul.f32 %v3547_v35, %v2236_v32  ;;  %v3549_v60 = vpop.eup %3548 }
0x1507   :  { %v2232_v42 = vadd.f32 1.0, %v3549_v60 }
0x1508   :  { %2241 = vrot.lane.b32.xlu1 %v2239_v1, %s3793_s3 }
0x1509   :  { %3550 = vrcp.f32 %v2232_v42 }
0x1516   :  { %v3551_v24 = vpop.eup %3550 }
0x157a   :  { %v2242_v21 = vpop.permute.xlu1 %2241 }
0x157b   :  { %v2244_v44 = vadd.f32 %v2242_v21, %v2238_v37 }
0x157d   :  { %3552 = vtanh.f32 %v2244_v44  ;;  %v2372_v50 = vrot.slane %v2244_v44, 6 }
0x158a   :  { %v3553_v46 = vpop.eup %3552 }
0x158b   :  { %v4265_v47 = vmul.f32 %v3553_v46, %v3551_v24 }
0x158d   :  { %v2253_v6 = vpack.c.bf16 %v4265_v47, %v4265_v47 }
0x158f   :  { %v2263_v49 = vrot.slane %v2253_v6, 2 }
0x1591   :  { %2264 = vrot.lane.b32.xlu0 %v2263_v49, %s3793_s3 }
0x1603   :  { %v2265_v51 = vpop.permute.xlu0 %2264 }
0x1604   :  { %3231 = vmatmul.mubr.msk.bf16.vlgmr.msra.gmra.mxu1 %vm693_vm3, %v2265_v51 }
0x1605   :  { %2597 = vmatpush1.bf16.msra.mxu1 %v4126_v23  ;;  %2620 = vmatprep.mubr.bf16.mxu1 %v3795_v0 }
0x1606   :  { %2598 = vmatprep.subr.bf16.mxu1 %v4142_v34 }
0x1609   :  { %2599 = vmatpush1.bf16.msra.mxu1 %v4140_v33 }
0x160a   :  { %2600 = vmatprep.subr.bf16.mxu1 %v4144_v38 }
0x160d   :  { %2601 = vmatpush1.bf16.msra.mxu1 %v4152_v40 }
0x160e   :  { %2602 = vmatprep.subr.bf16.mxu1 %v4158_v41 }
0x1611   :  { %2603 = vmatpush1.bf16.msra.mxu1 %v4161_v43 }
0x1612   :  { %2868 = vmatprep.subr.bf16.mxu1 %v4128_v17 }
0x16c4   :  { %v2343_v53 = vpop.f32.mrf.mxu1 }
0x16c5   :  { %v2352_v16 = vrot.slane %v2343_v53, 2 }
0x16c6   :  { %v2345_v55 = vpop.f32.mrf.mxu1 }
0x16c7   :  { %v2356_v62 = vadd.f32 %v2352_v16, %v4208_v19  ;;  %v2353_v4 = vrot.slane %v2345_v55, 2 }
0x16c8   :  { %v2347_v63 = vpop.f32.mrf.mxu1 }
0x16c9   :  { %v3232_v2 = vmul.f32 -1.442695, %v2356_v62  ;;  %v2357_v36 = vadd.f32 %v2353_v4, %v4221_v22 }
0x16ca   :  { %v2348_v3 = vpop.f32.mrf.mxu1 }
0x16cb   :  { %3554 = vpow2.f32 %v3232_v2  ;;  %v3233_v52 = vmul.f32 -1.442695, %v2357_v36 }
0x16cc   :  { %3556 = vtanh.f32 %v2357_v36 }
0x16d8   :  { %v3555_v45 = vpop.eup %3554 }
0x16d9   :  { %v2361_v59 = vadd.f32 1.0, %v3555_v45  ;;  %v3557_v5 = vpop.eup %3556 }
0x16db   :  { %3558 = vrcp.f32 %v2361_v59 }
0x16dc   :  { %3560 = vpow2.f32 %v3233_v52 }
0x16e8   :  { %v3559_v7 = vpop.eup %3558 }
0x16e9   :  { %v2375_v17 = vmul.f32 %v3559_v7, %v3557_v5  ;;  %v2374_v11 = vmul.f32 %v3559_v7, %v2372_v50  ;;  %v3561_v19 = vpop.eup %3560 }
0x16ea   :  { %v2368_v54 = vadd.f32 1.0, %v3561_v19 }
0x16eb   :  { %2377 = vrot.lane.b32.xlu1 %v2375_v17, %s3793_s3 }
0x16ec   :  { %3562 = vrcp.f32 %v2368_v54 }
0x16f9   :  { %v3563_v22 = vpop.eup %3562 }
0x175d   :  { %v2378_v58 = vpop.permute.xlu1 %2377 }
0x175e   :  { %v2380_v8 = vadd.f32 %v2378_v58, %v2374_v11 }
0x1760   :  { %3564 = vtanh.f32 %v2380_v8  ;;  %v2510_v1 = vrot.slane %v2380_v8, 6 }
0x176d   :  { %v3565_v61 = vpop.eup %3564 }
0x176e   :  { %v4283_v48 = vmul.f32 %v3565_v61, %v3563_v22 }
0x1770   :  { %v2397_v13 = vpack.c.bf16 %v4283_v48, %v4283_v48 }
0x1772   :  { %v2407_v57 = vrot.slane %v2397_v13, 3 }
0x1774   :  { %2408 = vrot.lane.b32.xlu0 %v2407_v57, %s3793_s3 }
0x17e6   :  { %v2409_v15 = vpop.permute.xlu0 %2408 }
0x17e7   :  { %3242 = vmatmul.mubr.msk.bf16.vlgmr.msra.gmra.mxu0 %vm693_vm3, %v2409_v15 }
0x17e8   :  { %2733 = vmatpush1.bf16.msra.mxu0 %v4126_v23  ;;  %2756 = vmatprep.mubr.bf16.mxu0 %v3795_v0 }
0x17e9   :  { %2734 = vmatprep.subr.bf16.mxu0 %v4142_v34 }
0x17ec   :  { %2735 = vmatpush1.bf16.msra.mxu0 %v4140_v33 }
0x17ed   :  { %2736 = vmatprep.subr.bf16.mxu0 %v4144_v38 }
0x17f0   :  { %2737 = vmatpush1.bf16.msra.mxu0 %v4152_v40 }
0x17f1   :  { %2738 = vmatprep.subr.bf16.mxu0 %v4158_v41 }
0x17f4   :  { %2739 = vmatpush1.bf16.msra.mxu0 %v4161_v43 }
0x18a7   :  { %v2487_v25 = vpop.f32.mrf.mxu0 }
0x18a8   :  { %v2494_v18 = vadd.f32 %v2487_v25, %v4196_v56 }
0x18a9   :  { %v2489_v28 = vpop.f32.mrf.mxu0 }
0x18aa   :  { %v3243_v29 = vmul.f32 -1.442695, %v2494_v18  ;;  %v2495_v31 = vadd.f32 %v2489_v28, %v4213_v20 }
0x18ab   :  { %v2491_v30 = vpop.f32.mrf.mxu0 }
0x18ac   :  { %3566 = vpow2.f32 %v3243_v29  ;;  %v3244_v42 = vmul.f32 -1.442695, %v2495_v31 }
0x18ad   :  { %v2492_v27 = vpop.f32.mrf.mxu0  ;;  %3568 = vtanh.f32 %v2495_v31 }
0x18b9   :  { %v3567_v26 = vpop.eup %3566 }
0x18ba   :  { %v2499_v32 = vadd.f32 1.0, %v3567_v26  ;;  %v3569_v35 = vpop.eup %3568 }
0x18bc   :  { %3570 = vrcp.f32 %v2499_v32 }
0x18bd   :  { %3572 = vpow2.f32 %v3244_v42 }
0x18c9   :  { %v3571_v37 = vpop.eup %3570 }
0x18ca   :  { %v2513_v39 = vmul.f32 %v3571_v37, %v3569_v35  ;;  %v2512_v60 = vmul.f32 %v3571_v37, %v2510_v1  ;;  %v3573_v21 = vpop.eup %3572 }
0x18cb   :  { %v2506_v44 = vadd.f32 1.0, %v3573_v21 }
0x18cc   :  { %2515 = vrot.lane.b32.xlu1 %v2513_v39, %s3793_s3 }
0x18cd   :  { %3574 = vrcp.f32 %v2506_v44 }
0x18da   :  { %v3575_v6 = vpop.eup %3574 }
0x193e   :  { %v2516_v24 = vpop.permute.xlu1 %2515 }
0x193f   :  { %v2518_v46 = vadd.f32 %v2516_v24, %v2512_v60 }
0x1941   :  { %3576 = vtanh.f32 %v2518_v46 }
0x194e   :  { %v3577_v49 = vpop.eup %3576 }
0x194f   :  { %v4300_v51 = vmul.f32 %v3577_v49, %v3575_v6 }
0x1951   :  { %v2533_v53 = vpack.c.bf16 %v4300_v51, %v4300_v51 }
0x1953   :  { %2543 = vrot.lane.b32.xlu0 %v2533_v53, %s3793_s3 }
0x19c5   :  { %v2544_v16 = vpop.permute.xlu0 %2543 }
0x19c6   :  { %3253 = vmatmul.mubr.msk.bf16.vlgmr.msra.gmra.mxu1 %vm693_vm3, %v2544_v16 }
0x19c7   :  { %2869 = vmatpush1.bf16.msra.mxu1 %v4126_v23  ;;  %2892 = vmatprep.mubr.bf16.mxu1 %v3795_v0 }
0x19c8   :  { %2870 = vmatprep.subr.bf16.mxu1 %v4142_v34 }
0x19cb   :  { %2871 = vmatpush1.bf16.msra.mxu1 %v4140_v33 }
0x19cc   :  { %2872 = vmatprep.subr.bf16.mxu1 %v4144_v38 }
0x19cf   :  { %2873 = vmatpush1.bf16.msra.mxu1 %v4152_v40 }
0x19d0   :  { %2874 = vmatprep.subr.bf16.mxu1 %v4158_v41  ;;  %v2651_v41 = vrot.slane %v2518_v46, 6 }
0x19d3   :  { %2875 = vmatpush1.bf16.msra.mxu1 %v4161_v43 }
0x1a86   :  { %v2622_v55 = vpop.f32.mrf.mxu1 }
0x1a87   :  { %v2631_v62 = vrot.slane %v2622_v55, 6 }
0x1a88   :  { %v2624_v63 = vpop.f32.mrf.mxu1 }
0x1a89   :  { %v2635_v2 = vadd.f32 %v2631_v62, %v4200_v10  ;;  %v2632_v34 = vrot.slane %v2624_v63, 6 }
0x1a8a   :  { %v2626_v23 = vpop.f32.mrf.mxu1 }
0x1a8b   :  { %v3254_v3 = vmul.f32 -1.442695, %v2635_v2  ;;  %v2636_v33 = vadd.f32 %v2632_v34, %v4217_v9 }
0x1a8c   :  { %v2627_v0 = vpop.f32.mrf.mxu1 }
0x1a8d   :  { %3578 = vpow2.f32 %v3254_v3  ;;  %v3255_v59 = vmul.f32 -1.442695, %v2636_v33 }
0x1a8e   :  { %3580 = vtanh.f32 %v2636_v33 }
0x1a9a   :  { %v3579_v4 = vpop.eup %3578 }
0x1a9b   :  { %v2640_v38 = vadd.f32 1.0, %v3579_v4  ;;  %v3581_v40 = vpop.eup %3580 }
0x1a9d   :  { %3582 = vrcp.f32 %v2640_v38 }
0x1a9e   :  { %3584 = vpow2.f32 %v3255_v59 }
0x1aaa   :  { %v3583_v36 = vpop.eup %3582 }
0x1aab   :  { %v2654_v43 = vmul.f32 %v3583_v36, %v3581_v40  ;;  %v2653_v45 = vmul.f32 %v3583_v36, %v2651_v41  ;;  %v3585_v5 = vpop.eup %3584  ;;  %v3796_v41 = vmov 0.0   ;;  %v3419_v36 = vld [vmem:[#allocation14 + $0x10] sm:$0xff]  }
0x1aac   :  { %v2647_v50 = vadd.f32 1.0, %v3585_v5  ;;  %3289 = vmatprep.subr.bf16.mxu0 %v3796_v41 }
0x1aad   :  { %2656 = vrot.lane.b32.xlu1 %v2654_v43, %s3793_s3 }
0x1aae   :  { %3586 = vrcp.f32 %v2647_v50 }
0x1abb   :  { %v3587_v11 = vpop.eup %3586 }
0x1b1f   :  { %v2657_v7 = vpop.permute.xlu1 %2656 }
0x1b20   :  { %v2659_v17 = vadd.f32 %v2657_v7, %v2653_v45 }
0x1b22   :  { %3588 = vtanh.f32 %v2659_v17  ;;  %v2787_v26 = vrot.slane %v2659_v17, 6 }
0x1b2f   :  { %v3589_v52 = vpop.eup %3588 }
0x1b30   :  { %v4317_v19 = vmul.f32 %v3589_v52, %v3587_v11  ;;  %v3421_v11 = vld [vmem:[#allocation14] sm:$0xff]  }
0x1b32   :  { %v2668_v54 = vpack.c.bf16 %v4317_v19, %v4317_v19 }
0x1b34   :  { %v2678_v58 = vrot.slane %v2668_v54, 1 }
0x1b36   :  { %2679 = vrot.lane.b32.xlu0 %v2678_v58, %s3793_s3 }
0x1ba8   :  { %v2680_v8 = vpop.permute.xlu0 %2679 }
0x1ba9   :  { %3264 = vmatmul.mubr.msk.bf16.vlgmr.msra.gmra.mxu0 %vm693_vm3, %v2680_v8 }
0x1baa   :  { %3297 = vmatprep.mubr.msk.bf16.mxu0 %vm3797_vm12, %v3796_v41 }
0x1c69   :  { %v2758_v22 = vpop.f32.mrf.mxu0 }
0x1c6a   :  { %v2767_v61 = vrot.slane %v2758_v22, 4 }
0x1c6b   :  { %v2760_v13 = vpop.f32.mrf.mxu0 }
0x1c6c   :  { %v2771_v57 = vadd.f32 %v2767_v61, %v4196_v56  ;;  %v2768_v28 = vrot.slane %v2760_v13, 4 }
0x1c6d   :  { %v2762_v15 = vpop.f32.mrf.mxu0 }
0x1c6e   :  { %v3265_v25 = vmul.f32 -1.442695, %v2771_v57  ;;  %v2772_v29 = vadd.f32 %v2768_v28, %v4213_v20  ;;  %v3278_v57 = vld [vmem:[%s4381_s10] ss:$0 sm:$0xff] }
0x1c6f   :  { %v2763_v18 = vpop.f32.mrf.mxu0 }
0x1c70   :  { %3590 = vpow2.f32 %v3265_v25  ;;  %v3266_v37 = vmul.f32 -1.442695, %v2772_v29 }
0x1c71   :  { %3592 = vtanh.f32 %v2772_v29 }
0x1c7d   :  { %v3591_v30 = vpop.eup %3590 }
0x1c7e   :  { %v2776_v27 = vadd.f32 1.0, %v3591_v30  ;;  %v3593_v31 = vpop.eup %3592 }
0x1c80   :  { %3594 = vrcp.f32 %v2776_v27 }
0x1c81   :  { %3596 = vpow2.f32 %v3266_v37 }
0x1c8d   :  { %v3595_v32 = vpop.eup %3594 }
0x1c8e   :  { %v2790_v35 = vmul.f32 %v3595_v32, %v3593_v31  ;;  %v2789_v1 = vmul.f32 %v3595_v32, %v2787_v26  ;;  %v3597_v56 = vpop.eup %3596 }
0x1c8f   :  { %v2783_v39 = vadd.f32 1.0, %v3597_v56 }
0x1c90   :  { %2792 = vrot.lane.b32.xlu1 %v2790_v35, %s3793_s3 }
0x1c91   :  { %3598 = vrcp.f32 %v2783_v39 }
0x1c9e   :  { %v3599_v20 = vpop.eup %3598 }
0x1d02   :  { %v2793_v60 = vpop.permute.xlu1 %2792 }
0x1d03   :  { %v2795_v42 = vadd.f32 %v2793_v60, %v2789_v1 }
0x1d05   :  { %3600 = vtanh.f32 %v2795_v42  ;;  %v2923_v33 = vrot.slane %v2795_v42, 6 }
0x1d12   :  { %v3601_v21 = vpop.eup %3600 }
0x1d13   :  { %v2797_v44 = vmul.f32 %v3601_v21, %v3599_v20 }
0x1d15   :  { %v2804_v24 = vpack.c.bf16 %v2797_v44, %v2797_v44 }
0x1d17   :  { %v2814_v46 = vrot.slane %v2804_v24, 2 }
0x1d19   :  { %2815 = vrot.lane.b32.xlu0 %v2814_v46, %s3793_s3 }
0x1d1d   :  { %1971 = vrot.lane.b32.xlu0 %v4229_v12, %s3793_s3 }
0x1d21   :  { %2248 = vrot.lane.b32.xlu0 %v4265_v47, %s3793_s3 }
0x1d25   :  { %2522 = vrot.lane.b32.xlu0 %v4300_v51, %s3793_s3 }
0x1d29   :  { %2799 = vrot.lane.b32.xlu0 %v2797_v44, %s3793_s3 }
0x1d8b   :  { %v2816_v6 = vpop.permute.xlu0 %2815 }
0x1d8c   :  { %3275 = vmatmul.mubr.msk.bf16.vlgmr.msra.gmra.mxu1 %vm693_vm3, %v2816_v6 }
0x1d8f   :  { %v1972_v49 = vpop.permute.xlu0 %1971 }
0x1d90   :  { %1974 = vst.msk [vmem:[#allocation2] sm:$0x3] %vm766_vm4, %v1972_v49 }
0x1d91   :  { %1975 = vst.msk [vmem:[#allocation2 + $0xe] sm:$0x3] %vm768_vm5, %v1972_v49 }
0x1d93   :  { %v2249_v53 = vpop.permute.xlu0 %2248 }
0x1d94   :  { %2251 = vst.msk [vmem:[#allocation2] sm:$0x30] %vm1047_vm6, %v2249_v53 }
0x1d95   :  { %2252 = vst.msk [vmem:[#allocation2 + $0x6] sm:$0x30] %vm1049_vm7, %v2249_v53 }
0x1d97   :  { %v2523_v59 = vpop.permute.xlu0 %2522 }
0x1d9b   :  { %v2800_v7 = vpop.permute.xlu0 %2799 }
0x1e4c   :  { %v2894_v12 = vpop.f32.mrf.mxu1 }
0x1e4d   :  { %v2903_v47 = vrot.slane %v2894_v12, 2 }
0x1e4e   :  { %v2896_v16 = vpop.f32.mrf.mxu1 }
0x1e4f   :  { %v2907_v51 = vadd.f32 %v2903_v47, %v4200_v10  ;;  %v2904_v2 = vrot.slane %v2896_v16, 2  ;;  %v3418_v10 = vld [vmem:[#allocation14 + $0x18] sm:$0xff]  }
0x1e50   :  { %v2898_v55 = vpop.f32.mrf.mxu1  ;;  %3290 = vmatpush3.bf16.msra.mxu0 %v3418_v10 }
0x1e51   :  { %v3276_v62 = vmul.f32 -1.442695, %v2907_v51  ;;  %v2908_v23 = vadd.f32 %v2904_v2, %v4217_v9  ;;  %3291 = vmatprep.subr.bf16.mxu0 %v3796_v41 }
0x1e52   :  { %v2899_v63 = vpop.f32.mrf.mxu1 }
0x1e53   :  { %3602 = vpow2.f32 %v3276_v62  ;;  %v3277_v9 = vmul.f32 -1.442695, %v2908_v23 }
0x1e54   :  { %3604 = vtanh.f32 %v2908_v23  ;;  %3292 = vmatpush3.bf16.msra.mxu0 %v3419_v36 }
0x1e55   :  { %3293 = vmatprep.subr.bf16.mxu0 %v3796_v41 }
0x1e60   :  { %v3603_v3 = vpop.eup %3602 }
0x1e61   :  { %v2912_v0 = vadd.f32 1.0, %v3603_v3  ;;  %v3605_v34 = vpop.eup %3604 }
0x1e63   :  { %3606 = vrcp.f32 %v2912_v0 }
0x1e64   :  { %3608 = vpow2.f32 %v3277_v9 }
0x1e70   :  { %v3607_v4 = vpop.eup %3606 }
0x1e71   :  { %v2926_v38 = vmul.f32 %v3607_v4, %v3605_v34  ;;  %v2925_v40 = vmul.f32 %v3607_v4, %v2923_v33  ;;  %v3609_v43 = vpop.eup %3608 }
0x1e72   :  { %v2919_v45 = vadd.f32 1.0, %v3609_v43 }
0x1e73   :  { %2928 = vrot.lane.b32.xlu1 %v2926_v38, %s3793_s3 }
0x1e74   :  { %3610 = vrcp.f32 %v2919_v45 }
0x1e77   :  { %2112 = vrot.lane.b32.xlu1 %v4247_v14, %s3793_s3 }
0x1e7b   :  { %2384 = vrot.lane.b32.xlu1 %v4283_v48, %s3793_s3  ;;  %v3420_v48 = vld [vmem:[#allocation14 + $0x8] sm:$0xff]  }
0x1e7c   :  { %3294 = vmatpush3.bf16.msra.mxu0 %v3420_v48 }
0x1e7d   :  { %3295 = vmatprep.subr.bf16.mxu0 %v3796_v41 }
0x1e7f   :  { %2663 = vrot.lane.b32.xlu1 %v4317_v19, %s3793_s3 }
0x1e80   :  { %3296 = vmatpush3.bf16.msra.mxu0 %v3421_v11 }
0x1e81   :  { %v3611_v19 = vpop.eup %3610 }
0x1ee5   :  { %v2929_v14 = vpop.permute.xlu1 %2928 }
0x1ee6   :  { %v2931_v5 = vadd.f32 %v2929_v14, %v2925_v40 }
0x1ee8   :  { %3612 = vtanh.f32 %v2931_v5 }
0x1ee9   :  { %v2113_v50 = vpop.permute.xlu1 %2112 }
0x1eea   :  { %2115 = vst.msk [vmem:[#allocation2] sm:$0xc] %vm909_vm8, %v2113_v50 }
0x1eeb   :  { %2116 = vst.msk [vmem:[#allocation2 + $0xa] sm:$0xc] %vm911_vm9, %v2113_v50 }
0x1eec   :  { %2802 = vst.msk [vmem:[#allocation2 + $0x8] sm:$0x30] %vm1047_vm6, %v2800_v7 }
0x1eed   :  { %2803 = vst.msk [vmem:[#allocation2 - $0x2] sm:$0x30] %vm1049_vm7, %v2800_v7  ;;  %v2385_v17 = vpop.permute.xlu1 %2384 }
0x1eee   :  { %2387 = vst.msk [vmem:[#allocation2] sm:$0xc0] %vm1185_vm10, %v2385_v17 }
0x1eef   :  { %2388 = vst.msk [vmem:[#allocation2 + $0x2] sm:$0xc0] %vm1187_vm11, %v2385_v17 }
0x1ef0   :  { %2525 = vst.msk [vmem:[#allocation2 + $0x8] sm:$0x3] %vm766_vm4, %v2523_v59 }
0x1ef1   :  { %2526 = vst.msk [vmem:[#allocation2 + $0x6] sm:$0x3] %vm768_vm5, %v2523_v59  ;;  %v2664_v52 = vpop.permute.xlu1 %2663 }
0x1ef2   :  { %2666 = vst.msk [vmem:[#allocation2 + $0x8] sm:$0xc] %vm909_vm8, %v2664_v52 }
0x1ef3   :  { %2667 = vst.msk [vmem:[#allocation2 + $0x2] sm:$0xc] %vm911_vm9, %v2664_v52 }
0x1ef5   :  { %v3613_v54 = vpop.eup %3612 }
0x1ef6   :  { %v2933_v58 = vmul.f32 %v3613_v54, %v3611_v19 }
0x1ef8   :  { %2935 = vrot.lane.b32.xlu1 %v2933_v58, %s3793_s3 }
0x1f6a   :  { %v2936_v8 = vpop.permute.xlu1 %2935 }
0x1f6b   :  { %2938 = vst.msk [vmem:[#allocation2 + $0x8] sm:$0xc0] %vm1185_vm10, %v2936_v8 }
0x1f6c   :  { %2939 = vst.msk [vmem:[#allocation2 - $0x6] sm:$0xc0] %vm1187_vm11, %v2936_v8 }
0x1f72   :  { %v2941_v61 = vld [vmem:[#allocation2 + $0x8] sm:$0xff] }
0x1f73   :  { %v2940_v22 = vld [vmem:[#allocation2] sm:$0xff] }
0x1f74   :  { %v2942_v13 = vpack.c.bf16 %v2941_v61, %v2940_v22 }
0x1f76   :  { %3298 = vmatmul.mubr.msk.bf16.vlgmr.msra.gmra.mxu0 %vm693_vm3, %v2942_v13 }
0x2036   :  { %v3019_v15 = vpop.f32.mrf.mxu0 }
0x2037   :  { %v3020_v25 = vadd.f32 %v3278_v57, %v3019_v15 }
0x2038   :  { %v3299_v18 = vpop.f32.mrf.mxu0 }
0x2039   :  { %3026 = vst [vmem:[#allocation15] sm:$0xff] %v3020_v25 }
0x203a   :  { %v3022_v28 = vpop.f32.mrf.mxu0 }
0x203b   :  { %v3023_v29 = vadd.f32 %v3278_v57, %v3022_v28 }
0x203c   :  { %v3300_v30 = vpop.f32.mrf.mxu0 }
0x203d   :  { %3027 = vst [vmem:[#allocation15 + $0x8] sm:$0xff] %v3023_v29 }
0x203e   :  { %3765 = shalt.err (!%p3762_p11)
}
0x203f   :  { %3039 = dma.vmem_to_hbm [thread:$0]  %s3034_s17, 256, %s4382_s11, [#allocation5], %s3786_s22, %s3786_s22, %s3787_s23  }
0x2040   :  { %3782 = dma.done.wait [#allocation5], 256  }
0x2041   :  { %3783 = vsyncadd [#allocation5], 4294967040 }
0x2042   :  { %3043 = vsyncpa [#allocation4], 1 }
0x2043   :  { %3044 = vsyncpa [#allocation7], 1 }
0x2044   :  { %3045 = vsyncpa [#allocation10], 1 }
0x2045   :  { %3046 = vsyncpa [#allocation13], 1 }
0x2046   :  { %3047 = vsyncpa [#allocation5], 1 }

</bundles_post_ra>
